<compile_context>
chip_gen: v6e
topology: v6e:2x2x1
jax: 0.10.0
libtpu: 0.0.40
codegen_flags: <defaults>
</compile_context>

<pallas_src>
import functools

import jax
import jax.numpy as jnp
from jax.experimental import pallas as pl
from jax.experimental.pallas import tpu as pltpu


# -----------------------------------------------------------------------------
# Fused kernel: segmented max over point tiles + residual MLP head
# -----------------------------------------------------------------------------
def _fused_kernel(offs_ref,                      # [B+1] i32, scalar-prefetch (SMEM)
                  pf_ref, voxel_ref,
                  wv_ref, bv_ref,
                  w1r_ref, w1v_ref, b1_ref,
                  ws1r_ref, ws1v_ref, bs1_ref,
                  bn1s_ref, bn1o_ref,
                  w2_ref, b2_ref, ws2_ref, bs2_ref,
                  bn2s_ref, bn2o_ref,
                  w3_ref, b3_ref,
                  out_ref, acc_ref, *, num_batches, tile_rows):
    f32, bf16 = jnp.float32, jnp.bfloat16
    t = pl.program_id(0)

    @pl.when(t == 0)
    def _init():
        acc_ref[...] = jnp.full(acc_ref.shape, -jnp.inf, dtype=acc_ref.dtype)
        # Defensive: output block index is constant, so any early writeback
        # flushes zeros instead of uninitialized VMEM.  One cheap vst, once.
        out_ref[...] = jnp.zeros(out_ref.shape, dtype=out_ref.dtype)

    tile_start = t * tile_rows
    tile_end = tile_start + tile_rows

    # ---- segmented max over this point tile --------------------------------
    # coords[:,0] is sorted, so batch b occupies global rows
    # [offs[b], offs[b+1]).  Only batches overlapping this tile do any work;
    # tiles fully inside one batch skip the iota/mask/select entirely.
    # Pad rows (global row >= N = offs[B]) never fall inside any batch range.
    for b in range(num_batches):
        lo = offs_ref[b]
        hi = offs_ref[b + 1]
        overlaps = jnp.logical_and(lo < tile_end, hi > tile_start)
        covers = jnp.logical_and(lo <= tile_start, hi >= tile_end)

        @pl.when(jnp.logical_and(overlaps, covers))
        def _full(b=b):
            # Whole tile belongs to batch b (and contains no pad rows): plain
            # unmasked max — the common case once ids are sorted.
            row_max = jnp.max(pf_ref[...], axis=0, keepdims=True)      # [1, F]
            acc_ref[pl.ds(b, 1), :] = jnp.maximum(acc_ref[pl.ds(b, 1), :],
                                                  row_max)

        @pl.when(jnp.logical_and(overlaps, jnp.logical_not(covers)))
        def _partial(b=b, lo=lo, hi=hi):
            # Rare boundary tile: mask rows outside [lo, hi) with -inf.
            row = (jax.lax.broadcasted_iota(jnp.int32, pf_ref.shape, 0)
                   + tile_start)
            mask = jnp.logical_and(row >= lo, row < hi)
            masked = jnp.where(mask, pf_ref[...], -jnp.inf)
            row_max = jnp.max(masked, axis=0, keepdims=True)            # [1, F]
            acc_ref[pl.ds(b, 1), :] = jnp.maximum(acc_ref[pl.ds(b, 1), :],
                                                  row_max)

    # ---- fused residual MLP head on the last grid step ----------------------
    @pl.when(t == pl.num_programs(0) - 1)
    def _head():
        ret = acc_ref[...]
        # empty batches keep PyTorch's zero-initialized rows
        ret = jnp.where(ret == -jnp.inf, 0.0, ret)

        def mm(x, w_ref):
            # bf16 x bf16 MXU matmul with f32 accumulation; no f32 weight
            # upcast (avoids materializing f32 weight copies in vregs/VMEM).
            return jnp.dot(x.astype(bf16), w_ref[...],
                           preferred_element_type=f32)

        v256 = mm(voxel_ref[...], wv_ref) + bv_ref[...]                 # [B, 256]

        # cat = [ret, v256]: concat removed by splitting the 512-in weights
        fc1 = mm(ret, w1r_ref) + mm(v256, w1v_ref) + b1_ref[...]
        sc1 = mm(ret, ws1r_ref) + mm(v256, ws1v_ref) + bs1_ref[...]
        fc1 = jnp.maximum(fc1, 0.0)
        res = fc1 * bn1s_ref[...] + bn1o_ref[...] + sc1                 # [B, 256]

        fc2 = jnp.maximum(mm(res, w2_ref) + b2_ref[...], 0.0)
        sc2 = mm(res, ws2_ref) + bs2_ref[...]
        x = fc2 * bn2s_ref[...] + bn2o_ref[...] + sc2                   # [B, 128]

        # fc3 padded to 128 output lanes -> lane-dense (unmasked) store
        out_ref[...] = (mm(x, w3_ref) + b3_ref[...]).astype(out_ref.dtype)


# -----------------------------------------------------------------------------
# Wrapper / glue
# -----------------------------------------------------------------------------
def classification_v18_forward(params, point_feature, coords, voxel_feature,
                               num_batches, num_class=4, tile_points=4096):
    # TODO(synk): batch_size = coords[:,0].max()+1 is data-dependent in
    # PyTorch; it must be passed statically here (fixed TPU shapes).  Points
    # with id >= num_batches are silently dropped, and coords[:,0] must be
    # sorted by batch id (true for the cylinder voxel generator output) since
    # the kernel uses per-batch row offsets instead of per-point ids.
    n, f = point_feature.shape
    ids = coords[:, 0].astype(jnp.int32)
    B = num_batches

    # Per-batch row offsets (B+1 scalars, prefetched into SMEM) replace the
    # lane-sparse [N,1] ids tensor and its DMA entirely.
    offsets = jnp.searchsorted(ids, jnp.arange(B + 1, dtype=jnp.int32)
                               ).astype(jnp.int32)

    # Larger point tiles amortize the ~0.35us/grid-step overhead.  4096 rows
    # (2 x 4 MiB pf buffers + mask temps on boundary tiles) is safe on all of
    # v5e/v6e (128 MiB VMEM) and v7x (64 MiB); v5e/v6e can push to 8192.
    tp = min(tile_points, ((n + 7) // 8) * 8)        # 8-sublane aligned
    n_pad = ((n + tp - 1) // tp) * tp
    if n_pad != n:
        point_feature = jnp.pad(point_feature, ((0, n_pad - n), (0, 0)))

    f32, bf16 = jnp.float32, jnp.bfloat16

    # Weight matrices bf16 (halve HBM/DMA traffic, native bf16 MXU path in the
    # head); biases / folded-BN params stay f32.
    wv = params["wv"].astype(bf16)
    w1r, w1v = params["w1"][:256].astype(bf16), params["w1"][256:].astype(bf16)
    ws1r, ws1v = params["ws1"][:256].astype(bf16), params["ws1"][256:].astype(bf16)
    w2 = params["w2"].astype(bf16)
    ws2 = params["ws2"].astype(bf16)

    # Pad fc3 to 128 output lanes; slice back to num_class afterwards.
    ncols = max(128, ((num_class + 127) // 128) * 128)
    w3 = jnp.zeros((128, ncols), f32).at[:, :num_class].set(params["w3"]).astype(bf16)
    b3 = jnp.zeros((1, ncols), f32).at[:, :num_class].set(params["b3"])

    weights = [wv, params["bv"],
               w1r, w1v, params["b1"],
               ws1r, ws1v, params["bs1"],
               params["bn1_scale"], params["bn1_offset"],
               w2, params["b2"], ws2, params["bs2"],
               params["bn2_scale"], params["bn2_offset"],
               w3, b3]

    def resident(arr):
        # Full-extent block, same block index every step => DMA'd once, stays
        # resident in VMEM.
        # TODO(synk): pipeline_mode=pl.Buffered(1) would drop the second
        # (never-refilled) buffer copy of the ~1 MiB of weights on v7x.
        return pl.BlockSpec(arr.shape, lambda t, offs: (0, 0))

    kernel = functools.partial(_fused_kernel, num_batches=B, tile_rows=tp)

    out = pl.pallas_call(
        kernel,
        out_shape=jax.ShapeDtypeStruct((B, ncols), jnp.float32),
        grid_spec=pltpu.PrefetchScalarGridSpec(
            num_scalar_prefetch=1,
            grid=(n_pad // tp,),
            in_specs=[pl.BlockSpec((tp, f), lambda t, offs: (t, 0)),
                      resident(voxel_feature)]
                     + [resident(w) for w in weights],
            out_specs=pl.BlockSpec((B, ncols), lambda t, offs: (0, 0)),
            scratch_shapes=[pltpu.VMEM((B, f), jnp.float32)],
        ),
        compiler_params=pltpu.CompilerParams(
            dimension_semantics=("arbitrary",),
            vmem_limit_bytes=48 * 1024 * 1024),
    )(offsets, point_feature, voxel_feature, *weights)

    return out[:, :num_class]


# -----------------------------------------------------------------------------
# Parameter construction (deterministic, PyTorch-Linear-style init)
# -----------------------------------------------------------------------------
def init_params(key, num_class=4, eps=1e-5):
    def linear(k, fin, fout):
        kw, kb = jax.random.split(k)
        bound = 1.0 / jnp.sqrt(fin)
        w = jax.random.uniform(kw, (fin, fout), jnp.float32, -bound, bound)
        b = jax.random.uniform(kb, (1, fout), jnp.float32, -bound, bound)
        return w, b

    def batchnorm(k, c):
        k1, k2, k3, k4 = jax.random.split(k, 4)
        gamma = jax.random.uniform(k1, (c,), jnp.float32, 0.5, 1.5)
        beta = jax.random.uniform(k2, (c,), jnp.float32, -0.1, 0.1)
        mean = jax.random.uniform(k3, (c,), jnp.float32, -0.5, 0.5)
        var = jax.random.uniform(k4, (c,), jnp.float32, 0.5, 1.5)
        scale = gamma / jnp.sqrt(var + eps)
        offset = beta - mean * scale
        return scale.reshape(1, c), offset.reshape(1, c)

    ks = jax.random.split(key, 8)
    p = {}
    p["wv"], p["bv"] = linear(ks[0], 512, 256)        # voxel_fc1
    p["w1"], p["b1"] = linear(ks[1], 512, 256)        # fc1
    p["ws1"], p["bs1"] = linear(ks[2], 512, 256)      # shortcut1
    p["bn1_scale"], p["bn1_offset"] = batchnorm(ks[3], 256)
    p["w2"], p["b2"] = linear(ks[4], 256, 128)        # fc2
    p["ws2"], p["bs2"] = linear(ks[5], 256, 128)      # shortcut2
    p["bn2_scale"], p["bn2_offset"] = batchnorm(ks[6], 128)
    p["w3"], p["b3"] = linear(ks[7], 128, num_class)  # fc3
    return p


# -----------------------------------------------------------------------------
# Pure-JAX reference (mirrors the kernel's bf16-weight / bf16-activation
# matmul numerics with f32 accumulation)
# -----------------------------------------------------------------------------
def reference(params, point_feature, coords, voxel_feature, B):
    bf16, f32 = jnp.bfloat16, jnp.float32

    def mm(x, w):
        return jnp.dot(x.astype(bf16), w.astype(bf16),
                       preferred_element_type=f32)

    ids = coords[:, 0]
    rows = [jnp.max(jnp.where((ids == b)[:, None], point_feature, -jnp.inf),
                    axis=0) for b in range(B)]
    ret = jnp.stack(rows)
    ret = jnp.where(jnp.isneginf(ret), 0.0, ret)

    v256 = mm(voxel_feature, params["wv"]) + params["bv"][0]
    fc1 = mm(ret, params["w1"][:256]) + mm(v256, params["w1"][256:]) + params["b1"][0]
    sc1 = mm(ret, params["ws1"][:256]) + mm(v256, params["ws1"][256:]) + params["bs1"][0]
    fc1 = jax.nn.relu(fc1)
    res = fc1 * params["bn1_scale"][0] + params["bn1_offset"][0] + sc1
    fc2 = jax.nn.relu(mm(res, params["w2"]) + params["b2"][0])
    sc2 = mm(res, params["ws2"]) + params["bs2"][0]
    x = fc2 * params["bn2_scale"][0] + params["bn2_offset"][0] + sc2
    return mm(x, params["w3"]) + params["b3"][0]


if __name__ == "__main__":
    num_class = 4
    B = 4                 # batch_size (= coords[:, 0].max() + 1)
    N = 60                # total number of points, sorted by batch id
    key = jax.random.PRNGKey(0)
    k_pf, k_vox, k_par = jax.random.split(key, 3)

    point_feature = jax.random.normal(k_pf, (N, 256), dtype=jnp.float32)
    # coords[:, 0] is the (sorted) batch index of each point, 15 points/batch.
    batch_ids = jnp.repeat(jnp.arange(B, dtype=jnp.int32), N // B)
    coords = jnp.stack(
        [batch_ids,
         jnp.arange(N, dtype=jnp.int32) % 7,
         jnp.arange(N, dtype=jnp.int32) % 5,
         jnp.arange(N, dtype=jnp.int32) % 3], axis=1)                # [N, 4]
    voxel_feature = jax.random.normal(k_vox, (B, 512), dtype=jnp.float32)

    params = init_params(k_par, num_class=num_class)

    out = classification_v18_forward(params, point_feature, coords,
                                     voxel_feature, B, num_class)
    out = jax.block_until_ready(out)

    ref = reference(params, point_feature, coords, voxel_feature, B)
    assert out.shape == (B, num_class)
    assert jnp.allclose(out, ref, rtol=5e-3, atol=5e-3), (out, ref)

    print("KERNEL_OK")
</pallas_src>

<mosaic_0001>
module attributes {stable_mosaic.version = 11 : i64} {
  func.func @_fused_kernel(%arg0: i32, %arg1: memref<5xi32, #tpu.memory_space<smem>>, %arg2: memref<64x256xf32, #tpu.memory_space<vmem>>, %arg3: memref<4x512xf32, #tpu.memory_space<vmem>>, %arg4: memref<512x256xbf16, #tpu.memory_space<vmem>>, %arg5: memref<1x256xf32, #tpu.memory_space<vmem>>, %arg6: memref<256x256xbf16, #tpu.memory_space<vmem>>, %arg7: memref<256x256xbf16, #tpu.memory_space<vmem>>, %arg8: memref<1x256xf32, #tpu.memory_space<vmem>>, %arg9: memref<256x256xbf16, #tpu.memory_space<vmem>>, %arg10: memref<256x256xbf16, #tpu.memory_space<vmem>>, %arg11: memref<1x256xf32, #tpu.memory_space<vmem>>, %arg12: memref<1x256xf32, #tpu.memory_space<vmem>>, %arg13: memref<1x256xf32, #tpu.memory_space<vmem>>, %arg14: memref<256x128xbf16, #tpu.memory_space<vmem>>, %arg15: memref<1x128xf32, #tpu.memory_space<vmem>>, %arg16: memref<256x128xbf16, #tpu.memory_space<vmem>>, %arg17: memref<1x128xf32, #tpu.memory_space<vmem>>, %arg18: memref<1x128xf32, #tpu.memory_space<vmem>>, %arg19: memref<1x128xf32, #tpu.memory_space<vmem>>, %arg20: memref<128x128xbf16, #tpu.memory_space<vmem>>, %arg21: memref<1x128xf32, #tpu.memory_space<vmem>>, %arg22: memref<4x128xf32, #tpu.memory_space<vmem>>, %arg23: memref<4x256xf32, #tpu.memory_space<vmem>>) attributes {dimension_semantics = [#tpu.dimension_semantics<arbitrary>], iteration_bounds = array<i64: 1>, scalar_prefetch = 1 : i64, scratch_operands = 1 : i64, tpu.core_type = #tpu.core_type<tc>, window_params = [{transform_indices = @transform_0, window_bounds = array<i64: 64, 256>}, {pipeline_mode = #tpu.pipeline_mode<synchronous>, transform_indices = @transform_1, window_bounds = array<i64: 4, 512>}, {pipeline_mode = #tpu.pipeline_mode<synchronous>, transform_indices = @transform_2, window_bounds = array<i64: 512, 256>}, {pipeline_mode = #tpu.pipeline_mode<synchronous>, transform_indices = @transform_3, window_bounds = array<i64: 1, 256>}, {pipeline_mode = #tpu.pipeline_mode<synchronous>, transform_indices = @transform_4, window_bounds = array<i64: 256, 256>}, {pipeline_mode = #tpu.pipeline_mode<synchronous>, transform_indices = @transform_5, window_bounds = array<i64: 256, 256>}, {pipeline_mode = #tpu.pipeline_mode<synchronous>, transform_indices = @transform_6, window_bounds = array<i64: 1, 256>}, {pipeline_mode = #tpu.pipeline_mode<synchronous>, transform_indices = @transform_7, window_bounds = array<i64: 256, 256>}, {pipeline_mode = #tpu.pipeline_mode<synchronous>, transform_indices = @transform_8, window_bounds = array<i64: 256, 256>}, {pipeline_mode = #tpu.pipeline_mode<synchronous>, transform_indices = @transform_9, window_bounds = array<i64: 1, 256>}, {pipeline_mode = #tpu.pipeline_mode<synchronous>, transform_indices = @transform_10, window_bounds = array<i64: 1, 256>}, {pipeline_mode = #tpu.pipeline_mode<synchronous>, transform_indices = @transform_11, window_bounds = array<i64: 1, 256>}, {pipeline_mode = #tpu.pipeline_mode<synchronous>, transform_indices = @transform_12, window_bounds = array<i64: 256, 128>}, {pipeline_mode = #tpu.pipeline_mode<synchronous>, transform_indices = @transform_13, window_bounds = array<i64: 1, 128>}, {pipeline_mode = #tpu.pipeline_mode<synchronous>, transform_indices = @transform_14, window_bounds = array<i64: 256, 128>}, {pipeline_mode = #tpu.pipeline_mode<synchronous>, transform_indices = @transform_15, window_bounds = array<i64: 1, 128>}, {pipeline_mode = #tpu.pipeline_mode<synchronous>, transform_indices = @transform_16, window_bounds = array<i64: 1, 128>}, {pipeline_mode = #tpu.pipeline_mode<synchronous>, transform_indices = @transform_17, window_bounds = array<i64: 1, 128>}, {pipeline_mode = #tpu.pipeline_mode<synchronous>, transform_indices = @transform_18, window_bounds = array<i64: 128, 128>}, {pipeline_mode = #tpu.pipeline_mode<synchronous>, transform_indices = @transform_19, window_bounds = array<i64: 1, 128>}, {pipeline_mode = #tpu.pipeline_mode<synchronous>, transform_indices = @transform_20, window_bounds = array<i64: 4, 128>}]} {
    %c0_i32 = arith.constant 0 : i32
    %0 = arith.cmpi eq, %arg0, %c0_i32 : i32
    %1 = arith.extui %0 : i1 to i32
    %c0_i32_0 = arith.constant 0 : i32
    %2 = arith.cmpi ne, %1, %c0_i32_0 : i32
    scf.if %2 {
      %cst = arith.constant 0xFF800000 : f32
      %68 = vector.broadcast %cst : f32 to vector<4x256xf32>
      %c0_18 = arith.constant 0 : index
      %c0_19 = arith.constant 0 : index
      %69 = vector.load %arg23[%c0_18, %c0_19] : memref<4x256xf32, #tpu.memory_space<vmem>>, vector<4x256xf32>
      tpu.vector_store %arg23[%c0_18, %c0_19], %68 {strides = array<i32>} : memref<4x256xf32, #tpu.memory_space<vmem>>, vector<4x256xf32>,
      %cst_20 = arith.constant 0.000000e+00 : f32
      %70 = vector.broadcast %cst_20 : f32 to vector<4x128xf32>
      %c0_21 = arith.constant 0 : index
      %c0_22 = arith.constant 0 : index
      %71 = vector.load %arg22[%c0_21, %c0_22] : memref<4x128xf32, #tpu.memory_space<vmem>>, vector<4x128xf32>
      tpu.vector_store %arg22[%c0_21, %c0_22], %70 {strides = array<i32>} : memref<4x128xf32, #tpu.memory_space<vmem>>, vector<4x128xf32>,
    } else {
    }
    %c64_i32 = arith.constant 64 : i32
    %3 = arith.muli %arg0, %c64_i32 : i32
    %c64_i32_1 = arith.constant 64 : i32
    %4 = arith.addi %3, %c64_i32_1 : i32
    %c0 = arith.constant 0 : index
    %5 = memref.load %arg1[%c0] : memref<5xi32, #tpu.memory_space<smem>>
    %c1 = arith.constant 1 : index
    %6 = memref.load %arg1[%c1] : memref<5xi32, #tpu.memory_space<smem>>
    %7 = arith.cmpi slt, %5, %4 : i32
    %8 = arith.cmpi sgt, %6, %3 : i32
    %9 = arith.andi %7, %8 : i1
    %10 = arith.cmpi sle, %5, %3 : i32
    %11 = arith.cmpi sge, %6, %4 : i32
    %12 = arith.andi %10, %11 : i1
    %13 = arith.andi %9, %12 : i1
    %14 = arith.extui %13 : i1 to i32
    %c0_i32_2 = arith.constant 0 : i32
    %15 = arith.cmpi ne, %14, %c0_i32_2 : i32
    scf.if %15 {
      %c0_18 = arith.constant 0 : index
      %c0_19 = arith.constant 0 : index
      %68 = vector.load %arg2[%c0_18, %c0_19] : memref<64x256xf32, #tpu.memory_space<vmem>>, vector<64x256xf32>
      %cst = arith.constant dense<0xFF800000> : vector<256xf32>
      %69 = vector.multi_reduction <maximumf>, %68, %cst [0] : vector<64x256xf32> to vector<256xf32>
      %70 = vector.shape_cast %69 : vector<256xf32> to vector<1x256xf32>
      %c0_20 = arith.constant 0 : index
      %c0_21 = arith.constant 0 : index
      %71 = vector.load %arg23[%c0_20, %c0_21] : memref<4x256xf32, #tpu.memory_space<vmem>>, vector<1x256xf32>
      %72 = arith.maximumf %71, %70 : vector<1x256xf32>
      %c0_22 = arith.constant 0 : index
      %c0_23 = arith.constant 0 : index
      %73 = vector.load %arg23[%c0_22, %c0_23] : memref<4x256xf32, #tpu.memory_space<vmem>>, vector<1x256xf32>
      tpu.vector_store %arg23[%c0_22, %c0_23], %72 {strides = array<i32>} : memref<4x256xf32, #tpu.memory_space<vmem>>, vector<1x256xf32>,
    } else {
    }
    %true = arith.constant true
    %16 = arith.xori %12, %true : i1
    %17 = arith.andi %9, %16 : i1
    %18 = arith.extui %17 : i1 to i32
    %c0_i32_3 = arith.constant 0 : i32
    %19 = arith.cmpi ne, %18, %c0_i32_3 : i32
    scf.if %19 {
      %68 = tpu.iota {dimensions = array<i32: 0>} : vector<64x256xi32>
      %69 = vector.broadcast %3 : i32 to vector<64x256xi32>
      %70 = arith.addi %68, %69 : vector<64x256xi32>
      %71 = vector.broadcast %5 : i32 to vector<64x256xi32>
      %72 = arith.cmpi sge, %70, %71 : vector<64x256xi32>
      %73 = vector.broadcast %6 : i32 to vector<64x256xi32>
      %74 = arith.cmpi slt, %70, %73 : vector<64x256xi32>
      %75 = arith.andi %72, %74 : vector<64x256xi1>
      %c0_18 = arith.constant 0 : index
      %c0_19 = arith.constant 0 : index
      %76 = vector.load %arg2[%c0_18, %c0_19] : memref<64x256xf32, #tpu.memory_space<vmem>>, vector<64x256xf32>
      %cst = arith.constant 0xFF800000 : f32
      %77 = vector.broadcast %cst : f32 to vector<64x256xf32>
      %78 = arith.select %75, %76, %77 : vector<64x256xi1>, vector<64x256xf32>
      %cst_20 = arith.constant dense<0xFF800000> : vector<256xf32>
      %79 = vector.multi_reduction <maximumf>, %78, %cst_20 [0] : vector<64x256xf32> to vector<256xf32>
      %80 = vector.shape_cast %79 : vector<256xf32> to vector<1x256xf32>
      %c0_21 = arith.constant 0 : index
      %c0_22 = arith.constant 0 : index
      %81 = vector.load %arg23[%c0_21, %c0_22] : memref<4x256xf32, #tpu.memory_space<vmem>>, vector<1x256xf32>
      %82 = arith.maximumf %81, %80 : vector<1x256xf32>
      %c0_23 = arith.constant 0 : index
      %c0_24 = arith.constant 0 : index
      %83 = vector.load %arg23[%c0_23, %c0_24] : memref<4x256xf32, #tpu.memory_space<vmem>>, vector<1x256xf32>
      tpu.vector_store %arg23[%c0_23, %c0_24], %82 {strides = array<i32>} : memref<4x256xf32, #tpu.memory_space<vmem>>, vector<1x256xf32>,
    } else {
    }
    %c1_4 = arith.constant 1 : index
    %20 = memref.load %arg1[%c1_4] : memref<5xi32, #tpu.memory_space<smem>>
    %c2 = arith.constant 2 : index
    %21 = memref.load %arg1[%c2] : memref<5xi32, #tpu.memory_space<smem>>
    %22 = arith.cmpi slt, %20, %4 : i32
    %23 = arith.cmpi sgt, %21, %3 : i32
    %24 = arith.andi %22, %23 : i1
    %25 = arith.cmpi sle, %20, %3 : i32
    %26 = arith.cmpi sge, %21, %4 : i32
    %27 = arith.andi %25, %26 : i1
    %28 = arith.andi %24, %27 : i1
    %29 = arith.extui %28 : i1 to i32
    %c0_i32_5 = arith.constant 0 : i32
    %30 = arith.cmpi ne, %29, %c0_i32_5 : i32
    scf.if %30 {
      %c0_18 = arith.constant 0 : index
      %c0_19 = arith.constant 0 : index
      %68 = vector.load %arg2[%c0_18, %c0_19] : memref<64x256xf32, #tpu.memory_space<vmem>>, vector<64x256xf32>
      %cst = arith.constant dense<0xFF800000> : vector<256xf32>
      %69 = vector.multi_reduction <maximumf>, %68, %cst [0] : vector<64x256xf32> to vector<256xf32>
      %70 = vector.shape_cast %69 : vector<256xf32> to vector<1x256xf32>
      %c1_20 = arith.constant 1 : index
      %c0_21 = arith.constant 0 : index
      %71 = vector.load %arg23[%c1_20, %c0_21] : memref<4x256xf32, #tpu.memory_space<vmem>>, vector<1x256xf32>
      %72 = arith.maximumf %71, %70 : vector<1x256xf32>
      %c1_22 = arith.constant 1 : index
      %c0_23 = arith.constant 0 : index
      %73 = vector.load %arg23[%c1_22, %c0_23] : memref<4x256xf32, #tpu.memory_space<vmem>>, vector<1x256xf32>
      tpu.vector_store %arg23[%c1_22, %c0_23], %72 {strides = array<i32>} : memref<4x256xf32, #tpu.memory_space<vmem>>, vector<1x256xf32>,
    } else {
    }
    %true_6 = arith.constant true
    %31 = arith.xori %27, %true_6 : i1
    %32 = arith.andi %24, %31 : i1
    %33 = arith.extui %32 : i1 to i32
    %c0_i32_7 = arith.constant 0 : i32
    %34 = arith.cmpi ne, %33, %c0_i32_7 : i32
    scf.if %34 {
      %68 = tpu.iota {dimensions = array<i32: 0>} : vector<64x256xi32>
      %69 = vector.broadcast %3 : i32 to vector<64x256xi32>
      %70 = arith.addi %68, %69 : vector<64x256xi32>
      %71 = vector.broadcast %20 : i32 to vector<64x256xi32>
      %72 = arith.cmpi sge, %70, %71 : vector<64x256xi32>
      %73 = vector.broadcast %21 : i32 to vector<64x256xi32>
      %74 = arith.cmpi slt, %70, %73 : vector<64x256xi32>
      %75 = arith.andi %72, %74 : vector<64x256xi1>
      %c0_18 = arith.constant 0 : index
      %c0_19 = arith.constant 0 : index
      %76 = vector.load %arg2[%c0_18, %c0_19] : memref<64x256xf32, #tpu.memory_space<vmem>>, vector<64x256xf32>
      %cst = arith.constant 0xFF800000 : f32
      %77 = vector.broadcast %cst : f32 to vector<64x256xf32>
      %78 = arith.select %75, %76, %77 : vector<64x256xi1>, vector<64x256xf32>
      %cst_20 = arith.constant dense<0xFF800000> : vector<256xf32>
      %79 = vector.multi_reduction <maximumf>, %78, %cst_20 [0] : vector<64x256xf32> to vector<256xf32>
      %80 = vector.shape_cast %79 : vector<256xf32> to vector<1x256xf32>
      %c1_21 = arith.constant 1 : index
      %c0_22 = arith.constant 0 : index
      %81 = vector.load %arg23[%c1_21, %c0_22] : memref<4x256xf32, #tpu.memory_space<vmem>>, vector<1x256xf32>
      %82 = arith.maximumf %81, %80 : vector<1x256xf32>
      %c1_23 = arith.constant 1 : index
      %c0_24 = arith.constant 0 : index
      %83 = vector.load %arg23[%c1_23, %c0_24] : memref<4x256xf32, #tpu.memory_space<vmem>>, vector<1x256xf32>
      tpu.vector_store %arg23[%c1_23, %c0_24], %82 {strides = array<i32>} : memref<4x256xf32, #tpu.memory_space<vmem>>, vector<1x256xf32>,
    } else {
    }
    %c2_8 = arith.constant 2 : index
    %35 = memref.load %arg1[%c2_8] : memref<5xi32, #tpu.memory_space<smem>>
    %c3 = arith.constant 3 : index
    %36 = memref.load %arg1[%c3] : memref<5xi32, #tpu.memory_space<smem>>
    %37 = arith.cmpi slt, %35, %4 : i32
    %38 = arith.cmpi sgt, %36, %3 : i32
    %39 = arith.andi %37, %38 : i1
    %40 = arith.cmpi sle, %35, %3 : i32
    %41 = arith.cmpi sge, %36, %4 : i32
    %42 = arith.andi %40, %41 : i1
    %43 = arith.andi %39, %42 : i1
    %44 = arith.extui %43 : i1 to i32
    %c0_i32_9 = arith.constant 0 : i32
    %45 = arith.cmpi ne, %44, %c0_i32_9 : i32
    scf.if %45 {
      %c0_18 = arith.constant 0 : index
      %c0_19 = arith.constant 0 : index
      %68 = vector.load %arg2[%c0_18, %c0_19] : memref<64x256xf32, #tpu.memory_space<vmem>>, vector<64x256xf32>
      %cst = arith.constant dense<0xFF800000> : vector<256xf32>
      %69 = vector.multi_reduction <maximumf>, %68, %cst [0] : vector<64x256xf32> to vector<256xf32>
      %70 = vector.shape_cast %69 : vector<256xf32> to vector<1x256xf32>
      %c2_20 = arith.constant 2 : index
      %c0_21 = arith.constant 0 : index
      %71 = vector.load %arg23[%c2_20, %c0_21] : memref<4x256xf32, #tpu.memory_space<vmem>>, vector<1x256xf32>
      %72 = arith.maximumf %71, %70 : vector<1x256xf32>
      %c2_22 = arith.constant 2 : index
      %c0_23 = arith.constant 0 : index
      %73 = vector.load %arg23[%c2_22, %c0_23] : memref<4x256xf32, #tpu.memory_space<vmem>>, vector<1x256xf32>
      tpu.vector_store %arg23[%c2_22, %c0_23], %72 {strides = array<i32>} : memref<4x256xf32, #tpu.memory_space<vmem>>, vector<1x256xf32>,
    } else {
    }
    %true_10 = arith.constant true
    %46 = arith.xori %42, %true_10 : i1
    %47 = arith.andi %39, %46 : i1
    %48 = arith.extui %47 : i1 to i32
    %c0_i32_11 = arith.constant 0 : i32
    %49 = arith.cmpi ne, %48, %c0_i32_11 : i32
    scf.if %49 {
      %68 = tpu.iota {dimensions = array<i32: 0>} : vector<64x256xi32>
      %69 = vector.broadcast %3 : i32 to vector<64x256xi32>
      %70 = arith.addi %68, %69 : vector<64x256xi32>
      %71 = vector.broadcast %35 : i32 to vector<64x256xi32>
      %72 = arith.cmpi sge, %70, %71 : vector<64x256xi32>
      %73 = vector.broadcast %36 : i32 to vector<64x256xi32>
      %74 = arith.cmpi slt, %70, %73 : vector<64x256xi32>
      %75 = arith.andi %72, %74 : vector<64x256xi1>
      %c0_18 = arith.constant 0 : index
      %c0_19 = arith.constant 0 : index
      %76 = vector.load %arg2[%c0_18, %c0_19] : memref<64x256xf32, #tpu.memory_space<vmem>>, vector<64x256xf32>
      %cst = arith.constant 0xFF800000 : f32
      %77 = vector.broadcast %cst : f32 to vector<64x256xf32>
      %78 = arith.select %75, %76, %77 : vector<64x256xi1>, vector<64x256xf32>
      %cst_20 = arith.constant dense<0xFF800000> : vector<256xf32>
      %79 = vector.multi_reduction <maximumf>, %78, %cst_20 [0] : vector<64x256xf32> to vector<256xf32>
      %80 = vector.shape_cast %79 : vector<256xf32> to vector<1x256xf32>
      %c2_21 = arith.constant 2 : index
      %c0_22 = arith.constant 0 : index
      %81 = vector.load %arg23[%c2_21, %c0_22] : memref<4x256xf32, #tpu.memory_space<vmem>>, vector<1x256xf32>
      %82 = arith.maximumf %81, %80 : vector<1x256xf32>
      %c2_23 = arith.constant 2 : index
      %c0_24 = arith.constant 0 : index
      %83 = vector.load %arg23[%c2_23, %c0_24] : memref<4x256xf32, #tpu.memory_space<vmem>>, vector<1x256xf32>
      tpu.vector_store %arg23[%c2_23, %c0_24], %82 {strides = array<i32>} : memref<4x256xf32, #tpu.memory_space<vmem>>, vector<1x256xf32>,
    } else {
    }
    %c3_12 = arith.constant 3 : index
    %50 = memref.load %arg1[%c3_12] : memref<5xi32, #tpu.memory_space<smem>>
    %c4 = arith.constant 4 : index
    %51 = memref.load %arg1[%c4] : memref<5xi32, #tpu.memory_space<smem>>
    %52 = arith.cmpi slt, %50, %4 : i32
    %53 = arith.cmpi sgt, %51, %3 : i32
    %54 = arith.andi %52, %53 : i1
    %55 = arith.cmpi sle, %50, %3 : i32
    %56 = arith.cmpi sge, %51, %4 : i32
    %57 = arith.andi %55, %56 : i1
    %58 = arith.andi %54, %57 : i1
    %59 = arith.extui %58 : i1 to i32
    %c0_i32_13 = arith.constant 0 : i32
    %60 = arith.cmpi ne, %59, %c0_i32_13 : i32
    scf.if %60 {
      %c0_18 = arith.constant 0 : index
      %c0_19 = arith.constant 0 : index
      %68 = vector.load %arg2[%c0_18, %c0_19] : memref<64x256xf32, #tpu.memory_space<vmem>>, vector<64x256xf32>
      %cst = arith.constant dense<0xFF800000> : vector<256xf32>
      %69 = vector.multi_reduction <maximumf>, %68, %cst [0] : vector<64x256xf32> to vector<256xf32>
      %70 = vector.shape_cast %69 : vector<256xf32> to vector<1x256xf32>
      %c3_20 = arith.constant 3 : index
      %c0_21 = arith.constant 0 : index
      %71 = vector.load %arg23[%c3_20, %c0_21] : memref<4x256xf32, #tpu.memory_space<vmem>>, vector<1x256xf32>
      %72 = arith.maximumf %71, %70 : vector<1x256xf32>
      %c3_22 = arith.constant 3 : index
      %c0_23 = arith.constant 0 : index
      %73 = vector.load %arg23[%c3_22, %c0_23] : memref<4x256xf32, #tpu.memory_space<vmem>>, vector<1x256xf32>
      tpu.vector_store %arg23[%c3_22, %c0_23], %72 {strides = array<i32>} : memref<4x256xf32, #tpu.memory_space<vmem>>, vector<1x256xf32>,
    } else {
    }
    %true_14 = arith.constant true
    %61 = arith.xori %57, %true_14 : i1
    %62 = arith.andi %54, %61 : i1
    %63 = arith.extui %62 : i1 to i32
    %c0_i32_15 = arith.constant 0 : i32
    %64 = arith.cmpi ne, %63, %c0_i32_15 : i32
    scf.if %64 {
      %68 = tpu.iota {dimensions = array<i32: 0>} : vector<64x256xi32>
      %69 = vector.broadcast %3 : i32 to vector<64x256xi32>
      %70 = arith.addi %68, %69 : vector<64x256xi32>
      %71 = vector.broadcast %50 : i32 to vector<64x256xi32>
      %72 = arith.cmpi sge, %70, %71 : vector<64x256xi32>
      %73 = vector.broadcast %51 : i32 to vector<64x256xi32>
      %74 = arith.cmpi slt, %70, %73 : vector<64x256xi32>
      %75 = arith.andi %72, %74 : vector<64x256xi1>
      %c0_18 = arith.constant 0 : index
      %c0_19 = arith.constant 0 : index
      %76 = vector.load %arg2[%c0_18, %c0_19] : memref<64x256xf32, #tpu.memory_space<vmem>>, vector<64x256xf32>
      %cst = arith.constant 0xFF800000 : f32
      %77 = vector.broadcast %cst : f32 to vector<64x256xf32>
      %78 = arith.select %75, %76, %77 : vector<64x256xi1>, vector<64x256xf32>
      %cst_20 = arith.constant dense<0xFF800000> : vector<256xf32>
      %79 = vector.multi_reduction <maximumf>, %78, %cst_20 [0] : vector<64x256xf32> to vector<256xf32>
      %80 = vector.shape_cast %79 : vector<256xf32> to vector<1x256xf32>
      %c3_21 = arith.constant 3 : index
      %c0_22 = arith.constant 0 : index
      %81 = vector.load %arg23[%c3_21, %c0_22] : memref<4x256xf32, #tpu.memory_space<vmem>>, vector<1x256xf32>
      %82 = arith.maximumf %81, %80 : vector<1x256xf32>
      %c3_23 = arith.constant 3 : index
      %c0_24 = arith.constant 0 : index
      %83 = vector.load %arg23[%c3_23, %c0_24] : memref<4x256xf32, #tpu.memory_space<vmem>>, vector<1x256xf32>
      tpu.vector_store %arg23[%c3_23, %c0_24], %82 {strides = array<i32>} : memref<4x256xf32, #tpu.memory_space<vmem>>, vector<1x256xf32>,
    } else {
    }
    %c0_i32_16 = arith.constant 0 : i32
    %65 = arith.cmpi eq, %arg0, %c0_i32_16 : i32
    %66 = arith.extui %65 : i1 to i32
    %c0_i32_17 = arith.constant 0 : i32
    %67 = arith.cmpi ne, %66, %c0_i32_17 : i32
    scf.if %67 {
      %c0_18 = arith.constant 0 : index
      %c0_19 = arith.constant 0 : index
      %68 = vector.load %arg23[%c0_18, %c0_19] : memref<4x256xf32, #tpu.memory_space<vmem>>, vector<4x256xf32>
      %cst = arith.constant 0xFF800000 : f32
      %69 = vector.broadcast %cst : f32 to vector<4x256xf32>
      %70 = arith.cmpf oeq, %68, %69 : vector<4x256xf32>
      %cst_20 = arith.constant 0.000000e+00 : f32
      %71 = vector.broadcast %cst_20 : f32 to vector<4x256xf32>
      %72 = arith.select %70, %71, %68 : vector<4x256xi1>, vector<4x256xf32>
      %c0_21 = arith.constant 0 : index
      %c0_22 = arith.constant 0 : index
      %73 = vector.load %arg3[%c0_21, %c0_22] : memref<4x512xf32, #tpu.memory_space<vmem>>, vector<4x512xf32>
      %74 = arith.truncf %73 : vector<4x512xf32> to vector<4x512xbf16>
      %c0_23 = arith.constant 0 : index
      %c0_24 = arith.constant 0 : index
      %75 = vector.load %arg4[%c0_23, %c0_24] : memref<512x256xbf16, #tpu.memory_space<vmem>>, vector<512x256xbf16>
      %cst_25 = arith.constant dense<0.000000e+00> : vector<4x256xf32>
      %76 = tpu.matmul %74, %75, %cst_25 {dimension_numbers = #tpu.dot_dimension_numbers<[1], [0], [0], [1], [0, 0, 1, 1], [], []>} : vector<4x512xbf16>, vector<512x256xbf16>, vector<4x256xf32> -> vector<4x256xf32>
      %c0_26 = arith.constant 0 : index
      %c0_27 = arith.constant 0 : index
      %77 = vector.load %arg5[%c0_26, %c0_27] : memref<1x256xf32, #tpu.memory_space<vmem>>, vector<1x256xf32>
      %78 = vector.broadcast %77 : vector<1x256xf32> to vector<4x256xf32>
      %79 = arith.addf %76, %78 : vector<4x256xf32>
      %80 = arith.truncf %72 : vector<4x256xf32> to vector<4x256xbf16>
      %c0_28 = arith.constant 0 : index
      %c0_29 = arith.constant 0 : index
      %81 = vector.load %arg6[%c0_28, %c0_29] : memref<256x256xbf16, #tpu.memory_space<vmem>>, vector<256x256xbf16>
      %cst_30 = arith.constant dense<0.000000e+00> : vector<4x256xf32>
      %82 = tpu.matmul %80, %81, %cst_30 {dimension_numbers = #tpu.dot_dimension_numbers<[1], [0], [0], [1], [0, 0, 1, 1], [], []>} : vector<4x256xbf16>, vector<256x256xbf16>, vector<4x256xf32> -> vector<4x256xf32>
      %83 = arith.truncf %79 : vector<4x256xf32> to vector<4x256xbf16>
      %c0_31 = arith.constant 0 : index
      %c0_32 = arith.constant 0 : index
      %84 = vector.load %arg7[%c0_31, %c0_32] : memref<256x256xbf16, #tpu.memory_space<vmem>>, vector<256x256xbf16>
      %cst_33 = arith.constant dense<0.000000e+00> : vector<4x256xf32>
      %85 = tpu.matmul %83, %84, %cst_33 {dimension_numbers = #tpu.dot_dimension_numbers<[1], [0], [0], [1], [0, 0, 1, 1], [], []>} : vector<4x256xbf16>, vector<256x256xbf16>, vector<4x256xf32> -> vector<4x256xf32>
      %86 = arith.addf %82, %85 : vector<4x256xf32>
      %c0_34 = arith.constant 0 : index
      %c0_35 = arith.constant 0 : index
      %87 = vector.load %arg8[%c0_34, %c0_35] : memref<1x256xf32, #tpu.memory_space<vmem>>, vector<1x256xf32>
      %88 = vector.broadcast %87 : vector<1x256xf32> to vector<4x256xf32>
      %89 = arith.addf %86, %88 : vector<4x256xf32>
      %90 = arith.truncf %72 : vector<4x256xf32> to vector<4x256xbf16>
      %c0_36 = arith.constant 0 : index
      %c0_37 = arith.constant 0 : index
      %91 = vector.load %arg9[%c0_36, %c0_37] : memref<256x256xbf16, #tpu.memory_space<vmem>>, vector<256x256xbf16>
      %cst_38 = arith.constant dense<0.000000e+00> : vector<4x256xf32>
      %92 = tpu.matmul %90, %91, %cst_38 {dimension_numbers = #tpu.dot_dimension_numbers<[1], [0], [0], [1], [0, 0, 1, 1], [], []>} : vector<4x256xbf16>, vector<256x256xbf16>, vector<4x256xf32> -> vector<4x256xf32>
      %93 = arith.truncf %79 : vector<4x256xf32> to vector<4x256xbf16>
      %c0_39 = arith.constant 0 : index
      %c0_40 = arith.constant 0 : index
      %94 = vector.load %arg10[%c0_39, %c0_40] : memref<256x256xbf16, #tpu.memory_space<vmem>>, vector<256x256xbf16>
      %cst_41 = arith.constant dense<0.000000e+00> : vector<4x256xf32>
      %95 = tpu.matmul %93, %94, %cst_41 {dimension_numbers = #tpu.dot_dimension_numbers<[1], [0], [0], [1], [0, 0, 1, 1], [], []>} : vector<4x256xbf16>, vector<256x256xbf16>, vector<4x256xf32> -> vector<4x256xf32>
      %96 = arith.addf %92, %95 : vector<4x256xf32>
      %c0_42 = arith.constant 0 : index
      %c0_43 = arith.constant 0 : index
      %97 = vector.load %arg11[%c0_42, %c0_43] : memref<1x256xf32, #tpu.memory_space<vmem>>, vector<1x256xf32>
      %98 = vector.broadcast %97 : vector<1x256xf32> to vector<4x256xf32>
      %99 = arith.addf %96, %98 : vector<4x256xf32>
      %cst_44 = arith.constant 0.000000e+00 : f32
      %100 = vector.broadcast %cst_44 : f32 to vector<4x256xf32>
      %101 = arith.maximumf %89, %100 : vector<4x256xf32>
      %c0_45 = arith.constant 0 : index
      %c0_46 = arith.constant 0 : index
      %102 = vector.load %arg12[%c0_45, %c0_46] : memref<1x256xf32, #tpu.memory_space<vmem>>, vector<1x256xf32>
      %103 = vector.broadcast %102 : vector<1x256xf32> to vector<4x256xf32>
      %104 = arith.mulf %101, %103 : vector<4x256xf32>
      %c0_47 = arith.constant 0 : index
      %c0_48 = arith.constant 0 : index
      %105 = vector.load %arg13[%c0_47, %c0_48] : memref<1x256xf32, #tpu.memory_space<vmem>>, vector<1x256xf32>
      %106 = vector.broadcast %105 : vector<1x256xf32> to vector<4x256xf32>
      %107 = arith.addf %104, %106 : vector<4x256xf32>
      %108 = arith.addf %107, %99 : vector<4x256xf32>
      %109 = arith.truncf %108 : vector<4x256xf32> to vector<4x256xbf16>
      %c0_49 = arith.constant 0 : index
      %c0_50 = arith.constant 0 : index
      %110 = vector.load %arg14[%c0_49, %c0_50] : memref<256x128xbf16, #tpu.memory_space<vmem>>, vector<256x128xbf16>
      %cst_51 = arith.constant dense<0.000000e+00> : vector<4x128xf32>
      %111 = tpu.matmul %109, %110, %cst_51 {dimension_numbers = #tpu.dot_dimension_numbers<[1], [0], [0], [1], [0, 0, 1, 1], [], []>} : vector<4x256xbf16>, vector<256x128xbf16>, vector<4x128xf32> -> vector<4x128xf32>
      %c0_52 = arith.constant 0 : index
      %c0_53 = arith.constant 0 : index
      %112 = vector.load %arg15[%c0_52, %c0_53] : memref<1x128xf32, #tpu.memory_space<vmem>>, vector<1x128xf32>
      %113 = vector.broadcast %112 : vector<1x128xf32> to vector<4x128xf32>
      %114 = arith.addf %111, %113 : vector<4x128xf32>
      %cst_54 = arith.constant 0.000000e+00 : f32
      %115 = vector.broadcast %cst_54 : f32 to vector<4x128xf32>
      %116 = arith.maximumf %114, %115 : vector<4x128xf32>
      %117 = arith.truncf %108 : vector<4x256xf32> to vector<4x256xbf16>
      %c0_55 = arith.constant 0 : index
      %c0_56 = arith.constant 0 : index
      %118 = vector.load %arg16[%c0_55, %c0_56] : memref<256x128xbf16, #tpu.memory_space<vmem>>, vector<256x128xbf16>
      %cst_57 = arith.constant dense<0.000000e+00> : vector<4x128xf32>
      %119 = tpu.matmul %117, %118, %cst_57 {dimension_numbers = #tpu.dot_dimension_numbers<[1], [0], [0], [1], [0, 0, 1, 1], [], []>} : vector<4x256xbf16>, vector<256x128xbf16>, vector<4x128xf32> -> vector<4x128xf32>
      %c0_58 = arith.constant 0 : index
      %c0_59 = arith.constant 0 : index
      %120 = vector.load %arg17[%c0_58, %c0_59] : memref<1x128xf32, #tpu.memory_space<vmem>>, vector<1x128xf32>
      %121 = vector.broadcast %120 : vector<1x128xf32> to vector<4x128xf32>
      %122 = arith.addf %119, %121 : vector<4x128xf32>
      %c0_60 = arith.constant 0 : index
      %c0_61 = arith.constant 0 : index
      %123 = vector.load %arg18[%c0_60, %c0_61] : memref<1x128xf32, #tpu.memory_space<vmem>>, vector<1x128xf32>
      %124 = vector.broadcast %123 : vector<1x128xf32> to vector<4x128xf32>
      %125 = arith.mulf %116, %124 : vector<4x128xf32>
      %c0_62 = arith.constant 0 : index
      %c0_63 = arith.constant 0 : index
      %126 = vector.load %arg19[%c0_62, %c0_63] : memref<1x128xf32, #tpu.memory_space<vmem>>, vector<1x128xf32>
      %127 = vector.broadcast %126 : vector<1x128xf32> to vector<4x128xf32>
      %128 = arith.addf %125, %127 : vector<4x128xf32>
      %129 = arith.addf %128, %122 : vector<4x128xf32>
      %130 = arith.truncf %129 : vector<4x128xf32> to vector<4x128xbf16>
      %c0_64 = arith.constant 0 : index
      %c0_65 = arith.constant 0 : index
      %131 = vector.load %arg20[%c0_64, %c0_65] : memref<128x128xbf16, #tpu.memory_space<vmem>>, vector<128x128xbf16>
      %cst_66 = arith.constant dense<0.000000e+00> : vector<4x128xf32>
      %132 = tpu.matmul %130, %131, %cst_66 {dimension_numbers = #tpu.dot_dimension_numbers<[1], [0], [0], [1], [0, 0, 1, 1], [], []>} : vector<4x128xbf16>, vector<128x128xbf16>, vector<4x128xf32> -> vector<4x128xf32>
      %c0_67 = arith.constant 0 : index
      %c0_68 = arith.constant 0 : index
      %133 = vector.load %arg21[%c0_67, %c0_68] : memref<1x128xf32, #tpu.memory_space<vmem>>, vector<1x128xf32>
      %134 = vector.broadcast %133 : vector<1x128xf32> to vector<4x128xf32>
      %135 = arith.addf %132, %134 : vector<4x128xf32>
      %c0_69 = arith.constant 0 : index
      %c0_70 = arith.constant 0 : index
      %136 = vector.load %arg22[%c0_69, %c0_70] : memref<4x128xf32, #tpu.memory_space<vmem>>, vector<4x128xf32>
      tpu.vector_store %arg22[%c0_69, %c0_70], %135 {strides = array<i32>} : memref<4x128xf32, #tpu.memory_space<vmem>>, vector<4x128xf32>,
    } else {
    }
    return
  }
  func.func @transform_0(%arg0: i32, %arg1: memref<5xi32, #tpu.memory_space<smem>>) -> (i32, i32) {
    %c0_i32 = arith.constant 0 : i32
    %c0_i32_0 = arith.constant 0 : i32
    return %arg0, %c0_i32 : i32, i32
  }
  func.func @transform_1(%arg0: i32, %arg1: memref<5xi32, #tpu.memory_space<smem>>) -> (i32, i32) {
    %c0_i32 = arith.constant 0 : i32
    %c0_i32_0 = arith.constant 0 : i32
    %c0_i32_1 = arith.constant 0 : i32
    return %c0_i32, %c0_i32_0 : i32, i32
  }
  func.func @transform_2(%arg0: i32, %arg1: memref<5xi32, #tpu.memory_space<smem>>) -> (i32, i32) {
    %c0_i32 = arith.constant 0 : i32
    %c0_i32_0 = arith.constant 0 : i32
    %c0_i32_1 = arith.constant 0 : i32
    return %c0_i32, %c0_i32_0 : i32, i32
  }
  func.func @transform_3(%arg0: i32, %arg1: memref<5xi32, #tpu.memory_space<smem>>) -> (i32, i32) {
    %c0_i32 = arith.constant 0 : i32
    %c0_i32_0 = arith.constant 0 : i32
    %c0_i32_1 = arith.constant 0 : i32
    return %c0_i32, %c0_i32_0 : i32, i32
  }
  func.func @transform_4(%arg0: i32, %arg1: memref<5xi32, #tpu.memory_space<smem>>) -> (i32, i32) {
    %c0_i32 = arith.constant 0 : i32
    %c0_i32_0 = arith.constant 0 : i32
    %c0_i32_1 = arith.constant 0 : i32
    return %c0_i32, %c0_i32_0 : i32, i32
  }
  func.func @transform_5(%arg0: i32, %arg1: memref<5xi32, #tpu.memory_space<smem>>) -> (i32, i32) {
    %c0_i32 = arith.constant 0 : i32
    %c0_i32_0 = arith.constant 0 : i32
    %c0_i32_1 = arith.constant 0 : i32
    return %c0_i32, %c0_i32_0 : i32, i32
  }
  func.func @transform_6(%arg0: i32, %arg1: memref<5xi32, #tpu.memory_space<smem>>) -> (i32, i32) {
    %c0_i32 = arith.constant 0 : i32
    %c0_i32_0 = arith.constant 0 : i32
    %c0_i32_1 = arith.constant 0 : i32
    return %c0_i32, %c0_i32_0 : i32, i32
  }
  func.func @transform_7(%arg0: i32, %arg1: memref<5xi32, #tpu.memory_space<smem>>) -> (i32, i32) {
    %c0_i32 = arith.constant 0 : i32
    %c0_i32_0 = arith.constant 0 : i32
    %c0_i32_1 = arith.constant 0 : i32
    return %c0_i32, %c0_i32_0 : i32, i32
  }
  func.func @transform_8(%arg0: i32, %arg1: memref<5xi32, #tpu.memory_space<smem>>) -> (i32, i32) {
    %c0_i32 = arith.constant 0 : i32
    %c0_i32_0 = arith.constant 0 : i32
    %c0_i32_1 = arith.constant 0 : i32
    return %c0_i32, %c0_i32_0 : i32, i32
  }
  func.func @transform_9(%arg0: i32, %arg1: memref<5xi32, #tpu.memory_space<smem>>) -> (i32, i32) {
    %c0_i32 = arith.constant 0 : i32
    %c0_i32_0 = arith.constant 0 : i32
    %c0_i32_1 = arith.constant 0 : i32
    return %c0_i32, %c0_i32_0 : i32, i32
  }
  func.func @transform_10(%arg0: i32, %arg1: memref<5xi32, #tpu.memory_space<smem>>) -> (i32, i32) {
    %c0_i32 = arith.constant 0 : i32
    %c0_i32_0 = arith.constant 0 : i32
    %c0_i32_1 = arith.constant 0 : i32
    return %c0_i32, %c0_i32_0 : i32, i32
  }
  func.func @transform_11(%arg0: i32, %arg1: memref<5xi32, #tpu.memory_space<smem>>) -> (i32, i32) {
    %c0_i32 = arith.constant 0 : i32
    %c0_i32_0 = arith.constant 0 : i32
    %c0_i32_1 = arith.constant 0 : i32
    return %c0_i32, %c0_i32_0 : i32, i32
  }
  func.func @transform_12(%arg0: i32, %arg1: memref<5xi32, #tpu.memory_space<smem>>) -> (i32, i32) {
    %c0_i32 = arith.constant 0 : i32
    %c0_i32_0 = arith.constant 0 : i32
    %c0_i32_1 = arith.constant 0 : i32
    return %c0_i32, %c0_i32_0 : i32, i32
  }
  func.func @transform_13(%arg0: i32, %arg1: memref<5xi32, #tpu.memory_space<smem>>) -> (i32, i32) {
    %c0_i32 = arith.constant 0 : i32
    %c0_i32_0 = arith.constant 0 : i32
    %c0_i32_1 = arith.constant 0 : i32
    return %c0_i32, %c0_i32_0 : i32, i32
  }
  func.func @transform_14(%arg0: i32, %arg1: memref<5xi32, #tpu.memory_space<smem>>) -> (i32, i32) {
    %c0_i32 = arith.constant 0 : i32
    %c0_i32_0 = arith.constant 0 : i32
    %c0_i32_1 = arith.constant 0 : i32
    return %c0_i32, %c0_i32_0 : i32, i32
  }
  func.func @transform_15(%arg0: i32, %arg1: memref<5xi32, #tpu.memory_space<smem>>) -> (i32, i32) {
    %c0_i32 = arith.constant 0 : i32
    %c0_i32_0 = arith.constant 0 : i32
    %c0_i32_1 = arith.constant 0 : i32
    return %c0_i32, %c0_i32_0 : i32, i32
  }
  func.func @transform_16(%arg0: i32, %arg1: memref<5xi32, #tpu.memory_space<smem>>) -> (i32, i32) {
    %c0_i32 = arith.constant 0 : i32
    %c0_i32_0 = arith.constant 0 : i32
    %c0_i32_1 = arith.constant 0 : i32
    return %c0_i32, %c0_i32_0 : i32, i32
  }
  func.func @transform_17(%arg0: i32, %arg1: memref<5xi32, #tpu.memory_space<smem>>) -> (i32, i32) {
    %c0_i32 = arith.constant 0 : i32
    %c0_i32_0 = arith.constant 0 : i32
    %c0_i32_1 = arith.constant 0 : i32
    return %c0_i32, %c0_i32_0 : i32, i32
  }
  func.func @transform_18(%arg0: i32, %arg1: memref<5xi32, #tpu.memory_space<smem>>) -> (i32, i32) {
    %c0_i32 = arith.constant 0 : i32
    %c0_i32_0 = arith.constant 0 : i32
    %c0_i32_1 = arith.constant 0 : i32
    return %c0_i32, %c0_i32_0 : i32, i32
  }
  func.func @transform_19(%arg0: i32, %arg1: memref<5xi32, #tpu.memory_space<smem>>) -> (i32, i32) {
    %c0_i32 = arith.constant 0 : i32
    %c0_i32_0 = arith.constant 0 : i32
    %c0_i32_1 = arith.constant 0 : i32
    return %c0_i32, %c0_i32_0 : i32, i32
  }
  func.func @transform_20(%arg0: i32, %arg1: memref<5xi32, #tpu.memory_space<smem>>) -> (i32, i32) {
    %c0_i32 = arith.constant 0 : i32
    %c0_i32_0 = arith.constant 0 : i32
    %c0_i32_1 = arith.constant 0 : i32
    return %c0_i32, %c0_i32_0 : i32, i32
  }
}

</mosaic_0001>

<bundles_post_ra>
// kernel: tpu_custom_call.1
= control target key start
LH: loop header
LB: loop body
LE: loop exit
PB: predicated region body
PF: predicated region fallthrough
CT: control target
= control target key end

     0   :  { %s4828_s0 = inlined_call_operand.hbm [shape: s32[5], index: 0, kind: input, shape index: {}]   ;;  %s4829_s1 = inlined_call_operand.hbm [shape: f32[64,256], index: 1, kind: input, shape index: {}]   ;;  %s4830_s2 = inlined_call_operand.hbm [shape: f32[4,512], index: 2, kind: input, shape index: {}]   ;;  %s4831_s3 = inlined_call_operand.hbm [shape: bf16[512,256], index: 3, kind: input, shape index: {}]   ;;  %s4832_s4 = inlined_call_operand.vmem [shape: f32[1,256], index: 4, kind: input, shape index: {}]   ;;  %s4833_s5 = inlined_call_operand.hbm [shape: bf16[256,256], index: 5, kind: input, shape index: {}]   ;;  %s4834_s6 = inlined_call_operand.hbm [shape: bf16[256,256], index: 6, kind: input, shape index: {}]   ;;  %s4835_s7 = inlined_call_operand.vmem [shape: f32[1,256], index: 7, kind: input, shape index: {}]   ;;  %s4836_s8 = inlined_call_operand.hbm [shape: bf16[256,256], index: 8, kind: input, shape index: {}]   ;;  %s4837_s9 = inlined_call_operand.hbm [shape: bf16[256,256], index: 9, kind: input, shape index: {}]   ;;  %s4838_s10 = inlined_call_operand.vmem [shape: f32[1,256], index: 10, kind: input, shape index: {}]   ;;  %s4839_s11 = inlined_call_operand.vmem [shape: f32[1,256], index: 11, kind: input, shape index: {}]   ;;  %s4840_s12 = inlined_call_operand.vmem [shape: f32[1,256], index: 12, kind: input, shape index: {}]   ;;  %s4841_s13 = inlined_call_operand.hbm [shape: bf16[256,128], index: 13, kind: input, shape index: {}]   ;;  %s4842_s14 = inlined_call_operand.vmem [shape: f32[1,128], index: 14, kind: input, shape index: {}]   ;;  %s4843_s15 = inlined_call_operand.hbm [shape: bf16[256,128], index: 15, kind: input, shape index: {}]   ;;  %s4844_s16 = inlined_call_operand.vmem [shape: f32[1,128], index: 16, kind: input, shape index: {}]   ;;  %s4845_s17 = inlined_call_operand.vmem [shape: f32[1,128], index: 17, kind: input, shape index: {}]   ;;  %s4846_s18 = inlined_call_operand.vmem [shape: f32[1,128], index: 18, kind: input, shape index: {}]   ;;  %s4847_s19 = inlined_call_operand.hbm [shape: bf16[128,128], index: 19, kind: input, shape index: {}]   ;;  %s4848_s20 = inlined_call_operand.vmem [shape: f32[1,128], index: 20, kind: input, shape index: {}]   ;;  %s4849_s21 = inlined_call_operand.hbm [shape: f32[4,128], index: 21, kind: output, shape index: {}]  }
   0x1   :  { %4850 = sst [smem:[#allocation31_spill]] %s4828_s0 }
   0x2   :  { %4851 = sst [smem:[#allocation32_spill]] %s4829_s1 }
   0x3   :  { %4852 = sst [smem:[#allocation33_spill]] %s4830_s2  ;;  %s4000_s2 = smov [#allocation4]  }
   0x4   :  { %4853 = sst [smem:[#allocation34_spill]] %s4831_s3 }
   0x5   :  { %4854 = sst [smem:[#allocation35_spill]] %s4832_s4 }
   0x6   :  { %4855 = sst [smem:[#allocation36_spill]] %s4833_s5 }
   0x7   :  { %4856 = sst [smem:[#allocation37_spill]] %s4842_s14 }
   0x8   :  { %s4857_s14 = sld [smem:[#allocation31_spill]] }
   0xe   :  { %27 = dma.hbm_to_smem %s4857_s14, 16, %s4000_s2, [#allocation3] }
   0xf   :  { %3984 = dma.done.wait [#allocation3], 16 }
  0x10   :  { %3985 = vsyncadd [#allocation3], 4294967280 }
  0x11   :  { %29 = sfence }
  0x12   :  { %30 = vsyncpa [#allocation6], 0 }
  0x13   :  { %31 = vsyncpa [#allocation9], 0 }
  0x14   :  { %32 = vsyncpa [#allocation12], 0 }
  0x15   :  { %33 = vsyncpa [#allocation15], 0 }
  0x16   :  { %34 = vsyncpa [#allocation18], 0 }
  0x17   :  { %35 = vsyncpa [#allocation21], 0 }
  0x18   :  { %36 = vsyncpa [#allocation7], 0  ;;  %s4001_s27 = smov [#allocation8]  }
  0x19   :  { %s55_s3 = sshll.u32 %s4001_s27, 4  ;;  %s56_s3 = int_to_ptr.vmem [resolvable:$true] %s55_s3 }
  0x1a   :  { %s3772_s28 = scalar_lea.vmem %s56_s3, 256  ;;  %p3777_p1 = scmp.lt.s32.totalorder %s56_s3, %s56_s3 }
  0x1b   :  { %p3773_p0 = scmp.ne.s32.totalorder %s56_s3, %s3772_s28  ;;  %p3778_p2 = scmp.lt.s32.totalorder %s3772_s28, %s3772_s28 }
  0x1d   :  { %p3779_p3 = por %p3778_p2, %p3777_p1 }
  0x1f   :  { %p3780_p4 = pnand %p3779_p3, %p3773_p0 }
  0x21   :  { %3783 = shalt.err (!%p3780_p4)
}
  0x22   :  { %s4858_s0 = sld [smem:[#allocation33_spill]]  ;;  %s4002_s4 = smov [#allocation11]  }
  0x23   :  { %s78_s30 = sshll.u32 %s4002_s4, 4  ;;  %s4003_s5 = smov [#allocation14]   ;;  %s79_s30 = int_to_ptr.vmem [resolvable:$true] %s78_s30 }
  0x24   :  { %s104_s22 = sshll.u32 %s4003_s5, 4  ;;  %s3792_s23 = scalar_lea.vmem %s79_s30, 4096  ;;  %s105_s22 = int_to_ptr.vmem [resolvable:$true] %s104_s22 }
  0x25   :  { %p3793_p5 = scmp.ne.s32.totalorder %s79_s30, %s3792_s23  ;;  %p3797_p6 = scmp.lt.s32.totalorder %s79_s30, %s79_s30 }
  0x26   :  { %p3798_p7 = scmp.lt.s32.totalorder %s3792_s23, %s3792_s23 }
  0x28   :  { %58 = dma.hbm_to_vmem [thread:$0]  %s4858_s0, 256, %s56_s3, [#allocation9]  }
  0x29   :  { %p3799_p8 = por %p3798_p7, %p3797_p6 }
  0x2b   :  { %p3800_p9 = pnand %p3799_p8, %p3793_p5 }
  0x2d   :  { %3803 = shalt.err (!%p3800_p9)
}
  0x2e   :  { %s4004_s1 = smov 128   ;;  %s4005_s24 = smov 8  }
  0x2f   :  { %s4859_s26 = sld [smem:[#allocation36_spill]]  ;;  %s3812_s27 = scalar_lea.vmem %s105_s22, 4096 }
  0x30   :  { %p3813_p10 = scmp.ne.s32.totalorder %s105_s22, %s3812_s27  ;;  %p3817_p11 = scmp.lt.s32.totalorder %s105_s22, %s105_s22 }
  0x31   :  { %p3818_p12 = scmp.lt.s32.totalorder %s3812_s27, %s3812_s27 }
  0x33   :  { %p3819_p13 = por %p3818_p12, %p3817_p11 }
  0x35   :  { %84 = dma.hbm_to_vmem [thread:$0]  %s4859_s26, 4096, %s79_s30, [#allocation12], %s4004_s1, %s4004_s1, %s4005_s24  }
  0x36   :  { %p3820_p0 = pnand %p3819_p13, %p3813_p10 }
  0x38   :  { %3823 = shalt.err (!%p3820_p0)
}
  0x39   :  { %110 = dma.hbm_to_vmem [thread:$0]  %s4836_s8, 4096, %s105_s22, [#allocation15], %s4004_s1, %s4004_s1, %s4005_s24  }
  0x3a   :  { %s4006_s14 = smov [#allocation17]  }
  0x3b   :  { %s134_s29 = sshll.u32 %s4006_s14, 4  ;;  %s135_s29 = int_to_ptr.vmem [resolvable:$true] %s134_s29 }
  0x3c   :  { %s3832_s0 = scalar_lea.vmem %s135_s29, 2048  ;;  %p3837_p2 = scmp.lt.s32.totalorder %s135_s29, %s135_s29 }
  0x3d   :  { %p3833_p1 = scmp.ne.s32.totalorder %s135_s29, %s3832_s0  ;;  %p3838_p3 = scmp.lt.s32.totalorder %s3832_s0, %s3832_s0 }
  0x3f   :  { %p3839_p4 = por %p3838_p3, %p3837_p2 }
  0x41   :  { %p3840_p5 = pnand %p3839_p4, %p3833_p1 }
  0x43   :  { %3843 = shalt.err (!%p3840_p5)
}
  0x44   :  { %s4007_s4 = smov 64   ;;  %s4008_s30 = smov 4  }
  0x45   :  { %140 = dma.hbm_to_vmem [thread:$0]  %s4841_s13, 2048, %s135_s29, [#allocation18], %s4007_s4, %s4007_s4, %s4008_s30  }
  0x46   :  { %s4009_s8 = smov [#allocation5]  }
  0x47   :  { %s42_s22 = sshll.u32 %s4009_s8, 4  ;;  %s43_s22 = int_to_ptr.vmem [resolvable:$true] %s42_s22 }
  0x48   :  { %s3852_s2 = scalar_lea.vmem %s43_s22, 2048  ;;  %p3857_p7 = scmp.lt.s32.totalorder %s43_s22, %s43_s22 }
  0x49   :  { %p3853_p6 = scmp.ne.s32.totalorder %s43_s22, %s3852_s2  ;;  %p3858_p8 = scmp.lt.s32.totalorder %s3852_s2, %s3852_s2 }
  0x4b   :  { %p3859_p9 = por %p3858_p8, %p3857_p7 }
  0x4d   :  { %p3860_p10 = pnand %p3859_p9, %p3853_p6 }
  0x4f   :  { %3863 = shalt.err (!%p3860_p10)
}
  0x50   :  { %s4010_s25 = smov 256   ;;  %s4011_s26 = smov 16  }
  0x51   :  { %s4860_s28 = sld [smem:[#allocation32_spill]]  ;;  %s4012_s14 = smov [#allocation10]  }
  0x52   :  { %s64_s0 = sshll.u32 %s4012_s14, 4  ;;  %s4013_s13 = smov [#allocation13]   ;;  %s65_s0 = int_to_ptr.vmem [resolvable:$true] %s64_s0 }
  0x53   :  { %s90_s29 = sshll.u32 %s4013_s13, 4  ;;  %s3872_s5 = scalar_lea.vmem %s65_s0, 8192  ;;  %s91_s29 = int_to_ptr.vmem [resolvable:$true] %s90_s29 }
  0x54   :  { %p3873_p11 = scmp.ne.s32.totalorder %s65_s0, %s3872_s5  ;;  %p3877_p12 = scmp.lt.s32.totalorder %s65_s0, %s65_s0 }
  0x55   :  { %p3878_p13 = scmp.lt.s32.totalorder %s3872_s5, %s3872_s5 }
  0x57   :  { %48 = dma.hbm_to_vmem [thread:$0]  %s4860_s28, 2048, %s43_s22, [#allocation6], %s4010_s25, %s4010_s25, %s4011_s26  }
  0x58   :  { %p3879_p0 = por %p3878_p13, %p3877_p12 }
  0x5a   :  { %p3880_p1 = pnand %p3879_p0, %p3873_p11 }
  0x5c   :  { %3883 = shalt.err (!%p3880_p1)
}
  0x5d   :  { %s4861_s2 = sld [smem:[#allocation34_spill]]  ;;  %s3892_s22 = scalar_lea.vmem %s91_s29, 4096 }
  0x5e   :  { %p3893_p2 = scmp.ne.s32.totalorder %s91_s29, %s3892_s22  ;;  %p3897_p3 = scmp.lt.s32.totalorder %s91_s29, %s91_s29 }
  0x5f   :  { %p3898_p4 = scmp.lt.s32.totalorder %s3892_s22, %s3892_s22 }
  0x61   :  { %p3899_p5 = por %p3898_p4, %p3897_p3 }
  0x63   :  { %70 = dma.hbm_to_vmem [thread:$0]  %s4861_s2, 8192, %s65_s0, [#allocation9], %s4004_s1, %s4004_s1, %s4005_s24  }
  0x64   :  { %p3900_p6 = pnand %p3899_p5, %p3893_p2 }
  0x66   :  { %3903 = shalt.err (!%p3900_p6)
}
  0x67   :  { %96 = dma.hbm_to_vmem [thread:$0]  %s4834_s6, 4096, %s91_s29, [#allocation12], %s4004_s1, %s4004_s1, %s4005_s24  }
  0x68   :  { %s4014_s27 = smov [#allocation16]   ;;  %s4015_s28 = smov [#allocation19]  }
  0x69   :  { %s116_s3 = sshll.u32 %s4014_s27, 4  ;;  %s148_s14 = sshll.u32 %s4015_s28, 4  ;;  %s117_s3 = int_to_ptr.vmem [resolvable:$true] %s116_s3  ;;  %s149_s14 = int_to_ptr.vmem [resolvable:$true] %s148_s14 }
  0x6a   :  { %s3912_s0 = scalar_lea.vmem %s117_s3, 4096  ;;  %p3917_p8 = scmp.lt.s32.totalorder %s117_s3, %s117_s3 }
  0x6b   :  { %p3913_p7 = scmp.ne.s32.totalorder %s117_s3, %s3912_s0  ;;  %p3918_p9 = scmp.lt.s32.totalorder %s3912_s0, %s3912_s0 }
  0x6d   :  { %p3919_p10 = por %p3918_p9, %p3917_p8 }
  0x6f   :  { %p3920_p11 = pnand %p3919_p10, %p3913_p7 }
  0x71   :  { %3923 = shalt.err (!%p3920_p11)
}
  0x72   :  { %122 = dma.hbm_to_vmem [thread:$0]  %s4837_s9, 4096, %s117_s3, [#allocation15], %s4004_s1, %s4004_s1, %s4005_s24  }
  0x73   :  { %s3932_s6 = scalar_lea.vmem %s149_s14, 2048  ;;  %p3937_p13 = scmp.lt.s32.totalorder %s149_s14, %s149_s14 }
  0x74   :  { %p3933_p12 = scmp.ne.s32.totalorder %s149_s14, %s3932_s6  ;;  %p3938_p0 = scmp.lt.s32.totalorder %s3932_s6, %s3932_s6 }
  0x76   :  { %p3939_p1 = por %p3938_p0, %p3937_p13 }
  0x78   :  { %p3940_p2 = pnand %p3939_p1, %p3933_p12 }
  0x7a   :  { %3943 = shalt.err (!%p3940_p2)
}
  0x7b   :  { %154 = dma.hbm_to_vmem [thread:$0]  %s4843_s15, 2048, %s149_s14, [#allocation18], %s4007_s4, %s4007_s4, %s4008_s30  }
  0x7c   :  { %s4016_s8 = smov [#allocation20]  }
  0x7d   :  { %s166_s2 = sshll.u32 %s4016_s8, 4  ;;  %s167_s2 = int_to_ptr.vmem [resolvable:$true] %s166_s2 }
  0x7e   :  { %s3952_s22 = scalar_lea.vmem %s167_s2, 1024  ;;  %p3957_p4 = scmp.lt.s32.totalorder %s167_s2, %s167_s2 }
  0x7f   :  { %p3953_p3 = scmp.ne.s32.totalorder %s167_s2, %s3952_s22  ;;  %p3958_p5 = scmp.lt.s32.totalorder %s3952_s22, %s3952_s22 }
  0x81   :  { %p3959_p6 = por %p3958_p5, %p3957_p4 }
  0x83   :  { %p3960_p7 = pnand %p3959_p6, %p3953_p3 }
  0x85   :  { %3963 = shalt.err (!%p3960_p7)
}
  0x86   :  { %172 = dma.hbm_to_vmem [thread:$0]  %s4847_s19, 1024, %s167_s2, [#allocation21], %s4007_s4, %s4007_s4, %s4008_s30  }
  0x87   :  { %3986 = dma.done.wait [#allocation6], 2048  }
  0x88   :  { %3987 = vsyncadd [#allocation6], 4294965248 }
  0x89   :  { %3988 = dma.done.wait [#allocation9], 8448  }
  0x8a   :  { %3989 = vsyncadd [#allocation9], 4294958848 }
  0x8b   :  { %3990 = dma.done.wait [#allocation12], 8192  }
  0x8c   :  { %3991 = vsyncadd [#allocation12], 4294959104 }
  0x8d   :  { %3992 = dma.done.wait [#allocation15], 8192  }
  0x8e   :  { %3993 = vsyncadd [#allocation15], 4294959104 }
  0x8f   :  { %3994 = dma.done.wait [#allocation18], 4096  }
  0x90   :  { %3995 = vsyncadd [#allocation18], 4294963200 }
  0x91   :  { %3996 = dma.done.wait [#allocation21], 1024  }
  0x92   :  { %3997 = vsyncadd [#allocation21], 4294966272  ;;  %s4196_s15 = sld [smem:[#allocation4]]  ;;  %v4017_v0 = vmov -inf   ;;  %v4018_v1 = vmov 0.0  }
  0x93   :  { %210 = vst [vmem:[#allocation2] sm:$0xff] %v4017_v0  ;;  %211 = vst [vmem:[#allocation22] sm:$0xf] %v4018_v1  ;;  %s4199_s19 = sld [smem:[#allocation4 + $0x1]] }
  0x98   :  { %p216_p8 = scmp.lt.s32.totalorder %s4196_s15, 64  ;;  %p220_p9 = scmp.le.s32.totalorder %s4196_s15, 0 }
  0x99   :  { %p217_p10 = scmp.gt.s32.totalorder %s4199_s19, 0  ;;  %p221_p11 = scmp.ge.s32.totalorder %s4199_s19, 64 }
  0x9b   :  { %p4205_p12 = pnand %p217_p10, %p216_p8  ;;  %p4209_p13 = pnand %p221_p11, %p220_p9 }
  0x9d   :  { %p219_p0 = pneg %p4205_p12  ;;  %p223_p1 = pneg %p4209_p13 }
  0x9f   :  { %p224_p2 = pnand %p223_p1, %p219_p0 }
  0xa1   :  { %227 = sbr.rel (%p224_p2) target bundleno = 198 (0xc6), region = 129 }
  0xa6   :  { %v228_v2 = vld [vmem:[#allocation5] sm:$0xff]  ;;  %v229_v3 = vld [vmem:[#allocation5 + $0x8] sm:$0xff]  ;;  %v230_v4 = vld [vmem:[#allocation5 + $0x10] sm:$0xff]  ;;  %v4019_v36 = vmov 1966171168   ;;  %v277_v38 = vlaneseq }
  0xa7   :  { %v231_v5 = vld [vmem:[#allocation5 + $0x18] sm:$0xff]  ;;  %v232_v6 = vld [vmem:[#allocation5 + $0x20] sm:$0xff]  ;;  %v233_v7 = vld [vmem:[#allocation5 + $0x28] sm:$0xff]  ;;  %v275_v37 = vunpack.c.l.s4 %v4019_v36 }
  0xa8   :  { %v234_v8 = vld [vmem:[#allocation5 + $0x30] sm:$0xff]  ;;  %v235_v9 = vld [vmem:[#allocation5 + $0x38] sm:$0xff]  ;;  %v236_v10 = vld [vmem:[#allocation5 + $0x40] sm:$0xff]  ;;  %v244_v11 = vmax.f32 %v228_v2, %v232_v6  ;;  %v257_v12 = vmax.f32 %v229_v3, %v233_v7  ;;  %v278_v44 = vshrl.u32 %v277_v38, 7  ;;  %vm292_vm0 = vcmp.lt.s32.totalorder %v277_v38, 256 }
  0xa9   :  { %v237_v13 = vld [vmem:[#allocation5 + $0x48] sm:$0xff]  ;;  %v238_v14 = vld [vmem:[#allocation5 + $0x50] sm:$0xff]  ;;  %v239_v15 = vld [vmem:[#allocation5 + $0x58] sm:$0xff]  ;;  %v245_v16 = vmax.f32 %v230_v4, %v234_v8  ;;  %v258_v17 = vmax.f32 %v231_v5, %v235_v9  ;;  %v276_v43 = vunpack.c.0.s8 %v275_v37 }
  0xaa   :  { %v240_v18 = vld [vmem:[#allocation5 + $0x60] sm:$0xff]  ;;  %v241_v19 = vld [vmem:[#allocation5 + $0x68] sm:$0xff]  ;;  %v242_v20 = vld [vmem:[#allocation5 + $0x70] sm:$0xff]  ;;  %v246_v21 = vmax.f32 %v244_v11, %v236_v10  ;;  %v259_v22 = vmax.f32 %v257_v12, %v237_v13 }
  0xab   :  { %v243_v23 = vld [vmem:[#allocation5 + $0x78] sm:$0xff]  ;;  %v247_v24 = vmax.f32 %v245_v16, %v238_v14  ;;  %v260_v25 = vmax.f32 %v258_v17, %v239_v15  ;;  %v279_v49 = vsub.s32 %v276_v43, %v278_v44 }
  0xac   :  { %v248_v26 = vmax.f32 %v246_v21, %v240_v18  ;;  %v261_v27 = vmax.f32 %v259_v22, %v241_v19  ;;  %v270_v52 = vld [vmem:[#allocation2] ss:$4 sm:$0x3] }
  0xad   :  { %v249_v28 = vmax.f32 %v247_v24, %v242_v20  ;;  %v262_v29 = vmax.f32 %v260_v25, %v243_v23 }
  0xaf   :  { %v250_v30 = vmax.f32 %v248_v26, %v249_v28  ;;  %v263_v31 = vmax.f32 %v261_v27, %v262_v29 }
  0xb1   :  { %v251_v32 = vrot.slane %v250_v30, 4  ;;  %v264_v33 = vrot.slane %v263_v31, 4 }
  0xb3   :  { %v252_v34 = vmax.f32 %v250_v30, %v251_v32  ;;  %v265_v35 = vmax.f32 %v263_v31, %v264_v33 }
  0xb5   :  { %v253_v39 = vrot.slane %v252_v34, 2  ;;  %v266_v40 = vrot.slane %v265_v35, 2 }
  0xb7   :  { %v254_v41 = vmax.f32 %v252_v34, %v253_v39  ;;  %v267_v42 = vmax.f32 %v265_v35, %v266_v40 }
  0xb9   :  { %v255_v45 = vrot.slane %v254_v41, 1  ;;  %v268_v46 = vrot.slane %v267_v42, 1 }
  0xbb   :  { %v256_v47 = vmax.f32 %v254_v41, %v255_v45  ;;  %v269_v48 = vmax.f32 %v267_v42, %v268_v46 }
  0xbd   :  { %v273_v50 = vcombine.low %v256_v47, %v269_v48 }
  0xbf   :  { %v280_v51 = vrot.slane %v273_v50, %v279_v49 }
  0xc1   :  { %v287_v53 = vrot.slane %v280_v51, %v279_v49 }
  0xc3   :  { %v289_v54 = vmax.f32 %v270_v52, %v287_v53 }
  0xc5   :  { %294 = vst.msk [vmem:[#allocation2] ss:$4 sm:$0x3] %vm292_vm0, %v289_v54 }
  0xc6 PF:  { %p296_p3 = pnand %p4209_p13, %p219_p0 }
  0xc8   :  { %299 = sbr.rel (%p296_p3) target bundleno = 247 (0xf7), region = 133 }
  0xcd   :  { %v300_v55 = vlaneseq  ;;  %v4229_v57 = vstv %s4196_s15  ;;  %v4232_v58 = vstv %s4199_s19  ;;  %v344_v3 = vld [vmem:[#allocation5] sm:$0xff]  ;;  %v345_v4 = vld [vmem:[#allocation5 + $0x8] sm:$0xff]  ;;  %v346_v5 = vld [vmem:[#allocation5 + $0x10] sm:$0xff] }
  0xce   :  { %v347_v6 = vld [vmem:[#allocation5 + $0x18] sm:$0xff]  ;;  %v348_v8 = vld [vmem:[#allocation5 + $0x20] sm:$0xff]  ;;  %v349_v9 = vld [vmem:[#allocation5 + $0x28] sm:$0xff] }
  0xcf   :  { %v4226_v56 = vshrl.u32 %v300_v55, 7  ;;  %v350_v11 = vld [vmem:[#allocation5 + $0x30] sm:$0xff]  ;;  %v351_v12 = vld [vmem:[#allocation5 + $0x38] sm:$0xff]  ;;  %v352_v15 = vld [vmem:[#allocation5 + $0x40] sm:$0xff] }
  0xd0   :  { %v353_v16 = vld [vmem:[#allocation5 + $0x48] sm:$0xff]  ;;  %v354_v21 = vld [vmem:[#allocation5 + $0x50] sm:$0xff]  ;;  %v355_v22 = vld [vmem:[#allocation5 + $0x58] sm:$0xff] }
  0xd1   :  { %v302_v59 = vadd.s32 8, %v4226_v56  ;;  %v303_v60 = vadd.s32 16, %v4226_v56  ;;  %v304_v61 = vadd.s32 24, %v4226_v56  ;;  %v305_v62 = vadd.s32 32, %v4226_v56  ;;  %v356_v26 = vld [vmem:[#allocation5 + $0x60] sm:$0xff]  ;;  %v357_v27 = vld [vmem:[#allocation5 + $0x68] sm:$0xff] }
  0xd2   :  { %v306_v63 = vadd.s32 40, %v4226_v56  ;;  %v307_v0 = vadd.s32 48, %v4226_v56  ;;  %v308_v2 = vadd.s32 56, %v4226_v56  ;;  %vm319_vm1 = vcmp.ge.s32.totalorder %v4226_v56, %v4229_v57  ;;  %v358_v33 = vld [vmem:[#allocation5 + $0x70] sm:$0xff]  ;;  %v359_v34 = vld [vmem:[#allocation5 + $0x78] sm:$0xff] }
  0xd3   :  { %vm320_vm2 = vcmp.ge.s32.totalorder %v302_v59, %v4229_v57  ;;  %vm321_vm3 = vcmp.ge.s32.totalorder %v303_v60, %v4229_v57  ;;  %vm322_vm4 = vcmp.ge.s32.totalorder %v304_v61, %v4229_v57  ;;  %vm323_vm5 = vcmp.ge.s32.totalorder %v305_v62, %v4229_v57 }
  0xd4   :  { %vm328_vm6 = vcmp.lt.s32.totalorder %v4226_v56, %v4232_v58  ;;  %vm324_vm7 = vcmp.ge.s32.totalorder %v306_v63, %v4229_v57  ;;  %vm329_vm8 = vcmp.lt.s32.totalorder %v302_v59, %v4232_v58  ;;  %vm330_vm9 = vcmp.lt.s32.totalorder %v303_v60, %v4232_v58 }
  0xd5   :  { %vm331_vm10 = vcmp.lt.s32.totalorder %v304_v61, %v4232_v58  ;;  %vm4253_vm11 = vmand %vm319_vm1, %vm328_vm6  ;;  %vm325_vm12 = vcmp.ge.s32.totalorder %v307_v0, %v4229_v57  ;;  %vm326_vm13 = vcmp.ge.s32.totalorder %v308_v2, %v4229_v57  ;;  %vm332_vm14 = vcmp.lt.s32.totalorder %v305_v62, %v4232_v58 }
  0xd6   :  { %vm4262_vm15 = vmand %vm320_vm2, %vm329_vm8  ;;  %v360_v13 = vsel %vm4253_vm11, %v344_v3, -inf  ;;  %vm333_vm0 = vcmp.lt.s32.totalorder %v306_v63, %v4232_v58  ;;  %v361_v17 = vsel %vm4253_vm11, %v345_v4, -inf  ;;  %vm334_vm2 = vcmp.lt.s32.totalorder %v307_v0, %v4232_v58 }
  0xd7   :  { %vm4271_vm1 = vmand %vm321_vm3, %vm330_vm9  ;;  %v362_v18 = vsel %vm4262_vm15, %v346_v5, -inf  ;;  %v363_v19 = vsel %vm4262_vm15, %v347_v6, -inf  ;;  %vm335_vm6 = vcmp.lt.s32.totalorder %v308_v2, %v4232_v58  ;;  %v4020_v58 = vmov 1966171168  }
  0xd8   :  { %vm4287_vm3 = vmand %vm322_vm4, %vm331_vm10  ;;  %v364_v23 = vsel %vm4271_vm1, %v348_v8, -inf  ;;  %v365_v24 = vsel %vm4271_vm1, %v349_v9, -inf  ;;  %v407_v63 = vunpack.c.l.s4 %v4020_v58  ;;  %vm424_vm9 = vcmp.lt.s32.totalorder %v300_v55, 256 }
  0xd9   :  { %vm4299_vm8 = vmand %vm323_vm5, %vm332_vm14  ;;  %v366_v28 = vsel %vm4287_vm3, %v350_v11, -inf  ;;  %v367_v29 = vsel %vm4287_vm3, %v351_v12, -inf  ;;  %v376_v30 = vmax.f32 %v360_v13, %v364_v23  ;;  %v389_v31 = vmax.f32 %v361_v17, %v365_v24  ;;  %v402_v12 = vld [vmem:[#allocation2] ss:$4 sm:$0x3] }
  0xda   :  { %vm4311_vm4 = vmand %vm324_vm7, %vm333_vm0  ;;  %v368_v35 = vsel %vm4299_vm8, %v352_v15, -inf  ;;  %v369_v36 = vsel %vm4299_vm8, %v353_v16, -inf  ;;  %v377_v37 = vmax.f32 %v362_v18, %v366_v28  ;;  %v390_v38 = vmax.f32 %v363_v19, %v367_v29 }
  0xdb   :  { %vm342_vm5 = vmand %vm325_vm12, %vm334_vm2  ;;  %v370_v39 = vsel %vm4311_vm4, %v354_v21, -inf  ;;  %v371_v40 = vsel %vm4311_vm4, %v355_v22, -inf  ;;  %v378_v41 = vmax.f32 %v376_v30, %v368_v35  ;;  %v391_v42 = vmax.f32 %v389_v31, %v369_v36 }
  0xdc   :  { %vm343_vm7 = vmand %vm326_vm13, %vm335_vm6  ;;  %v372_v43 = vsel %vm342_vm5, %v356_v26, -inf  ;;  %v373_v44 = vsel %vm342_vm5, %v357_v27, -inf  ;;  %v379_v45 = vmax.f32 %v377_v37, %v370_v39  ;;  %v392_v46 = vmax.f32 %v390_v38, %v371_v40 }
  0xdd   :  { %v374_v47 = vsel %vm343_vm7, %v358_v33, -inf  ;;  %v375_v48 = vsel %vm343_vm7, %v359_v34, -inf  ;;  %v380_v49 = vmax.f32 %v378_v41, %v372_v43  ;;  %v393_v50 = vmax.f32 %v391_v42, %v373_v44 }
  0xde   :  { %v381_v51 = vmax.f32 %v379_v45, %v374_v47  ;;  %v394_v52 = vmax.f32 %v392_v46, %v375_v48  ;;  %v408_v4 = vunpack.c.0.s8 %v407_v63 }
  0xe0   :  { %v382_v53 = vmax.f32 %v380_v49, %v381_v51  ;;  %v395_v54 = vmax.f32 %v393_v50, %v394_v52  ;;  %v411_v9 = vsub.s32 %v408_v4, %v4226_v56 }
  0xe2   :  { %v383_v59 = vrot.slane %v382_v53, 4  ;;  %v396_v60 = vrot.slane %v395_v54, 4 }
  0xe4   :  { %v384_v61 = vmax.f32 %v382_v53, %v383_v59  ;;  %v397_v62 = vmax.f32 %v395_v54, %v396_v60 }
  0xe6   :  { %v385_v57 = vrot.slane %v384_v61, 2  ;;  %v398_v0 = vrot.slane %v397_v62, 2 }
  0xe8   :  { %v386_v2 = vmax.f32 %v384_v61, %v385_v57  ;;  %v399_v3 = vmax.f32 %v397_v62, %v398_v0 }
  0xea   :  { %v387_v5 = vrot.slane %v386_v2, 1  ;;  %v400_v6 = vrot.slane %v399_v3, 1 }
  0xec   :  { %v388_v7 = vmax.f32 %v386_v2, %v387_v5  ;;  %v401_v8 = vmax.f32 %v399_v3, %v400_v6 }
  0xee   :  { %v405_v10 = vcombine.low %v388_v7, %v401_v8 }
  0xf0   :  { %v412_v11 = vrot.slane %v405_v10, %v411_v9 }
  0xf2   :  { %v419_v13 = vrot.slane %v412_v11, %v411_v9 }
  0xf4   :  { %v421_v14 = vmax.f32 %v402_v12, %v419_v13 }
  0xf6   :  { %426 = vst.msk [vmem:[#allocation2] ss:$4 sm:$0x3] %vm424_vm9, %v421_v14 }
  0xf7 PF:  { %s4333_s30 = sld [smem:[#allocation4 + $0x1]] }
  0xf8   :  { %s4335_s25 = sld [smem:[#allocation4 + $0x2]] }
  0xfd   :  { %p429_p4 = scmp.lt.s32.totalorder %s4333_s30, 64  ;;  %p433_p5 = scmp.le.s32.totalorder %s4333_s30, 0 }
  0xfe   :  { %p430_p6 = scmp.gt.s32.totalorder %s4335_s25, 0  ;;  %p434_p7 = scmp.ge.s32.totalorder %s4335_s25, 64 }
 0x100   :  { %p4341_p8 = pnand %p430_p6, %p429_p4  ;;  %p4345_p9 = pnand %p434_p7, %p433_p5 }
 0x102   :  { %p432_p10 = pneg %p4341_p8  ;;  %p436_p11 = pneg %p4345_p9 }
 0x104   :  { %p437_p12 = pnand %p436_p11, %p432_p10 }
 0x106   :  { %440 = sbr.rel (%p437_p12) target bundleno = 299 (0x12b), region = 137 }
 0x10b   :  { %v441_v55 = vld [vmem:[#allocation5] sm:$0xff]  ;;  %v442_v56 = vld [vmem:[#allocation5 + $0x8] sm:$0xff]  ;;  %v443_v15 = vld [vmem:[#allocation5 + $0x10] sm:$0xff]  ;;  %v4021_v47 = vmov 1966171168   ;;  %v491_v49 = vlaneseq }
 0x10c   :  { %v444_v16 = vld [vmem:[#allocation5 + $0x18] sm:$0xff]  ;;  %v445_v17 = vld [vmem:[#allocation5 + $0x20] sm:$0xff]  ;;  %v446_v18 = vld [vmem:[#allocation5 + $0x28] sm:$0xff]  ;;  %v489_v48 = vunpack.c.l.s4 %v4021_v47 }
 0x10d   :  { %v447_v19 = vld [vmem:[#allocation5 + $0x30] sm:$0xff]  ;;  %v448_v20 = vld [vmem:[#allocation5 + $0x38] sm:$0xff]  ;;  %v449_v21 = vld [vmem:[#allocation5 + $0x40] sm:$0xff]  ;;  %v457_v22 = vmax.f32 %v441_v55, %v445_v17  ;;  %v470_v23 = vmax.f32 %v442_v56, %v446_v18  ;;  %v492_v59 = vshrl.u32 %v491_v49, 7  ;;  %vm506_vm10 = vcmp.lt.s32.totalorder %v491_v49, 256 }
 0x10e   :  { %v450_v24 = vld [vmem:[#allocation5 + $0x48] sm:$0xff]  ;;  %v451_v25 = vld [vmem:[#allocation5 + $0x50] sm:$0xff]  ;;  %v452_v26 = vld [vmem:[#allocation5 + $0x58] sm:$0xff]  ;;  %v458_v27 = vmax.f32 %v443_v15, %v447_v19  ;;  %v471_v28 = vmax.f32 %v444_v16, %v448_v20  ;;  %v490_v54 = vunpack.c.0.s8 %v489_v48 }
 0x10f   :  { %v453_v29 = vld [vmem:[#allocation5 + $0x60] sm:$0xff]  ;;  %v454_v30 = vld [vmem:[#allocation5 + $0x68] sm:$0xff]  ;;  %v455_v31 = vld [vmem:[#allocation5 + $0x70] sm:$0xff]  ;;  %v459_v32 = vmax.f32 %v457_v22, %v449_v21  ;;  %v472_v33 = vmax.f32 %v470_v23, %v450_v24 }
 0x110   :  { %v456_v34 = vld [vmem:[#allocation5 + $0x78] sm:$0xff]  ;;  %v460_v35 = vmax.f32 %v458_v27, %v451_v25  ;;  %v473_v36 = vmax.f32 %v471_v28, %v452_v26  ;;  %v493_v63 = vsub.s32 %v490_v54, %v492_v59 }
 0x111   :  { %v461_v37 = vmax.f32 %v459_v32, %v453_v29  ;;  %v474_v38 = vmax.f32 %v472_v33, %v454_v30  ;;  %v484_v2 = vld [vmem:[#allocation2 + $0x1] ss:$4 sm:$0x3] }
 0x112   :  { %v462_v39 = vmax.f32 %v460_v35, %v455_v31  ;;  %v475_v40 = vmax.f32 %v473_v36, %v456_v34 }
 0x114   :  { %v463_v41 = vmax.f32 %v461_v37, %v462_v39  ;;  %v476_v42 = vmax.f32 %v474_v38, %v475_v40 }
 0x116   :  { %v464_v43 = vrot.slane %v463_v41, 4  ;;  %v477_v44 = vrot.slane %v476_v42, 4 }
 0x118   :  { %v465_v45 = vmax.f32 %v463_v41, %v464_v43  ;;  %v478_v46 = vmax.f32 %v476_v42, %v477_v44 }
 0x11a   :  { %v466_v50 = vrot.slane %v465_v45, 2  ;;  %v479_v51 = vrot.slane %v478_v46, 2 }
 0x11c   :  { %v467_v52 = vmax.f32 %v465_v45, %v466_v50  ;;  %v480_v53 = vmax.f32 %v478_v46, %v479_v51 }
 0x11e   :  { %v468_v60 = vrot.slane %v467_v52, 1  ;;  %v481_v61 = vrot.slane %v480_v53, 1 }
 0x120   :  { %v469_v62 = vmax.f32 %v467_v52, %v468_v60  ;;  %v482_v58 = vmax.f32 %v480_v53, %v481_v61 }
 0x122   :  { %v487_v57 = vcombine.low %v469_v62, %v482_v58 }
 0x124   :  { %v494_v0 = vrot.slane %v487_v57, %v493_v63 }
 0x126   :  { %v501_v3 = vrot.slane %v494_v0, %v493_v63 }
 0x128   :  { %v503_v4 = vmax.f32 %v484_v2, %v501_v3 }
 0x12a   :  { %508 = vst.msk [vmem:[#allocation2 + $0x1] ss:$4 sm:$0x3] %vm506_vm10, %v503_v4 }
 0x12b PF:  { %p510_p13 = pnand %p4345_p9, %p432_p10 }
 0x12d   :  { %513 = sbr.rel (%p510_p13) target bundleno = 348 (0x15c), region = 141 }
 0x132   :  { %v514_v5 = vlaneseq  ;;  %v4365_v7 = vstv %s4333_s30  ;;  %v4368_v8 = vstv %s4335_s25  ;;  %v558_v56 = vld [vmem:[#allocation5] sm:$0xff]  ;;  %v559_v15 = vld [vmem:[#allocation5 + $0x8] sm:$0xff]  ;;  %v560_v16 = vld [vmem:[#allocation5 + $0x10] sm:$0xff] }
 0x133   :  { %v561_v17 = vld [vmem:[#allocation5 + $0x18] sm:$0xff]  ;;  %v562_v19 = vld [vmem:[#allocation5 + $0x20] sm:$0xff]  ;;  %v563_v20 = vld [vmem:[#allocation5 + $0x28] sm:$0xff] }
 0x134   :  { %v4362_v6 = vshrl.u32 %v514_v5, 7  ;;  %v564_v22 = vld [vmem:[#allocation5 + $0x30] sm:$0xff]  ;;  %v565_v23 = vld [vmem:[#allocation5 + $0x38] sm:$0xff]  ;;  %v566_v26 = vld [vmem:[#allocation5 + $0x40] sm:$0xff] }
 0x135   :  { %v567_v27 = vld [vmem:[#allocation5 + $0x48] sm:$0xff]  ;;  %v568_v32 = vld [vmem:[#allocation5 + $0x50] sm:$0xff]  ;;  %v569_v33 = vld [vmem:[#allocation5 + $0x58] sm:$0xff] }
 0x136   :  { %v516_v9 = vadd.s32 8, %v4362_v6  ;;  %v517_v10 = vadd.s32 16, %v4362_v6  ;;  %v518_v11 = vadd.s32 24, %v4362_v6  ;;  %v519_v12 = vadd.s32 32, %v4362_v6  ;;  %v570_v37 = vld [vmem:[#allocation5 + $0x60] sm:$0xff]  ;;  %v571_v38 = vld [vmem:[#allocation5 + $0x68] sm:$0xff] }
 0x137   :  { %v520_v13 = vadd.s32 40, %v4362_v6  ;;  %v521_v14 = vadd.s32 48, %v4362_v6  ;;  %v522_v55 = vadd.s32 56, %v4362_v6  ;;  %vm533_vm11 = vcmp.ge.s32.totalorder %v4362_v6, %v4365_v7  ;;  %v572_v44 = vld [vmem:[#allocation5 + $0x70] sm:$0xff]  ;;  %v573_v45 = vld [vmem:[#allocation5 + $0x78] sm:$0xff] }
 0x138   :  { %vm534_vm12 = vcmp.ge.s32.totalorder %v516_v9, %v4365_v7  ;;  %vm535_vm13 = vcmp.ge.s32.totalorder %v517_v10, %v4365_v7  ;;  %vm536_vm14 = vcmp.ge.s32.totalorder %v518_v11, %v4365_v7  ;;  %vm537_vm15 = vcmp.ge.s32.totalorder %v519_v12, %v4365_v7 }
 0x139   :  { %vm542_vm0 = vcmp.lt.s32.totalorder %v4362_v6, %v4368_v8  ;;  %vm538_vm1 = vcmp.ge.s32.totalorder %v520_v13, %v4365_v7  ;;  %vm543_vm2 = vcmp.lt.s32.totalorder %v516_v9, %v4368_v8  ;;  %vm544_vm6 = vcmp.lt.s32.totalorder %v517_v10, %v4368_v8 }
 0x13a   :  { %vm545_vm3 = vcmp.lt.s32.totalorder %v518_v11, %v4368_v8  ;;  %vm4389_vm8 = vmand %vm533_vm11, %vm542_vm0  ;;  %vm539_vm4 = vcmp.ge.s32.totalorder %v521_v14, %v4365_v7  ;;  %vm540_vm5 = vcmp.ge.s32.totalorder %v522_v55, %v4365_v7  ;;  %vm546_vm7 = vcmp.lt.s32.totalorder %v519_v12, %v4368_v8 }
 0x13b   :  { %vm4398_vm9 = vmand %vm534_vm12, %vm543_vm2  ;;  %v574_v24 = vsel %vm4389_vm8, %v558_v56, -inf  ;;  %vm547_vm10 = vcmp.lt.s32.totalorder %v520_v13, %v4368_v8  ;;  %v575_v28 = vsel %vm4389_vm8, %v559_v15, -inf  ;;  %vm548_vm12 = vcmp.lt.s32.totalorder %v521_v14, %v4368_v8 }
 0x13c   :  { %vm4407_vm11 = vmand %vm535_vm13, %vm544_vm6  ;;  %v576_v29 = vsel %vm4398_vm9, %v560_v16, -inf  ;;  %v577_v30 = vsel %vm4398_vm9, %v561_v17, -inf  ;;  %vm549_vm0 = vcmp.lt.s32.totalorder %v522_v55, %v4368_v8  ;;  %v4022_v8 = vmov 1966171168  }
 0x13d   :  { %vm4423_vm13 = vmand %vm536_vm14, %vm545_vm3  ;;  %v578_v34 = vsel %vm4407_vm11, %v562_v19, -inf  ;;  %v579_v35 = vsel %vm4407_vm11, %v563_v20, -inf  ;;  %v622_v13 = vunpack.c.l.s4 %v4022_v8  ;;  %vm639_vm6 = vcmp.lt.s32.totalorder %v514_v5, 256 }
 0x13e   :  { %vm4435_vm2 = vmand %vm537_vm15, %vm546_vm7  ;;  %v580_v39 = vsel %vm4423_vm13, %v564_v22, -inf  ;;  %v581_v40 = vsel %vm4423_vm13, %v565_v23, -inf  ;;  %v590_v41 = vmax.f32 %v574_v24, %v578_v34  ;;  %v603_v42 = vmax.f32 %v575_v28, %v579_v35  ;;  %v617_v23 = vld [vmem:[#allocation2 + $0x1] ss:$4 sm:$0x3] }
 0x13f   :  { %vm4447_vm14 = vmand %vm538_vm1, %vm547_vm10  ;;  %v582_v46 = vsel %vm4435_vm2, %v566_v26, -inf  ;;  %v583_v47 = vsel %vm4435_vm2, %v567_v27, -inf  ;;  %v591_v48 = vmax.f32 %v576_v29, %v580_v39  ;;  %v604_v49 = vmax.f32 %v577_v30, %v581_v40 }
 0x140   :  { %vm556_vm15 = vmand %vm539_vm4, %vm548_vm12  ;;  %v584_v50 = vsel %vm4447_vm14, %v568_v32, -inf  ;;  %v585_v51 = vsel %vm4447_vm14, %v569_v33, -inf  ;;  %v592_v52 = vmax.f32 %v590_v41, %v582_v46  ;;  %v605_v53 = vmax.f32 %v603_v42, %v583_v47 }
 0x141   :  { %vm557_vm1 = vmand %vm540_vm5, %vm549_vm0  ;;  %v586_v54 = vsel %vm556_vm15, %v570_v37, -inf  ;;  %v587_v59 = vsel %vm556_vm15, %v571_v38, -inf  ;;  %v593_v60 = vmax.f32 %v591_v48, %v584_v50  ;;  %v606_v61 = vmax.f32 %v604_v49, %v585_v51 }
 0x142   :  { %v588_v62 = vsel %vm557_vm1, %v572_v44, -inf  ;;  %v589_v58 = vsel %vm557_vm1, %v573_v45, -inf  ;;  %v594_v63 = vmax.f32 %v592_v52, %v586_v54  ;;  %v607_v57 = vmax.f32 %v605_v53, %v587_v59 }
 0x143   :  { %v595_v0 = vmax.f32 %v593_v60, %v588_v62  ;;  %v608_v2 = vmax.f32 %v606_v61, %v589_v58  ;;  %v623_v15 = vunpack.c.0.s8 %v622_v13 }
 0x145   :  { %v596_v3 = vmax.f32 %v594_v63, %v595_v0  ;;  %v609_v4 = vmax.f32 %v607_v57, %v608_v2  ;;  %v626_v20 = vsub.s32 %v623_v15, %v4362_v6 }
 0x147   :  { %v597_v9 = vrot.slane %v596_v3, 4  ;;  %v610_v10 = vrot.slane %v609_v4, 4 }
 0x149   :  { %v598_v11 = vmax.f32 %v596_v3, %v597_v9  ;;  %v611_v12 = vmax.f32 %v609_v4, %v610_v10 }
 0x14b   :  { %v599_v7 = vrot.slane %v598_v11, 2  ;;  %v612_v14 = vrot.slane %v611_v12, 2 }
 0x14d   :  { %v600_v55 = vmax.f32 %v598_v11, %v599_v7  ;;  %v613_v56 = vmax.f32 %v611_v12, %v612_v14 }
 0x14f   :  { %v601_v16 = vrot.slane %v600_v55, 1  ;;  %v614_v17 = vrot.slane %v613_v56, 1 }
 0x151   :  { %v602_v18 = vmax.f32 %v600_v55, %v601_v16  ;;  %v615_v19 = vmax.f32 %v613_v56, %v614_v17 }
 0x153   :  { %v620_v21 = vcombine.low %v602_v18, %v615_v19 }
 0x155   :  { %v627_v22 = vrot.slane %v620_v21, %v626_v20 }
 0x157   :  { %v634_v24 = vrot.slane %v627_v22, %v626_v20 }
 0x159   :  { %v636_v25 = vmax.f32 %v617_v23, %v634_v24 }
 0x15b   :  { %641 = vst.msk [vmem:[#allocation2 + $0x1] ss:$4 sm:$0x3] %vm639_vm6, %v636_v25 }
 0x15c PF:  { %s4469_s3 = sld [smem:[#allocation4 + $0x2]] }
 0x15d   :  { %s4471_s28 = sld [smem:[#allocation4 + $0x3]] }
 0x162   :  { %p644_p0 = scmp.lt.s32.totalorder %s4469_s3, 64  ;;  %p648_p1 = scmp.le.s32.totalorder %s4469_s3, 0 }
 0x163   :  { %p645_p2 = scmp.gt.s32.totalorder %s4471_s28, 0  ;;  %p649_p3 = scmp.ge.s32.totalorder %s4471_s28, 64 }
 0x165   :  { %p4477_p4 = pnand %p645_p2, %p644_p0  ;;  %p4481_p5 = pnand %p649_p3, %p648_p1 }
 0x167   :  { %p647_p6 = pneg %p4477_p4  ;;  %p651_p7 = pneg %p4481_p5 }
 0x169   :  { %p652_p8 = pnand %p651_p7, %p647_p6 }
 0x16b   :  { %655 = sbr.rel (%p652_p8) target bundleno = 400 (0x190), region = 145 }
 0x170   :  { %v656_v5 = vld [vmem:[#allocation5] sm:$0xff]  ;;  %v657_v6 = vld [vmem:[#allocation5 + $0x8] sm:$0xff]  ;;  %v658_v26 = vld [vmem:[#allocation5 + $0x10] sm:$0xff]  ;;  %v4023_v62 = vmov 1966171168   ;;  %v706_v63 = vlaneseq }
 0x171   :  { %v659_v27 = vld [vmem:[#allocation5 + $0x18] sm:$0xff]  ;;  %v660_v28 = vld [vmem:[#allocation5 + $0x20] sm:$0xff]  ;;  %v661_v29 = vld [vmem:[#allocation5 + $0x28] sm:$0xff]  ;;  %v704_v58 = vunpack.c.l.s4 %v4023_v62 }
 0x172   :  { %v662_v30 = vld [vmem:[#allocation5 + $0x30] sm:$0xff]  ;;  %v663_v31 = vld [vmem:[#allocation5 + $0x38] sm:$0xff]  ;;  %v664_v32 = vld [vmem:[#allocation5 + $0x40] sm:$0xff]  ;;  %v672_v33 = vmax.f32 %v656_v5, %v660_v28  ;;  %v685_v34 = vmax.f32 %v657_v6, %v661_v29  ;;  %v707_v9 = vshrl.u32 %v706_v63, 7  ;;  %vm721_vm3 = vcmp.lt.s32.totalorder %v706_v63, 256 }
 0x173   :  { %v665_v35 = vld [vmem:[#allocation5 + $0x48] sm:$0xff]  ;;  %v666_v36 = vld [vmem:[#allocation5 + $0x50] sm:$0xff]  ;;  %v667_v37 = vld [vmem:[#allocation5 + $0x58] sm:$0xff]  ;;  %v673_v38 = vmax.f32 %v658_v26, %v662_v30  ;;  %v686_v39 = vmax.f32 %v659_v27, %v663_v31  ;;  %v705_v4 = vunpack.c.0.s8 %v704_v58 }
 0x174   :  { %v668_v40 = vld [vmem:[#allocation5 + $0x60] sm:$0xff]  ;;  %v669_v41 = vld [vmem:[#allocation5 + $0x68] sm:$0xff]  ;;  %v670_v42 = vld [vmem:[#allocation5 + $0x70] sm:$0xff]  ;;  %v674_v43 = vmax.f32 %v672_v33, %v664_v32  ;;  %v687_v44 = vmax.f32 %v685_v34, %v665_v35 }
 0x175   :  { %v671_v45 = vld [vmem:[#allocation5 + $0x78] sm:$0xff]  ;;  %v675_v46 = vmax.f32 %v673_v38, %v666_v36  ;;  %v688_v47 = vmax.f32 %v686_v39, %v667_v37  ;;  %v708_v13 = vsub.s32 %v705_v4, %v707_v9 }
 0x176   :  { %v676_v48 = vmax.f32 %v674_v43, %v668_v40  ;;  %v689_v49 = vmax.f32 %v687_v44, %v669_v41  ;;  %v699_v55 = vld [vmem:[#allocation2 + $0x2] ss:$4 sm:$0x3] }
 0x177   :  { %v677_v50 = vmax.f32 %v675_v46, %v670_v42  ;;  %v690_v51 = vmax.f32 %v688_v47, %v671_v45 }
 0x179   :  { %v678_v52 = vmax.f32 %v676_v48, %v677_v50  ;;  %v691_v53 = vmax.f32 %v689_v49, %v690_v51 }
 0x17b   :  { %v679_v54 = vrot.slane %v678_v52, 4  ;;  %v692_v59 = vrot.slane %v691_v53, 4 }
 0x17d   :  { %v680_v60 = vmax.f32 %v678_v52, %v679_v54  ;;  %v693_v61 = vmax.f32 %v691_v53, %v692_v59 }
 0x17f   :  { %v681_v57 = vrot.slane %v680_v60, 2  ;;  %v694_v0 = vrot.slane %v693_v61, 2 }
 0x181   :  { %v682_v2 = vmax.f32 %v680_v60, %v681_v57  ;;  %v695_v3 = vmax.f32 %v693_v61, %v694_v0 }
 0x183   :  { %v683_v10 = vrot.slane %v682_v2, 1  ;;  %v696_v11 = vrot.slane %v695_v3, 1 }
 0x185   :  { %v684_v12 = vmax.f32 %v682_v2, %v683_v10  ;;  %v697_v8 = vmax.f32 %v695_v3, %v696_v11 }
 0x187   :  { %v702_v7 = vcombine.low %v684_v12, %v697_v8 }
 0x189   :  { %v709_v14 = vrot.slane %v702_v7, %v708_v13 }
 0x18b   :  { %v716_v56 = vrot.slane %v709_v14, %v708_v13 }
 0x18d   :  { %v718_v15 = vmax.f32 %v699_v55, %v716_v56 }
 0x18f   :  { %723 = vst.msk [vmem:[#allocation2 + $0x2] ss:$4 sm:$0x3] %vm721_vm3, %v718_v15 }
 0x190 PF:  { %p725_p9 = pnand %p4481_p5, %p647_p6 }
 0x192   :  { %728 = sbr.rel (%p725_p9) target bundleno = 449 (0x1c1), region = 149 }
 0x197   :  { %v729_v16 = vlaneseq  ;;  %v4501_v18 = vstv %s4469_s3  ;;  %v4504_v19 = vstv %s4471_s28  ;;  %v773_v6 = vld [vmem:[#allocation5] sm:$0xff]  ;;  %v774_v26 = vld [vmem:[#allocation5 + $0x8] sm:$0xff]  ;;  %v775_v27 = vld [vmem:[#allocation5 + $0x10] sm:$0xff] }
 0x198   :  { %v776_v28 = vld [vmem:[#allocation5 + $0x18] sm:$0xff]  ;;  %v777_v30 = vld [vmem:[#allocation5 + $0x20] sm:$0xff]  ;;  %v778_v31 = vld [vmem:[#allocation5 + $0x28] sm:$0xff] }
 0x199   :  { %v4498_v17 = vshrl.u32 %v729_v16, 7  ;;  %v779_v33 = vld [vmem:[#allocation5 + $0x30] sm:$0xff]  ;;  %v780_v34 = vld [vmem:[#allocation5 + $0x38] sm:$0xff]  ;;  %v781_v37 = vld [vmem:[#allocation5 + $0x40] sm:$0xff] }
 0x19a   :  { %v782_v38 = vld [vmem:[#allocation5 + $0x48] sm:$0xff]  ;;  %v783_v43 = vld [vmem:[#allocation5 + $0x50] sm:$0xff]  ;;  %v784_v44 = vld [vmem:[#allocation5 + $0x58] sm:$0xff] }
 0x19b   :  { %v731_v20 = vadd.s32 8, %v4498_v17  ;;  %v732_v21 = vadd.s32 16, %v4498_v17  ;;  %v733_v22 = vadd.s32 24, %v4498_v17  ;;  %v734_v23 = vadd.s32 32, %v4498_v17  ;;  %v785_v48 = vld [vmem:[#allocation5 + $0x60] sm:$0xff]  ;;  %v786_v49 = vld [vmem:[#allocation5 + $0x68] sm:$0xff] }
 0x19c   :  { %v735_v24 = vadd.s32 40, %v4498_v17  ;;  %v736_v25 = vadd.s32 48, %v4498_v17  ;;  %v737_v5 = vadd.s32 56, %v4498_v17  ;;  %vm748_vm8 = vcmp.ge.s32.totalorder %v4498_v17, %v4501_v18  ;;  %v787_v59 = vld [vmem:[#allocation5 + $0x70] sm:$0xff]  ;;  %v788_v60 = vld [vmem:[#allocation5 + $0x78] sm:$0xff] }
 0x19d   :  { %vm749_vm4 = vcmp.ge.s32.totalorder %v731_v20, %v4501_v18  ;;  %vm750_vm5 = vcmp.ge.s32.totalorder %v732_v21, %v4501_v18  ;;  %vm751_vm7 = vcmp.ge.s32.totalorder %v733_v22, %v4501_v18  ;;  %vm752_vm9 = vcmp.ge.s32.totalorder %v734_v23, %v4501_v18 }
 0x19e   :  { %vm757_vm10 = vcmp.lt.s32.totalorder %v4498_v17, %v4504_v19  ;;  %vm753_vm11 = vcmp.ge.s32.totalorder %v735_v24, %v4501_v18  ;;  %vm758_vm12 = vcmp.lt.s32.totalorder %v731_v20, %v4504_v19  ;;  %vm759_vm0 = vcmp.lt.s32.totalorder %v732_v21, %v4504_v19 }
 0x19f   :  { %vm760_vm13 = vcmp.lt.s32.totalorder %v733_v22, %v4504_v19  ;;  %vm4525_vm2 = vmand %vm748_vm8, %vm757_vm10  ;;  %vm754_vm14 = vcmp.ge.s32.totalorder %v736_v25, %v4501_v18  ;;  %vm755_vm15 = vcmp.ge.s32.totalorder %v737_v5, %v4501_v18  ;;  %vm761_vm1 = vcmp.lt.s32.totalorder %v734_v23, %v4504_v19 }
 0x1a0   :  { %vm4534_vm6 = vmand %vm749_vm4, %vm758_vm12  ;;  %v789_v35 = vsel %vm4525_vm2, %v773_v6, -inf  ;;  %vm762_vm3 = vcmp.lt.s32.totalorder %v735_v24, %v4504_v19  ;;  %v790_v39 = vsel %vm4525_vm2, %v774_v26, -inf  ;;  %vm763_vm4 = vcmp.lt.s32.totalorder %v736_v25, %v4504_v19 }
 0x1a1   :  { %vm4543_vm8 = vmand %vm750_vm5, %vm759_vm0  ;;  %v791_v40 = vsel %vm4534_vm6, %v775_v27, -inf  ;;  %v792_v41 = vsel %vm4534_vm6, %v776_v28, -inf  ;;  %vm764_vm10 = vcmp.lt.s32.totalorder %v737_v5, %v4504_v19  ;;  %v4024_v19 = vmov 1966171168  }
 0x1a2   :  { %vm4559_vm5 = vmand %vm751_vm7, %vm760_vm13  ;;  %v793_v45 = vsel %vm4543_vm8, %v777_v30, -inf  ;;  %v794_v46 = vsel %vm4543_vm8, %v778_v31, -inf  ;;  %v837_v24 = vunpack.c.l.s4 %v4024_v19  ;;  %vm854_vm0 = vcmp.lt.s32.totalorder %v729_v16, 256 }
 0x1a3   :  { %vm4571_vm12 = vmand %vm752_vm9, %vm761_vm1  ;;  %v795_v50 = vsel %vm4559_vm5, %v779_v33, -inf  ;;  %v796_v51 = vsel %vm4559_vm5, %v780_v34, -inf  ;;  %v805_v52 = vmax.f32 %v789_v35, %v793_v45  ;;  %v818_v53 = vmax.f32 %v790_v39, %v794_v46  ;;  %v832_v34 = vld [vmem:[#allocation2 + $0x2] ss:$4 sm:$0x3] }
 0x1a4   :  { %vm4583_vm7 = vmand %vm753_vm11, %vm762_vm3  ;;  %v797_v61 = vsel %vm4571_vm12, %v781_v37, -inf  ;;  %v798_v62 = vsel %vm4571_vm12, %v782_v38, -inf  ;;  %v806_v58 = vmax.f32 %v791_v40, %v795_v50  ;;  %v819_v63 = vmax.f32 %v792_v41, %v796_v51 }
 0x1a5   :  { %vm771_vm9 = vmand %vm754_vm14, %vm763_vm4  ;;  %v799_v57 = vsel %vm4583_vm7, %v783_v43, -inf  ;;  %v800_v0 = vsel %vm4583_vm7, %v784_v44, -inf  ;;  %v807_v2 = vmax.f32 %v805_v52, %v797_v61  ;;  %v820_v3 = vmax.f32 %v818_v53, %v798_v62 }
 0x1a6   :  { %vm772_vm11 = vmand %vm755_vm15, %vm764_vm10  ;;  %v801_v4 = vsel %vm771_vm9, %v785_v48, -inf  ;;  %v802_v9 = vsel %vm771_vm9, %v786_v49, -inf  ;;  %v808_v10 = vmax.f32 %v806_v58, %v799_v57  ;;  %v821_v11 = vmax.f32 %v819_v63, %v800_v0 }
 0x1a7   :  { %v803_v12 = vsel %vm772_vm11, %v787_v59, -inf  ;;  %v804_v8 = vsel %vm772_vm11, %v788_v60, -inf  ;;  %v809_v13 = vmax.f32 %v807_v2, %v801_v4  ;;  %v822_v7 = vmax.f32 %v820_v3, %v802_v9 }
 0x1a8   :  { %v810_v14 = vmax.f32 %v808_v10, %v803_v12  ;;  %v823_v55 = vmax.f32 %v821_v11, %v804_v8  ;;  %v838_v26 = vunpack.c.0.s8 %v837_v24 }
 0x1aa   :  { %v811_v56 = vmax.f32 %v809_v13, %v810_v14  ;;  %v824_v15 = vmax.f32 %v822_v7, %v823_v55  ;;  %v841_v31 = vsub.s32 %v838_v26, %v4498_v17 }
 0x1ac   :  { %v812_v20 = vrot.slane %v811_v56, 4  ;;  %v825_v21 = vrot.slane %v824_v15, 4 }
 0x1ae   :  { %v813_v22 = vmax.f32 %v811_v56, %v812_v20  ;;  %v826_v23 = vmax.f32 %v824_v15, %v825_v21 }
 0x1b0   :  { %v814_v18 = vrot.slane %v813_v22, 2  ;;  %v827_v25 = vrot.slane %v826_v23, 2 }
 0x1b2   :  { %v815_v5 = vmax.f32 %v813_v22, %v814_v18  ;;  %v828_v6 = vmax.f32 %v826_v23, %v827_v25 }
 0x1b4   :  { %v816_v27 = vrot.slane %v815_v5, 1  ;;  %v829_v28 = vrot.slane %v828_v6, 1 }
 0x1b6   :  { %v817_v29 = vmax.f32 %v815_v5, %v816_v27  ;;  %v830_v30 = vmax.f32 %v828_v6, %v829_v28 }
 0x1b8   :  { %v835_v32 = vcombine.low %v817_v29, %v830_v30 }
 0x1ba   :  { %v842_v33 = vrot.slane %v835_v32, %v841_v31 }
 0x1bc   :  { %v849_v35 = vrot.slane %v842_v33, %v841_v31 }
 0x1be   :  { %v851_v36 = vmax.f32 %v832_v34, %v849_v35 }
 0x1c0   :  { %856 = vst.msk [vmem:[#allocation2 + $0x2] ss:$4 sm:$0x3] %vm854_vm0, %v851_v36 }
 0x1c1 PF:  { %s4605_s13 = sld [smem:[#allocation4 + $0x3]] }
 0x1c2   :  { %s4607_s5 = sld [smem:[#allocation4 + $0x4]] }
 0x1c7   :  { %p859_p10 = scmp.lt.s32.totalorder %s4605_s13, 64  ;;  %p863_p11 = scmp.le.s32.totalorder %s4605_s13, 0 }
 0x1c8   :  { %p860_p12 = scmp.gt.s32.totalorder %s4607_s5, 0  ;;  %p864_p13 = scmp.ge.s32.totalorder %s4607_s5, 64 }
 0x1ca   :  { %p4613_p0 = pnand %p860_p12, %p859_p10  ;;  %p4617_p1 = pnand %p864_p13, %p863_p11 }
 0x1cc   :  { %p862_p2 = pneg %p4613_p0  ;;  %p866_p3 = pneg %p4617_p1 }
 0x1ce   :  { %p867_p4 = pnand %p866_p3, %p862_p2 }
 0x1d0   :  { %870 = sbr.rel (%p867_p4) target bundleno = 501 (0x1f5), region = 153 }
 0x1d5   :  { %v871_v16 = vld [vmem:[#allocation5] sm:$0xff]  ;;  %v872_v17 = vld [vmem:[#allocation5 + $0x8] sm:$0xff]  ;;  %v873_v37 = vld [vmem:[#allocation5 + $0x10] sm:$0xff]  ;;  %v4025_v12 = vmov 1966171168   ;;  %v921_v13 = vlaneseq }
 0x1d6   :  { %v874_v38 = vld [vmem:[#allocation5 + $0x18] sm:$0xff]  ;;  %v875_v39 = vld [vmem:[#allocation5 + $0x20] sm:$0xff]  ;;  %v876_v40 = vld [vmem:[#allocation5 + $0x28] sm:$0xff]  ;;  %v919_v8 = vunpack.c.l.s4 %v4025_v12 }
 0x1d7   :  { %v877_v41 = vld [vmem:[#allocation5 + $0x30] sm:$0xff]  ;;  %v878_v42 = vld [vmem:[#allocation5 + $0x38] sm:$0xff]  ;;  %v879_v43 = vld [vmem:[#allocation5 + $0x40] sm:$0xff]  ;;  %v887_v44 = vmax.f32 %v871_v16, %v875_v39  ;;  %v900_v45 = vmax.f32 %v872_v17, %v876_v40  ;;  %v922_v20 = vshrl.u32 %v921_v13, 7  ;;  %vm936_vm13 = vcmp.lt.s32.totalorder %v921_v13, 256 }
 0x1d8   :  { %v880_v46 = vld [vmem:[#allocation5 + $0x48] sm:$0xff]  ;;  %v881_v47 = vld [vmem:[#allocation5 + $0x50] sm:$0xff]  ;;  %v882_v48 = vld [vmem:[#allocation5 + $0x58] sm:$0xff]  ;;  %v888_v49 = vmax.f32 %v873_v37, %v877_v41  ;;  %v901_v50 = vmax.f32 %v874_v38, %v878_v42  ;;  %v920_v15 = vunpack.c.0.s8 %v919_v8 }
 0x1d9   :  { %v883_v51 = vld [vmem:[#allocation5 + $0x60] sm:$0xff]  ;;  %v884_v52 = vld [vmem:[#allocation5 + $0x68] sm:$0xff]  ;;  %v885_v53 = vld [vmem:[#allocation5 + $0x70] sm:$0xff]  ;;  %v889_v54 = vmax.f32 %v887_v44, %v879_v43  ;;  %v902_v59 = vmax.f32 %v900_v45, %v880_v46 }
 0x1da   :  { %v886_v60 = vld [vmem:[#allocation5 + $0x78] sm:$0xff]  ;;  %v890_v61 = vmax.f32 %v888_v49, %v881_v47  ;;  %v903_v62 = vmax.f32 %v901_v50, %v882_v48  ;;  %v923_v24 = vsub.s32 %v920_v15, %v922_v20 }
 0x1db   :  { %v891_v58 = vmax.f32 %v889_v54, %v883_v51  ;;  %v904_v63 = vmax.f32 %v902_v59, %v884_v52  ;;  %v914_v5 = vld [vmem:[#allocation2 + $0x3] ss:$4 sm:$0x3] }
 0x1dc   :  { %v892_v57 = vmax.f32 %v890_v61, %v885_v53  ;;  %v905_v0 = vmax.f32 %v903_v62, %v886_v60 }
 0x1de   :  { %v893_v2 = vmax.f32 %v891_v58, %v892_v57  ;;  %v906_v3 = vmax.f32 %v904_v63, %v905_v0 }
 0x1e0   :  { %v894_v4 = vrot.slane %v893_v2, 4  ;;  %v907_v9 = vrot.slane %v906_v3, 4 }
 0x1e2   :  { %v895_v10 = vmax.f32 %v893_v2, %v894_v4  ;;  %v908_v11 = vmax.f32 %v906_v3, %v907_v9 }
 0x1e4   :  { %v896_v7 = vrot.slane %v895_v10, 2  ;;  %v909_v14 = vrot.slane %v908_v11, 2 }
 0x1e6   :  { %v897_v55 = vmax.f32 %v895_v10, %v896_v7  ;;  %v910_v56 = vmax.f32 %v908_v11, %v909_v14 }
 0x1e8   :  { %v898_v21 = vrot.slane %v897_v55, 1  ;;  %v911_v22 = vrot.slane %v910_v56, 1 }
 0x1ea   :  { %v899_v23 = vmax.f32 %v897_v55, %v898_v21  ;;  %v912_v19 = vmax.f32 %v910_v56, %v911_v22 }
 0x1ec   :  { %v917_v18 = vcombine.low %v899_v23, %v912_v19 }
 0x1ee   :  { %v924_v25 = vrot.slane %v917_v18, %v923_v24 }
 0x1f0   :  { %v931_v6 = vrot.slane %v924_v25, %v923_v24 }
 0x1f2   :  { %v933_v26 = vmax.f32 %v914_v5, %v931_v6 }
 0x1f4   :  { %938 = vst.msk [vmem:[#allocation2 + $0x3] ss:$4 sm:$0x3] %vm936_vm13, %v933_v26 }
 0x1f5 PF:  { %p940_p5 = pnand %p4617_p1, %p862_p2 }
 0x1f7   :  { %943 = sbr.rel (%p940_p5) target bundleno = 550 (0x226), region = 157 }
 0x1fc   :  { %v944_v27 = vlaneseq  ;;  %v4637_v29 = vstv %s4605_s13  ;;  %v4640_v30 = vstv %s4607_s5  ;;  %v988_v17 = vld [vmem:[#allocation5] sm:$0xff]  ;;  %v989_v37 = vld [vmem:[#allocation5 + $0x8] sm:$0xff]  ;;  %v990_v38 = vld [vmem:[#allocation5 + $0x10] sm:$0xff] }
 0x1fd   :  { %v991_v39 = vld [vmem:[#allocation5 + $0x18] sm:$0xff]  ;;  %v992_v41 = vld [vmem:[#allocation5 + $0x20] sm:$0xff]  ;;  %v993_v42 = vld [vmem:[#allocation5 + $0x28] sm:$0xff] }
 0x1fe   :  { %v4634_v28 = vshrl.u32 %v944_v27, 7  ;;  %v994_v44 = vld [vmem:[#allocation5 + $0x30] sm:$0xff]  ;;  %v995_v45 = vld [vmem:[#allocation5 + $0x38] sm:$0xff]  ;;  %v996_v48 = vld [vmem:[#allocation5 + $0x40] sm:$0xff] }
 0x1ff   :  { %v997_v49 = vld [vmem:[#allocation5 + $0x48] sm:$0xff]  ;;  %v998_v54 = vld [vmem:[#allocation5 + $0x50] sm:$0xff]  ;;  %v999_v59 = vld [vmem:[#allocation5 + $0x58] sm:$0xff] }
 0x200   :  { %v946_v31 = vadd.s32 8, %v4634_v28  ;;  %v947_v32 = vadd.s32 16, %v4634_v28  ;;  %v948_v33 = vadd.s32 24, %v4634_v28  ;;  %v949_v34 = vadd.s32 32, %v4634_v28  ;;  %v1000_v58 = vld [vmem:[#allocation5 + $0x60] sm:$0xff]  ;;  %v1001_v63 = vld [vmem:[#allocation5 + $0x68] sm:$0xff] }
 0x201   :  { %v950_v35 = vadd.s32 40, %v4634_v28  ;;  %v951_v36 = vadd.s32 48, %v4634_v28  ;;  %v952_v16 = vadd.s32 56, %v4634_v28  ;;  %vm963_vm2 = vcmp.ge.s32.totalorder %v4634_v28, %v4637_v29  ;;  %v1002_v9 = vld [vmem:[#allocation5 + $0x70] sm:$0xff]  ;;  %v1003_v10 = vld [vmem:[#allocation5 + $0x78] sm:$0xff] }
 0x202   :  { %vm964_vm14 = vcmp.ge.s32.totalorder %v946_v31, %v4637_v29  ;;  %vm965_vm15 = vcmp.ge.s32.totalorder %v947_v32, %v4637_v29  ;;  %vm966_vm1 = vcmp.ge.s32.totalorder %v948_v33, %v4637_v29  ;;  %vm967_vm6 = vcmp.ge.s32.totalorder %v949_v34, %v4637_v29 }
 0x203   :  { %vm972_vm3 = vcmp.lt.s32.totalorder %v4634_v28, %v4640_v30  ;;  %vm968_vm8 = vcmp.ge.s32.totalorder %v950_v35, %v4637_v29  ;;  %vm973_vm4 = vcmp.lt.s32.totalorder %v946_v31, %v4640_v30  ;;  %vm974_vm10 = vcmp.lt.s32.totalorder %v947_v32, %v4640_v30 }
 0x204   :  { %vm975_vm5 = vcmp.lt.s32.totalorder %v948_v33, %v4640_v30  ;;  %vm4661_vm12 = vmand %vm963_vm2, %vm972_vm3  ;;  %vm969_vm7 = vcmp.ge.s32.totalorder %v951_v36, %v4637_v29  ;;  %vm970_vm9 = vcmp.ge.s32.totalorder %v952_v16, %v4637_v29  ;;  %vm976_vm11 = vcmp.lt.s32.totalorder %v949_v34, %v4640_v30 }
 0x205   :  { %vm4670_vm0 = vmand %vm964_vm14, %vm973_vm4  ;;  %v1004_v46 = vsel %vm4661_vm12, %v988_v17, -inf  ;;  %vm977_vm13 = vcmp.lt.s32.totalorder %v950_v35, %v4640_v30  ;;  %v1005_v50 = vsel %vm4661_vm12, %v989_v37, -inf  ;;  %vm978_vm14 = vcmp.lt.s32.totalorder %v951_v36, %v4640_v30 }
 0x206   :  { %vm4679_vm2 = vmand %vm965_vm15, %vm974_vm10  ;;  %v1006_v51 = vsel %vm4670_vm0, %v990_v38, -inf  ;;  %v1007_v52 = vsel %vm4670_vm0, %v991_v39, -inf  ;;  %vm979_vm3 = vcmp.lt.s32.totalorder %v952_v16, %v4640_v30  ;;  %v4026_v30 = vmov 1966171168  }
 0x207   :  { %vm4695_vm15 = vmand %vm966_vm1, %vm975_vm5  ;;  %v1008_v60 = vsel %vm4679_vm2, %v992_v41, -inf  ;;  %v1009_v61 = vsel %vm4679_vm2, %v993_v42, -inf  ;;  %v1052_v35 = vunpack.c.l.s4 %v4026_v30  ;;  %vm1069_vm10 = vcmp.lt.s32.totalorder %v944_v27, 256 }
 0x208   :  { %vm4707_vm4 = vmand %vm967_vm6, %vm976_vm11  ;;  %v1010_v57 = vsel %vm4695_vm15, %v994_v44, -inf  ;;  %v1011_v0 = vsel %vm4695_vm15, %v995_v45, -inf  ;;  %v1020_v2 = vmax.f32 %v1004_v46, %v1008_v60  ;;  %v1033_v3 = vmax.f32 %v1005_v50, %v1009_v61  ;;  %v1047_v45 = vld [vmem:[#allocation2 + $0x3] ss:$4 sm:$0x3] }
 0x209   :  { %vm4719_vm1 = vmand %vm968_vm8, %vm977_vm13  ;;  %v1012_v11 = vsel %vm4707_vm4, %v996_v48, -inf  ;;  %v1013_v12 = vsel %vm4707_vm4, %v997_v49, -inf  ;;  %v1021_v8 = vmax.f32 %v1006_v51, %v1010_v57  ;;  %v1034_v13 = vmax.f32 %v1007_v52, %v1011_v0 }
 0x20a   :  { %vm986_vm6 = vmand %vm969_vm7, %vm978_vm14  ;;  %v1014_v7 = vsel %vm4719_vm1, %v998_v54, -inf  ;;  %v1015_v14 = vsel %vm4719_vm1, %v999_v59, -inf  ;;  %v1022_v55 = vmax.f32 %v1020_v2, %v1012_v11  ;;  %v1035_v56 = vmax.f32 %v1033_v3, %v1013_v12 }
 0x20b   :  { %vm987_vm8 = vmand %vm970_vm9, %vm979_vm3  ;;  %v1016_v15 = vsel %vm986_vm6, %v1000_v58, -inf  ;;  %v1017_v20 = vsel %vm986_vm6, %v1001_v63, -inf  ;;  %v1023_v21 = vmax.f32 %v1021_v8, %v1014_v7  ;;  %v1036_v22 = vmax.f32 %v1034_v13, %v1015_v14 }
 0x20c   :  { %v1018_v23 = vsel %vm987_vm8, %v1002_v9, -inf  ;;  %v1019_v19 = vsel %vm987_vm8, %v1003_v10, -inf  ;;  %v1024_v24 = vmax.f32 %v1022_v55, %v1016_v15  ;;  %v1037_v18 = vmax.f32 %v1035_v56, %v1017_v20 }
 0x20d   :  { %v1025_v25 = vmax.f32 %v1023_v21, %v1018_v23  ;;  %v1038_v5 = vmax.f32 %v1036_v22, %v1019_v19  ;;  %v1053_v37 = vunpack.c.0.s8 %v1052_v35 }
 0x20f   :  { %v1026_v6 = vmax.f32 %v1024_v24, %v1025_v25  ;;  %v1039_v26 = vmax.f32 %v1037_v18, %v1038_v5  ;;  %v1056_v42 = vsub.s32 %v1053_v37, %v4634_v28 }
 0x211   :  { %v1027_v31 = vrot.slane %v1026_v6, 4  ;;  %v1040_v32 = vrot.slane %v1039_v26, 4 }
 0x213   :  { %v1028_v33 = vmax.f32 %v1026_v6, %v1027_v31  ;;  %v1041_v34 = vmax.f32 %v1039_v26, %v1040_v32 }
 0x215   :  { %v1029_v29 = vrot.slane %v1028_v33, 2  ;;  %v1042_v36 = vrot.slane %v1041_v34, 2 }
 0x217   :  { %v1030_v16 = vmax.f32 %v1028_v33, %v1029_v29  ;;  %v1043_v17 = vmax.f32 %v1041_v34, %v1042_v36 }
 0x219   :  { %v1031_v38 = vrot.slane %v1030_v16, 1  ;;  %v1044_v39 = vrot.slane %v1043_v17, 1 }
 0x21b   :  { %v1032_v40 = vmax.f32 %v1030_v16, %v1031_v38  ;;  %v1045_v41 = vmax.f32 %v1043_v17, %v1044_v39 }
 0x21d   :  { %v1050_v43 = vcombine.low %v1032_v40, %v1045_v41 }
 0x21f   :  { %v1057_v44 = vrot.slane %v1050_v43, %v1056_v42 }
 0x221   :  { %v1064_v46 = vrot.slane %v1057_v44, %v1056_v42 }
 0x223   :  { %v1066_v47 = vmax.f32 %v1047_v45, %v1064_v46 }
 0x225   :  { %1071 = vst.msk [vmem:[#allocation2 + $0x3] ss:$4 sm:$0x3] %vm1069_vm10, %v1066_v47 }
 0x226 PF:  { %v3426_v48 = vld [vmem:[#allocation10 + $0x74] ss:$8 sps:$4 sm:$0xff]   ;;  %v3430_v50 = vld [vmem:[#allocation10 + $0x70] ss:$8 sps:$4 sm:$0xff]   ;;  %v3432_v52 = vld [vmem:[#allocation10 + $0x64] ss:$8 sps:$4 sm:$0xff]  }
 0x227   :  { %v3428_v49 = vld [vmem:[#allocation10 + $0x174] ss:$8 sps:$4 sm:$0xff]   ;;  %1486 = vmatprep.subr.bf16.mxu0 %v3426_v48  ;;  %v3431_v51 = vld [vmem:[#allocation10 + $0x170] ss:$8 sps:$4 sm:$0xff]   ;;  %v3434_v53 = vld [vmem:[#allocation10 + $0x164] ss:$8 sps:$4 sm:$0xff]  }
 0x228   :  { %1527 = vmatprep.subr.bf16.mxu1 %v3428_v49  ;;  %1487 = vmatpush1.bf16.msra.mxu0 %v3430_v50  ;;  %v3436_v28 = vld [vmem:[#allocation10 + $0x60] ss:$8 sps:$4 sm:$0xff]   ;;  %v3438_v59 = vld [vmem:[#allocation10 + $0x54] ss:$8 sps:$4 sm:$0xff]   ;;  %v3442_v27 = vld [vmem:[#allocation10 + $0x50] ss:$8 sps:$4 sm:$0xff]  }
 0x229   :  { %1528 = vmatpush1.bf16.msra.mxu1 %v3431_v51  ;;  %1488 = vmatprep.subr.bf16.mxu0 %v3432_v52  ;;  %v3437_v54 = vld [vmem:[#allocation10 + $0x160] ss:$8 sps:$4 sm:$0xff]   ;;  %v3440_v60 = vld [vmem:[#allocation10 + $0x154] ss:$8 sps:$4 sm:$0xff]   ;;  %v3443_v61 = vld [vmem:[#allocation10 + $0x150] ss:$8 sps:$4 sm:$0xff]  }
 0x22a   :  { %1529 = vmatprep.subr.bf16.mxu1 %v3434_v53  ;;  %v3444_v62 = vld [vmem:[#allocation10 + $0x44] ss:$8 sps:$4 sm:$0xff]   ;;  %v3448_v63 = vld [vmem:[#allocation10 + $0x40] ss:$8 sps:$4 sm:$0xff]   ;;  %v3450_v0 = vld [vmem:[#allocation10 + $0x34] ss:$8 sps:$4 sm:$0xff]  }
 0x22b   :  { %v3446_v58 = vld [vmem:[#allocation10 + $0x144] ss:$8 sps:$4 sm:$0xff]   ;;  %v3449_v57 = vld [vmem:[#allocation10 + $0x140] ss:$8 sps:$4 sm:$0xff]   ;;  %v3452_v2 = vld [vmem:[#allocation10 + $0x134] ss:$8 sps:$4 sm:$0xff]  }
 0x22c   :  { %1489 = vmatpush1.bf16.msra.mxu0 %v3436_v28  ;;  %v3454_v3 = vld [vmem:[#allocation10 + $0x30] ss:$8 sps:$4 sm:$0xff]   ;;  %v3456_v9 = vld [vmem:[#allocation10 + $0x24] ss:$8 sps:$4 sm:$0xff]   ;;  %v3460_v11 = vld [vmem:[#allocation10 + $0x20] ss:$8 sps:$4 sm:$0xff]  }
 0x22d   :  { %1530 = vmatpush1.bf16.msra.mxu1 %v3437_v54  ;;  %1490 = vmatprep.subr.bf16.mxu0 %v3438_v59  ;;  %v3455_v4 = vld [vmem:[#allocation10 + $0x130] ss:$8 sps:$4 sm:$0xff]   ;;  %v3458_v10 = vld [vmem:[#allocation10 + $0x124] ss:$8 sps:$4 sm:$0xff]   ;;  %v3461_v12 = vld [vmem:[#allocation10 + $0x120] ss:$8 sps:$4 sm:$0xff]  }
 0x22e   :  { %1531 = vmatprep.subr.bf16.mxu1 %v3440_v60  ;;  %v3462_v8 = vld [vmem:[#allocation10 + $0x14] ss:$8 sps:$4 sm:$0xff]   ;;  %v3466_v7 = vld [vmem:[#allocation10 + $0x10] ss:$8 sps:$4 sm:$0xff]   ;;  %v3468_v55 = vld [vmem:[#allocation10 + $0x4] ss:$8 sps:$4 sm:$0xff]  }
 0x22f   :  { %v3464_v13 = vld [vmem:[#allocation10 + $0x114] ss:$8 sps:$4 sm:$0xff]   ;;  %v3467_v14 = vld [vmem:[#allocation10 + $0x110] ss:$8 sps:$4 sm:$0xff]   ;;  %v3470_v56 = vld [vmem:[#allocation10 + $0x104] ss:$8 sps:$4 sm:$0xff]  }
 0x230   :  { %1491 = vmatpush1.bf16.msra.mxu0 %v3442_v27  ;;  %v3472_v15 = vld [vmem:[#allocation10] ss:$8 sps:$4 sm:$0xff]   ;;  %v3474_v21 = vld [vmem:[#allocation10 + $0xf4] ss:$8 sps:$4 sm:$0xff]   ;;  %v3478_v23 = vld [vmem:[#allocation10 + $0xf0] ss:$8 sps:$4 sm:$0xff]  }
 0x231   :  { %1532 = vmatpush1.bf16.msra.mxu1 %v3443_v61  ;;  %1492 = vmatprep.subr.bf16.mxu0 %v3444_v62  ;;  %v3473_v20 = vld [vmem:[#allocation10 + $0x100] ss:$8 sps:$4 sm:$0xff]   ;;  %v3476_v22 = vld [vmem:[#allocation10 + $0x1f4] ss:$8 sps:$4 sm:$0xff]   ;;  %v3479_v19 = vld [vmem:[#allocation10 + $0x1f0] ss:$8 sps:$4 sm:$0xff]  }
 0x232   :  { %1533 = vmatprep.subr.bf16.mxu1 %v3446_v58  ;;  %v3480_v24 = vld [vmem:[#allocation10 + $0xe4] ss:$8 sps:$4 sm:$0xff]   ;;  %v3484_v25 = vld [vmem:[#allocation10 + $0xe0] ss:$8 sps:$4 sm:$0xff]   ;;  %v3486_v6 = vld [vmem:[#allocation10 + $0xd4] ss:$8 sps:$4 sm:$0xff]  }
 0x233   :  { %v3482_v18 = vld [vmem:[#allocation10 + $0x1e4] ss:$8 sps:$4 sm:$0xff]   ;;  %v3485_v5 = vld [vmem:[#allocation10 + $0x1e0] ss:$8 sps:$4 sm:$0xff]   ;;  %v3488_v26 = vld [vmem:[#allocation10 + $0x1d4] ss:$8 sps:$4 sm:$0xff]  }
 0x234   :  { %1493 = vmatpush1.bf16.msra.mxu0 %v3448_v63  ;;  %v3490_v31 = vld [vmem:[#allocation10 + $0xd0] ss:$8 sps:$4 sm:$0xff]   ;;  %v3492_v33 = vld [vmem:[#allocation10 + $0xc4] ss:$8 sps:$4 sm:$0xff]   ;;  %v3496_v36 = vld [vmem:[#allocation10 + $0xc0] ss:$8 sps:$4 sm:$0xff]  }
 0x235   :  { %1534 = vmatpush1.bf16.msra.mxu1 %v3449_v57  ;;  %1494 = vmatprep.subr.bf16.mxu0 %v3450_v0  ;;  %v3491_v32 = vld [vmem:[#allocation10 + $0x1d0] ss:$8 sps:$4 sm:$0xff]   ;;  %v3494_v34 = vld [vmem:[#allocation10 + $0x1c4] ss:$8 sps:$4 sm:$0xff]   ;;  %v3497_v16 = vld [vmem:[#allocation10 + $0x1c0] ss:$8 sps:$4 sm:$0xff]  }
 0x236   :  { %1535 = vmatprep.subr.bf16.mxu1 %v3452_v2  ;;  %v1078_v30 = vld [vmem:[#allocation8] sm:$0xff]  ;;  %v1079_v29 = vld [vmem:[#allocation8 + $0x8] sm:$0xff]  ;;  %v3504_v43 = vld [vmem:[#allocation10 + $0xa4] ss:$8 sps:$4 sm:$0xff]   ;;  %s4920_s2 = sld [smem:[#allocation35_spill]]  ;;  %vm4027_vm9 = vmmov 0  }
 0x237   :  { %v1082_v35 = vcombine.high %v1078_v30, %v1078_v30  ;;  %v1083_v17 = vcombine.high %v1079_v29, %v1079_v29  ;;  %v3498_v37 = vld [vmem:[#allocation10 + $0xb4] ss:$8 sps:$4 sm:$0xff]   ;;  %v3502_v41 = vld [vmem:[#allocation10 + $0xb0] ss:$8 sps:$4 sm:$0xff]   ;;  %v3506_v44 = vld [vmem:[#allocation10 + $0x1a4] ss:$8 sps:$4 sm:$0xff]   ;;  %v1086_v60 = vpack.c.bf16 %v1078_v30, %v1078_v30  ;;  %v1088_v27 = vpack.c.bf16 %v1079_v29, %v1079_v29 }
 0x238   :  { %1495 = vmatpush1.bf16.msra.mxu0 %v3454_v3  ;;  %v3500_v38 = vld [vmem:[#allocation10 + $0x1b4] ss:$8 sps:$4 sm:$0xff]   ;;  %v3503_v42 = vld [vmem:[#allocation10 + $0x1b0] ss:$8 sps:$4 sm:$0xff]   ;;  %v3508_v45 = vld [vmem:[#allocation10 + $0xa0] ss:$8 sps:$4 sm:$0xff]  }
 0x239   :  { %1536 = vmatpush1.bf16.msra.mxu1 %v3455_v4  ;;  %1496 = vmatprep.subr.bf16.mxu0 %v3456_v9  ;;  %v1087_v39 = vpack.c.bf16 %v1082_v35, %v1082_v35  ;;  %v1089_v40 = vpack.c.bf16 %v1083_v17, %v1083_v17  ;;  %v3509_v46 = vld [vmem:[#allocation10 + $0x1a0] ss:$8 sps:$4 sm:$0xff]   ;;  %v3510_v47 = vld [vmem:[#allocation10 + $0x94] ss:$8 sps:$4 sm:$0xff]   ;;  %v3514_v49 = vld [vmem:[#allocation10 + $0x90] ss:$8 sps:$4 sm:$0xff]  }
 0x23a   :  { %1537 = vmatprep.subr.bf16.mxu1 %v3458_v10  ;;  %v3512_v48 = vld [vmem:[#allocation10 + $0x194] ss:$8 sps:$4 sm:$0xff]   ;;  %v3515_v50 = vld [vmem:[#allocation10 + $0x190] ss:$8 sps:$4 sm:$0xff]   ;;  %v3516_v51 = vld [vmem:[#allocation10 + $0x84] ss:$8 sps:$4 sm:$0xff]  }
 0x23b   :  { %1518 = vmatprep.mubr.bf16.mxu0 %v1087_v39  ;;  %1559 = vmatprep.mubr.bf16.mxu1 %v1089_v40  ;;  %v3518_v52 = vld [vmem:[#allocation10 + $0x184] ss:$8 sps:$4 sm:$0xff]   ;;  %v3520_v53 = vld [vmem:[#allocation10 + $0x80] ss:$8 sps:$4 sm:$0xff]   ;;  %v3526_v54 = vld [vmem:[#allocation11 + $0x74] ss:$8 sps:$4 sm:$0xff]  }
 0x23c   :  { %1497 = vmatpush1.bf16.msra.mxu0 %v3460_v11  ;;  %v3521_v28 = vld [vmem:[#allocation10 + $0x180] ss:$8 sps:$4 sm:$0xff]   ;;  %v3532_v59 = vld [vmem:[#allocation13 + $0x74] ss:$8 sps:$4 sm:$0xff]   ;;  %v3524_v61 = vld [vmem:[#allocation11 + $0x70] ss:$8 sps:$4 sm:$0xff]  }
 0x23d   :  { %1538 = vmatpush1.bf16.msra.mxu1 %v3461_v12  ;;  %1498 = vmatprep.subr.bf16.mxu0 %v3462_v8  ;;  %v3530_v62 = vld [vmem:[#allocation13 + $0x70] ss:$8 sps:$4 sm:$0xff]   ;;  %v3529_v58 = vld [vmem:[#allocation11 + $0x64] ss:$8 sps:$4 sm:$0xff]   ;;  %v3527_v57 = vld [vmem:[#allocation11 + $0x60] ss:$8 sps:$4 sm:$0xff]  }
 0x23e   :  { %1539 = vmatprep.subr.bf16.mxu1 %v3464_v13  ;;  %v3538_v63 = vld [vmem:[#allocation13 + $0x64] ss:$8 sps:$4 sm:$0xff]   ;;  %v3536_v0 = vld [vmem:[#allocation13 + $0x60] ss:$8 sps:$4 sm:$0xff]   ;;  %v3535_v2 = vld [vmem:[#allocation11 + $0x54] ss:$8 sps:$4 sm:$0xff]  }
 0x23f   :  { %v3544_v3 = vld [vmem:[#allocation13 + $0x54] ss:$8 sps:$4 sm:$0xff]   ;;  %v3533_v4 = vld [vmem:[#allocation11 + $0x50] ss:$8 sps:$4 sm:$0xff]   ;;  %v3541_v10 = vld [vmem:[#allocation11 + $0x44] ss:$8 sps:$4 sm:$0xff]  }
 0x240   :  { %1499 = vmatpush1.bf16.msra.mxu0 %v3466_v7  ;;  %v3542_v9 = vld [vmem:[#allocation13 + $0x50] ss:$8 sps:$4 sm:$0xff]   ;;  %v3550_v11 = vld [vmem:[#allocation13 + $0x44] ss:$8 sps:$4 sm:$0xff]   ;;  %v3539_v12 = vld [vmem:[#allocation11 + $0x40] ss:$8 sps:$4 sm:$0xff]  }
 0x241   :  { %1540 = vmatpush1.bf16.msra.mxu1 %v3467_v14  ;;  %1500 = vmatprep.subr.bf16.mxu0 %v3468_v55  ;;  %v3548_v8 = vld [vmem:[#allocation13 + $0x40] ss:$8 sps:$4 sm:$0xff]   ;;  %v3547_v13 = vld [vmem:[#allocation11 + $0x34] ss:$8 sps:$4 sm:$0xff]   ;;  %v3545_v14 = vld [vmem:[#allocation11 + $0x30] ss:$8 sps:$4 sm:$0xff]  }
 0x242   :  { %1541 = vmatprep.subr.bf16.mxu1 %v3470_v56  ;;  %v3556_v7 = vld [vmem:[#allocation13 + $0x34] ss:$8 sps:$4 sm:$0xff]   ;;  %v3554_v55 = vld [vmem:[#allocation13 + $0x30] ss:$8 sps:$4 sm:$0xff]   ;;  %v3553_v56 = vld [vmem:[#allocation11 + $0x24] ss:$8 sps:$4 sm:$0xff]  }
 0x243   :  { %v3586_v30 = vld [vmem:[#allocation13 + $0xe4] ss:$8 sps:$4 sm:$0xff]   ;;  %v3575_v35 = vld [vmem:[#allocation11 + $0xe0] ss:$8 sps:$4 sm:$0xff]   ;;  %v3581_v17 = vld [vmem:[#allocation11 + $0xd0] ss:$8 sps:$4 sm:$0xff]  }
 0x244   :  { %1501 = vmatpush1.bf16.msra.mxu0 %v3472_v15  ;;  %v3562_v15 = vld [vmem:[#allocation13 + $0x24] ss:$8 sps:$4 sm:$0xff]   ;;  %v3584_v29 = vld [vmem:[#allocation13 + $0xe0] ss:$8 sps:$4 sm:$0xff]   ;;  %s4028_s0 = smov [#allocation22]  }
 0x245   :  { %1542 = vmatpush1.bf16.msra.mxu1 %v3473_v20  ;;  %1502 = vmatprep.subr.bf16.mxu0 %v3474_v21  ;;  %v3551_v20 = vld [vmem:[#allocation11 + $0x20] ss:$8 sps:$4 sm:$0xff]   ;;  %v3559_v21 = vld [vmem:[#allocation11 + $0x14] ss:$8 sps:$4 sm:$0xff]   ;;  %v3598_v39 = vld [vmem:[#allocation13 + $0xc4] ss:$8 sps:$4 sm:$0xff]  }
 0x246   :  { %1543 = vmatprep.subr.bf16.mxu1 %v3476_v22  ;;  %v3560_v22 = vld [vmem:[#allocation13 + $0x20] ss:$8 sps:$4 sm:$0xff]   ;;  %s3056_s13 = sshll.u32 %s4028_s0, 4  ;;  %s3057_s13 = int_to_ptr.vmem [resolvable:$true] %s3056_s13 }
 0x247   :  { %v3587_v40 = vld [vmem:[#allocation11 + $0xc0] ss:$8 sps:$4 sm:$0xff]   ;;  %p3969_p7 = scmp.lt.s32.totalorder %s3057_s13, %s3057_s13 }
 0x248   :  { %1503 = vmatpush2.bf16.msra.mxu0 %v3478_v23  ;;  %v3568_v23 = vld [vmem:[#allocation13 + $0x14] ss:$8 sps:$4 sm:$0xff]  }
 0x249   :  { %1544 = vmatpush2.bf16.msra.mxu1 %v3479_v19  ;;  %1504 = vmatprep.subr.bf16.mxu0 %v3480_v24  ;;  %v3557_v19 = vld [vmem:[#allocation11 + $0x10] ss:$8 sps:$4 sm:$0xff]  }
 0x24a   :  { %1545 = vmatprep.subr.bf16.mxu1 %v3482_v18  ;;  %v3566_v24 = vld [vmem:[#allocation13 + $0x10] ss:$8 sps:$4 sm:$0xff]   ;;  %v3565_v18 = vld [vmem:[#allocation11 + $0x4] ss:$8 sps:$4 sm:$0xff]  }
 0x24c   :  { %1505 = vmatpush2.bf16.msra.mxu0 %v3484_v25  ;;  %v3574_v25 = vld [vmem:[#allocation13 + $0x4] ss:$8 sps:$4 sm:$0xff]  }
 0x24d   :  { %1546 = vmatpush2.bf16.msra.mxu1 %v3485_v5  ;;  %1506 = vmatprep.subr.bf16.mxu0 %v3486_v6  ;;  %v3563_v5 = vld [vmem:[#allocation11] ss:$8 sps:$4 sm:$0xff]  }
 0x24e   :  { %1547 = vmatprep.subr.bf16.mxu1 %v3488_v26  ;;  %v3572_v6 = vld [vmem:[#allocation13] ss:$8 sps:$4 sm:$0xff]   ;;  %v3571_v26 = vld [vmem:[#allocation11 + $0xf4] ss:$8 sps:$4 sm:$0xff]  }
 0x250   :  { %1507 = vmatpush2.bf16.msra.mxu0 %v3490_v31  ;;  %v3580_v31 = vld [vmem:[#allocation13 + $0xf4] ss:$8 sps:$4 sm:$0xff]  }
 0x251   :  { %1548 = vmatpush2.bf16.msra.mxu1 %v3491_v32  ;;  %1508 = vmatprep.subr.bf16.mxu0 %v3492_v33  ;;  %v3569_v32 = vld [vmem:[#allocation11 + $0xf0] ss:$8 sps:$4 sm:$0xff]  }
 0x252   :  { %1549 = vmatprep.subr.bf16.mxu1 %v3494_v34  ;;  %v3578_v33 = vld [vmem:[#allocation13 + $0xf0] ss:$8 sps:$4 sm:$0xff]   ;;  %v3577_v34 = vld [vmem:[#allocation11 + $0xe4] ss:$8 sps:$4 sm:$0xff]  }
 0x254   :  { %1509 = vmatpush2.bf16.msra.mxu0 %v3496_v36  ;;  %v3583_v36 = vld [vmem:[#allocation11 + $0xd4] ss:$8 sps:$4 sm:$0xff]  }
 0x255   :  { %1550 = vmatpush2.bf16.msra.mxu1 %v3497_v16  ;;  %1510 = vmatprep.subr.bf16.mxu0 %v3498_v37  ;;  %v3592_v16 = vld [vmem:[#allocation13 + $0xd4] ss:$8 sps:$4 sm:$0xff]   ;;  %v3590_v37 = vld [vmem:[#allocation13 + $0xd0] ss:$8 sps:$4 sm:$0xff]  }
 0x256   :  { %1551 = vmatprep.subr.bf16.mxu1 %v3500_v38  ;;  %v3589_v38 = vld [vmem:[#allocation11 + $0xc4] ss:$8 sps:$4 sm:$0xff]  }
 0x258   :  { %1511 = vmatpush2.bf16.msra.mxu0 %v3502_v41  ;;  %v3596_v41 = vld [vmem:[#allocation13 + $0xc0] ss:$8 sps:$4 sm:$0xff]  }
 0x259   :  { %1552 = vmatpush2.bf16.msra.mxu1 %v3503_v42  ;;  %1512 = vmatprep.subr.bf16.mxu0 %v3504_v43  ;;  %v3595_v42 = vld [vmem:[#allocation11 + $0xb4] ss:$8 sps:$4 sm:$0xff]  }
 0x25a   :  { %1553 = vmatprep.subr.bf16.mxu1 %v3506_v44  ;;  %v3604_v43 = vld [vmem:[#allocation13 + $0xb4] ss:$8 sps:$4 sm:$0xff]   ;;  %v3593_v44 = vld [vmem:[#allocation11 + $0xb0] ss:$8 sps:$4 sm:$0xff]  }
 0x25c   :  { %1513 = vmatpush2.bf16.msra.mxu0 %v3508_v45  ;;  %v3602_v45 = vld [vmem:[#allocation13 + $0xb0] ss:$8 sps:$4 sm:$0xff]  }
 0x25d   :  { %1554 = vmatpush2.bf16.msra.mxu1 %v3509_v46  ;;  %1514 = vmatprep.subr.bf16.mxu0 %v3510_v47  ;;  %v3601_v46 = vld [vmem:[#allocation11 + $0xa4] ss:$8 sps:$4 sm:$0xff]  }
 0x25e   :  { %1555 = vmatprep.subr.bf16.mxu1 %v3512_v48  ;;  %v3610_v47 = vld [vmem:[#allocation13 + $0xa4] ss:$8 sps:$4 sm:$0xff]   ;;  %v3599_v48 = vld [vmem:[#allocation11 + $0xa0] ss:$8 sps:$4 sm:$0xff]  }
 0x260   :  { %1515 = vmatpush2.bf16.msra.mxu0 %v3514_v49  ;;  %v3608_v49 = vld [vmem:[#allocation13 + $0xa0] ss:$8 sps:$4 sm:$0xff]  }
 0x261   :  { %1556 = vmatpush2.bf16.msra.mxu1 %v3515_v50  ;;  %1516 = vmatprep.subr.bf16.mxu0 %v3516_v51  ;;  %v3607_v50 = vld [vmem:[#allocation11 + $0x94] ss:$8 sps:$4 sm:$0xff]   ;;  %v3605_v51 = vld [vmem:[#allocation11 + $0x90] ss:$8 sps:$4 sm:$0xff]  }
 0x262   :  { %1557 = vmatprep.subr.bf16.mxu1 %v3518_v52  ;;  %v3613_v52 = vld [vmem:[#allocation11 + $0x84] ss:$8 sps:$4 sm:$0xff]  }
 0x264   :  { %1517 = vmatpush2.bf16.msra.mxu0 %v3520_v53  ;;  %v3611_v53 = vld [vmem:[#allocation11 + $0x80] ss:$8 sps:$4 sm:$0xff]  }
 0x265   :  { %1558 = vmatpush2.bf16.msra.mxu1 %v3521_v28  ;;  %1799 = vmatprep.subr.bf16.mxu0 %v3532_v59  ;;  %v1075_v28 = vld [vmem:[#allocation2] sm:$0xff]  ;;  %v3616_v59 = vld [vmem:[#allocation13 + $0x94] ss:$8 sps:$4 sm:$0xff]  }
 0x266   :  { %2000 = vmatprep.subr.bf16.mxu1 %v3526_v54  ;;  %vm1076_vm5 = vcmp.eq.f32.partialorder %v1075_v28, -inf }
 0x267   :  { %1519 = vmatmul.mubr.bf16.vlgmr.msra.gmra.mxu0 %v1086_v60  ;;  %v1077_v54 = vsel %vm1076_vm5, 0.0, %v1075_v28  ;;  %vm4743_vm12 = vmneg %vm1076_vm5 }
 0x268   :  { %1560 = vmatmul.mubr.bf16.vlgmr.msra.gmra.mxu1 %v1088_v27  ;;  %1800 = vmatpush1.bf16.msra.mxu0 %v3530_v62  ;;  %v1569_v60 = vcombine.high %v1077_v54, %v1077_v54  ;;  %v3614_v27 = vld [vmem:[#allocation13 + $0x90] ss:$8 sps:$4 sm:$0xff]   ;;  %v3619_v62 = vld [vmem:[#allocation14 + $0x74] ss:$8 sps:$4 sm:$0xff]   ;;  %vm3207_vm7 = vmpackc.low %vm4743_vm12, %vm4743_vm12 }
 0x269   :  { %2001 = vmatpush1.bf16.msra.mxu1 %v3524_v61  ;;  %1801 = vmatprep.subr.bf16.mxu0 %v3538_v63  ;;  %v3617_v63 = vld [vmem:[#allocation14 + $0x70] ss:$8 sps:$4 sm:$0xff]  }
 0x26a   :  { %2002 = vmatprep.subr.bf16.mxu1 %v3529_v58  ;;  %v1572_v61 = vpack.c.bf16 %v1569_v60, %v1569_v60  ;;  %v4741_v58 = vpack.c.bf16 %v1075_v28, %v1075_v28  ;;  %v3626_v28 = vld [vmem:[#allocation16 + $0x70] ss:$8 sps:$4 sm:$0xff]   ;;  %v3632_v60 = vld [vmem:[#allocation16 + $0x60] ss:$8 sps:$4 sm:$0xff]  }
 0x26c   :  { %1802 = vmatpush1.bf16.msra.mxu0 %v3536_v0  ;;  %2032 = vmatprep.mubr.bf16.mxu1 %v1572_v61  ;;  %v3622_v0 = vld [vmem:[#allocation13 + $0x84] ss:$8 sps:$4 sm:$0xff]  }
 0x26d   :  { %2003 = vmatpush1.bf16.msra.mxu1 %v3527_v57  ;;  %1803 = vmatprep.subr.bf16.mxu0 %v3544_v3  ;;  %v3625_v3 = vld [vmem:[#allocation14 + $0x64] ss:$8 sps:$4 sm:$0xff]   ;;  %v3650_v57 = vld [vmem:[#allocation16 + $0x30] ss:$8 sps:$4 sm:$0xff]  }
 0x26e   :  { %2004 = vmatprep.subr.bf16.mxu1 %v3535_v2  ;;  %v3620_v2 = vld [vmem:[#allocation13 + $0x80] ss:$8 sps:$4 sm:$0xff]  }
 0x270   :  { %1804 = vmatpush1.bf16.msra.mxu0 %v3542_v9  ;;  %v3628_v9 = vld [vmem:[#allocation16 + $0x74] ss:$8 sps:$4 sm:$0xff]  }
 0x271   :  { %2005 = vmatpush1.bf16.msra.mxu1 %v3533_v4  ;;  %1805 = vmatprep.subr.bf16.mxu0 %v3550_v11  ;;  %v3623_v4 = vld [vmem:[#allocation14 + $0x60] ss:$8 sps:$4 sm:$0xff]   ;;  %v3629_v11 = vld [vmem:[#allocation14 + $0x50] ss:$8 sps:$4 sm:$0xff]  }
 0x272   :  { %2006 = vmatprep.subr.bf16.mxu1 %v3541_v10  ;;  %v3631_v10 = vld [vmem:[#allocation14 + $0x54] ss:$8 sps:$4 sm:$0xff]  }
 0x274   :  { %1806 = vmatpush1.bf16.msra.mxu0 %v3548_v8  ;;  %v3635_v8 = vld [vmem:[#allocation14 + $0x40] ss:$8 sps:$4 sm:$0xff]  }
 0x275   :  { %2007 = vmatpush1.bf16.msra.mxu1 %v3539_v12  ;;  %1807 = vmatprep.subr.bf16.mxu0 %v3556_v7  ;;  %v3637_v12 = vld [vmem:[#allocation14 + $0x44] ss:$8 sps:$4 sm:$0xff]   ;;  %v3641_v7 = vld [vmem:[#allocation14 + $0x30] ss:$8 sps:$4 sm:$0xff]  }
 0x276   :  { %2008 = vmatprep.subr.bf16.mxu1 %v3547_v13  ;;  %v3643_v13 = vld [vmem:[#allocation14 + $0x34] ss:$8 sps:$4 sm:$0xff]  }
 0x278   :  { %1808 = vmatpush1.bf16.msra.mxu0 %v3554_v55  ;;  %v3647_v55 = vld [vmem:[#allocation14 + $0x20] ss:$8 sps:$4 sm:$0xff]  }
 0x279   :  { %2009 = vmatpush1.bf16.msra.mxu1 %v3545_v14  ;;  %1809 = vmatprep.subr.bf16.mxu0 %v3562_v15  ;;  %v3649_v14 = vld [vmem:[#allocation14 + $0x24] ss:$8 sps:$4 sm:$0xff]   ;;  %v3653_v15 = vld [vmem:[#allocation14 + $0x10] ss:$8 sps:$4 sm:$0xff]  }
 0x27a   :  { %2010 = vmatprep.subr.bf16.mxu1 %v3553_v56  ;;  %v3655_v56 = vld [vmem:[#allocation14 + $0x14] ss:$8 sps:$4 sm:$0xff]  }
 0x27c   :  { %1810 = vmatpush1.bf16.msra.mxu0 %v3560_v22  ;;  %v3667_v22 = vld [vmem:[#allocation14 + $0xf4] ss:$8 sps:$4 sm:$0xff]  }
 0x27d   :  { %2011 = vmatpush1.bf16.msra.mxu1 %v3551_v20  ;;  %1811 = vmatprep.subr.bf16.mxu0 %v3568_v23  ;;  %v3661_v20 = vld [vmem:[#allocation14 + $0x4] ss:$8 sps:$4 sm:$0xff]   ;;  %v3665_v23 = vld [vmem:[#allocation14 + $0xf0] ss:$8 sps:$4 sm:$0xff]  }
 0x27e   :  { %2012 = vmatprep.subr.bf16.mxu1 %v3559_v21  ;;  %v3659_v21 = vld [vmem:[#allocation14] ss:$8 sps:$4 sm:$0xff]  }
 0x280   :  { %1812 = vmatpush1.bf16.msra.mxu0 %v3566_v24  ;;  %v3671_v24 = vld [vmem:[#allocation14 + $0xe0] ss:$8 sps:$4 sm:$0xff]  }
 0x281   :  { %2013 = vmatpush1.bf16.msra.mxu1 %v3557_v19  ;;  %1813 = vmatprep.subr.bf16.mxu0 %v3574_v25  ;;  %v3673_v19 = vld [vmem:[#allocation14 + $0xe4] ss:$8 sps:$4 sm:$0xff]   ;;  %v3677_v25 = vld [vmem:[#allocation14 + $0xd0] ss:$8 sps:$4 sm:$0xff]  }
 0x282   :  { %2014 = vmatprep.subr.bf16.mxu1 %v3565_v18  ;;  %v3679_v18 = vld [vmem:[#allocation14 + $0xd4] ss:$8 sps:$4 sm:$0xff]  }
 0x284   :  { %1814 = vmatpush1.bf16.msra.mxu0 %v3572_v6  ;;  %v3683_v6 = vld [vmem:[#allocation14 + $0xc0] ss:$8 sps:$4 sm:$0xff]  }
 0x285   :  { %2015 = vmatpush1.bf16.msra.mxu1 %v3563_v5  ;;  %1815 = vmatprep.subr.bf16.mxu0 %v3580_v31  ;;  %v3685_v5 = vld [vmem:[#allocation14 + $0xc4] ss:$8 sps:$4 sm:$0xff]   ;;  %v3689_v31 = vld [vmem:[#allocation14 + $0xb0] ss:$8 sps:$4 sm:$0xff]  }
 0x286   :  { %2016 = vmatprep.subr.bf16.mxu1 %v3571_v26  ;;  %v3691_v26 = vld [vmem:[#allocation14 + $0xb4] ss:$8 sps:$4 sm:$0xff]  }
 0x288   :  { %1816 = vmatpush2.bf16.msra.mxu0 %v3578_v33  ;;  %v3695_v33 = vld [vmem:[#allocation14 + $0xa0] ss:$8 sps:$4 sm:$0xff]  }
 0x289   :  { %2017 = vmatpush2.bf16.msra.mxu1 %v3569_v32  ;;  %1817 = vmatprep.subr.bf16.mxu0 %v3586_v30  ;;  %v3697_v32 = vld [vmem:[#allocation14 + $0xa4] ss:$8 sps:$4 sm:$0xff]   ;;  %v3701_v30 = vld [vmem:[#allocation14 + $0x90] ss:$8 sps:$4 sm:$0xff]  }
 0x28a   :  { %2018 = vmatprep.subr.bf16.mxu1 %v3577_v34  ;;  %v3703_v34 = vld [vmem:[#allocation14 + $0x94] ss:$8 sps:$4 sm:$0xff]  }
 0x28c   :  { %1818 = vmatpush2.bf16.msra.mxu0 %v3584_v29  ;;  %v3707_v29 = vld [vmem:[#allocation14 + $0x80] ss:$8 sps:$4 sm:$0xff]  }
 0x28d   :  { %2019 = vmatpush2.bf16.msra.mxu1 %v3575_v35  ;;  %1819 = vmatprep.subr.bf16.mxu0 %v3592_v16  ;;  %v3709_v35 = vld [vmem:[#allocation14 + $0x84] ss:$8 sps:$4 sm:$0xff]  }
 0x28e   :  { %2020 = vmatprep.subr.bf16.mxu1 %v3583_v36  ;;  %v1156_v36 = vlaneseq }
 0x290   :  { %1820 = vmatpush2.bf16.msra.mxu0 %v3590_v37  ;;  %v1157_v16 = vshrl.u32 %v1156_v36, 7  ;;  %v1154_v37 = vld [vmem:[%s4920_s2] sm:$0x3]  ;;  %v3723_v36 = vld [vmem:[#allocation19 + $0x30] sm:$0xff]  }
 0x291   :  { %2021 = vmatpush2.bf16.msra.mxu1 %v3581_v17  ;;  %1821 = vmatprep.subr.bf16.mxu0 %v3598_v39 }
 0x292   :  { %2022 = vmatprep.subr.bf16.mxu1 %v3589_v38  ;;  %v4762_v17 = vsub.s32 0, %v1157_v16  ;;  %v4767_v38 = vsub.s32 1, %v1157_v16  ;;  %v3724_v16 = vld [vmem:[#allocation17 + $0x68] sm:$0xff]  }
 0x294   :  { %1822 = vmatpush2.bf16.msra.mxu0 %v3596_v41  ;;  %v1159_v39 = vrot.slane %v1154_v37, %v4762_v17 }
 0x295   :  { %2023 = vmatpush2.bf16.msra.mxu1 %v3587_v40  ;;  %1823 = vmatprep.subr.bf16.mxu0 %v3604_v43  ;;  %v1163_v40 = vrot.slane %v1154_v37, %v4767_v38  ;;  %v3725_v37 = vld [vmem:[#allocation19 + $0x68] sm:$0xff]  }
 0x296   :  { %2024 = vmatprep.subr.bf16.mxu1 %v3595_v42 }
 0x298   :  { %1824 = vmatpush2.bf16.msra.mxu0 %v3602_v45 }
 0x299   :  { %2025 = vmatpush2.bf16.msra.mxu1 %v3593_v44  ;;  %1825 = vmatprep.subr.bf16.mxu0 %v3610_v47 }
 0x29a   :  { %2026 = vmatprep.subr.bf16.mxu1 %v3601_v46 }
 0x29c   :  { %1826 = vmatpush2.bf16.msra.mxu0 %v3608_v49 }
 0x29d   :  { %2027 = vmatpush2.bf16.msra.mxu1 %v3599_v48  ;;  %1827 = vmatprep.subr.bf16.mxu0 %v3616_v59  ;;  %v3634_v59 = vld [vmem:[#allocation16 + $0x64] ss:$8 sps:$4 sm:$0xff]  }
 0x29e   :  { %2028 = vmatprep.subr.bf16.mxu1 %v3607_v50 }
 0x2a0   :  { %1828 = vmatpush2.bf16.msra.mxu0 %v3614_v27  ;;  %v3640_v27 = vld [vmem:[#allocation16 + $0x54] ss:$8 sps:$4 sm:$0xff]  }
 0x2a1   :  { %2029 = vmatpush2.bf16.msra.mxu1 %v3605_v51  ;;  %1829 = vmatprep.subr.bf16.mxu0 %v3622_v0  ;;  %v3658_v0 = vld [vmem:[#allocation16 + $0x24] ss:$8 sps:$4 sm:$0xff]  }
 0x2a2   :  { %2030 = vmatprep.subr.bf16.mxu1 %v3613_v52 }
 0x2a4   :  { %1830 = vmatpush2.bf16.msra.mxu0 %v3620_v2  ;;  %v3656_v2 = vld [vmem:[#allocation16 + $0x20] ss:$8 sps:$4 sm:$0xff]  }
 0x2a5   :  { %2031 = vmatpush2.bf16.msra.mxu1 %v3611_v53  ;;  %2279 = vmatprep.subr.bf16.mxu0 %v3628_v9  ;;  %v3670_v9 = vld [vmem:[#allocation16 + $0x4] ss:$8 sps:$4 sm:$0xff]  }
 0x2a6   :  { %2480 = vmatprep.subr.bf16.mxu1 %v3619_v62  ;;  %v3646_v62 = vld [vmem:[#allocation16 + $0x44] ss:$8 sps:$4 sm:$0xff]  }
 0x2a8   :  { %3209 = vmatmul.mubr.msk.bf16.vlgmr.msra.gmra.mxu1 %vm3207_vm7, %v4741_v58 }
 0x2a9   :  { %2481 = vmatpush1.bf16.msra.mxu1 %v3617_v63  ;;  %2512 = vmatprep.mubr.bf16.mxu1 %v1572_v61  ;;  %v3638_v61 = vld [vmem:[#allocation16 + $0x50] ss:$8 sps:$4 sm:$0xff]   ;;  %v3652_v63 = vld [vmem:[#allocation16 + $0x34] ss:$8 sps:$4 sm:$0xff]  }
 0x2aa   :  { %2482 = vmatprep.subr.bf16.mxu1 %v3625_v3  ;;  %v3664_v3 = vld [vmem:[#allocation16 + $0x14] ss:$8 sps:$4 sm:$0xff]  }
 0x2ad   :  { %2483 = vmatpush1.bf16.msra.mxu1 %v3623_v4  ;;  %v3662_v4 = vld [vmem:[#allocation16 + $0x10] ss:$8 sps:$4 sm:$0xff]  }
 0x2ae   :  { %2484 = vmatprep.subr.bf16.mxu1 %v3631_v10  ;;  %v3668_v10 = vld [vmem:[#allocation16] ss:$8 sps:$4 sm:$0xff]  }
 0x2b1   :  { %2485 = vmatpush1.bf16.msra.mxu1 %v3629_v11  ;;  %v3676_v11 = vld [vmem:[#allocation16 + $0xf4] ss:$8 sps:$4 sm:$0xff]  }
 0x2b2   :  { %2486 = vmatprep.subr.bf16.mxu1 %v3637_v12  ;;  %v3674_v12 = vld [vmem:[#allocation16 + $0xf0] ss:$8 sps:$4 sm:$0xff]  }
 0x2b5   :  { %2487 = vmatpush1.bf16.msra.mxu1 %v3635_v8  ;;  %v3682_v8 = vld [vmem:[#allocation16 + $0xe4] ss:$8 sps:$4 sm:$0xff]  }
 0x2b6   :  { %2488 = vmatprep.subr.bf16.mxu1 %v3643_v13  ;;  %v3680_v13 = vld [vmem:[#allocation16 + $0xe0] ss:$8 sps:$4 sm:$0xff]  }
 0x2b9   :  { %2489 = vmatpush1.bf16.msra.mxu1 %v3641_v7  ;;  %v3688_v7 = vld [vmem:[#allocation16 + $0xd4] ss:$8 sps:$4 sm:$0xff]  }
 0x2ba   :  { %2490 = vmatprep.subr.bf16.mxu1 %v3649_v14  ;;  %v3686_v14 = vld [vmem:[#allocation16 + $0xd0] ss:$8 sps:$4 sm:$0xff]  }
 0x2bd   :  { %2491 = vmatpush1.bf16.msra.mxu1 %v3647_v55  ;;  %v3694_v55 = vld [vmem:[#allocation16 + $0xc4] ss:$8 sps:$4 sm:$0xff]  }
 0x2be   :  { %2492 = vmatprep.subr.bf16.mxu1 %v3655_v56  ;;  %v3692_v56 = vld [vmem:[#allocation16 + $0xc0] ss:$8 sps:$4 sm:$0xff]  }
 0x2c1   :  { %2493 = vmatpush1.bf16.msra.mxu1 %v3653_v15  ;;  %v3700_v15 = vld [vmem:[#allocation16 + $0xb4] ss:$8 sps:$4 sm:$0xff]  }
 0x2c2   :  { %2494 = vmatprep.subr.bf16.mxu1 %v3661_v20  ;;  %v3698_v20 = vld [vmem:[#allocation16 + $0xb0] ss:$8 sps:$4 sm:$0xff]  }
 0x2c5   :  { %2495 = vmatpush1.bf16.msra.mxu1 %v3659_v21  ;;  %v3706_v21 = vld [vmem:[#allocation16 + $0xa4] ss:$8 sps:$4 sm:$0xff]  }
 0x2c6   :  { %2496 = vmatprep.subr.bf16.mxu1 %v3667_v22  ;;  %v3704_v22 = vld [vmem:[#allocation16 + $0xa0] ss:$8 sps:$4 sm:$0xff]  }
 0x2c9   :  { %2497 = vmatpush2.bf16.msra.mxu1 %v3665_v23  ;;  %v3712_v23 = vld [vmem:[#allocation16 + $0x94] ss:$8 sps:$4 sm:$0xff]  }
 0x2ca   :  { %2498 = vmatprep.subr.bf16.mxu1 %v3673_v19  ;;  %v3710_v19 = vld [vmem:[#allocation16 + $0x90] ss:$8 sps:$4 sm:$0xff]  }
 0x2cd   :  { %2499 = vmatpush2.bf16.msra.mxu1 %v3671_v24  ;;  %v3715_v24 = vld [vmem:[#allocation16 + $0x84] ss:$8 sps:$4 sm:$0xff]  }
 0x2ce   :  { %2500 = vmatprep.subr.bf16.mxu1 %v3679_v18  ;;  %v3713_v18 = vld [vmem:[#allocation16 + $0x80] ss:$8 sps:$4 sm:$0xff]  }
 0x2d1   :  { %2501 = vmatpush2.bf16.msra.mxu1 %v3677_v25 }
 0x2d2   :  { %2502 = vmatprep.subr.bf16.mxu1 %v3685_v5 }
 0x2d5   :  { %2503 = vmatpush2.bf16.msra.mxu1 %v3683_v6 }
 0x2d6   :  { %2504 = vmatprep.subr.bf16.mxu1 %v3691_v26 }
 0x2d9   :  { %2505 = vmatpush2.bf16.msra.mxu1 %v3689_v31  ;;  %v3716_v31 = vld [vmem:[#allocation17 + $0x78] sm:$0xff]  }
 0x2da   :  { %2506 = vmatprep.subr.bf16.mxu1 %v3697_v32  ;;  %v3717_v32 = vld [vmem:[#allocation19 + $0x78] sm:$0xff]  }
 0x2dd   :  { %2507 = vmatpush2.bf16.msra.mxu1 %v3695_v33  ;;  %v3718_v33 = vld [vmem:[#allocation17 + $0x38] sm:$0xff]  }
 0x2de   :  { %2508 = vmatprep.subr.bf16.mxu1 %v3703_v34  ;;  %v3719_v34 = vld [vmem:[#allocation19 + $0x38] sm:$0xff]  }
 0x2e1   :  { %2509 = vmatpush2.bf16.msra.mxu1 %v3701_v30  ;;  %v3720_v30 = vld [vmem:[#allocation17 + $0x70] sm:$0xff]  }
 0x2e2   :  { %2510 = vmatprep.subr.bf16.mxu1 %v3709_v35  ;;  %v3721_v35 = vld [vmem:[#allocation19 + $0x70] sm:$0xff]  }
 0x2e5   :  { %2511 = vmatpush2.bf16.msra.mxu1 %v3707_v29  ;;  %v3722_v29 = vld [vmem:[#allocation17 + $0x30] sm:$0xff]  }
 0x2e6   :  { %3346 = vmatprep.subr.bf16.mxu1 %v3717_v32 }
 0x2e8   :  { %3278 = vmatmul.mubr.msk.bf16.vlgmr.msra.gmra.mxu1 %vm3207_vm7, %v4741_v58  ;;  %v3644_v58 = vld [vmem:[#allocation16 + $0x40] ss:$8 sps:$4 sm:$0xff]  }
 0x2e9   :  { %3347 = vmatpush3.bf16.msra.mxu1 %v3719_v34 }
 0x2ea   :  { %3348 = vmatprep.subr.bf16.mxu1 %v3721_v35 }
 0x2ed   :  { %3349 = vmatpush3.bf16.msra.mxu1 %v3723_v36 }
 0x2ee   :  { %3350 = vmatprep.subr.bf16.mxu1 %v3725_v37 }
 0x327   :  { %v1520_v41 = vpop.f32.mrf.mxu0 }
 0x328   :  { %v1561_v42 = vpop.f32.mrf.mxu1  ;;  %v1521_v43 = vadd.f32 %v1520_v41, %v1159_v39  ;;  %v3726_v39 = vld [vmem:[#allocation17 + $0x28] sm:$0xff]   ;;  %v3728_v41 = vld [vmem:[#allocation17 + $0x60] sm:$0xff]  }
 0x329   :  { %v1522_v44 = vpop.f32.mrf.mxu0 }
 0x32a   :  { %v1563_v45 = vpop.f32.mrf.mxu1  ;;  %v1523_v46 = vadd.f32 %v1522_v44, %v1163_v40  ;;  %v1562_v47 = vadd.f32 %v1561_v42, %v1521_v43  ;;  %v3727_v40 = vld [vmem:[#allocation19 + $0x28] sm:$0xff]   ;;  %v3729_v42 = vld [vmem:[#allocation19 + $0x60] sm:$0xff]  }
 0x32b   :  { %v1524_v48 = vpop.f32.mrf.mxu0  ;;  %3351 = vmatpush3.bf16.msra.mxu1 %v3727_v40  ;;  %v3730_v43 = vld [vmem:[#allocation17 + $0x20] sm:$0xff]  }
 0x32c   :  { %v1565_v49 = vpop.f32.mrf.mxu1  ;;  %v1564_v50 = vadd.f32 %v1563_v45, %v1523_v46  ;;  %v4771_v54 = vpack.c.bf16 %v1562_v47, %v1562_v47  ;;  %v3731_v44 = vld [vmem:[#allocation19 + $0x20] sm:$0xff]   ;;  %3352 = vmatprep.subr.bf16.mxu1 %v3729_v42  ;;  %v3732_v45 = vld [vmem:[#allocation17 + $0x58] sm:$0xff]  }
 0x32d   :  { %v1525_v51 = vpop.f32.mrf.mxu0  ;;  %v3733_v46 = vld [vmem:[#allocation19 + $0x58] sm:$0xff]  }
 0x32e   :  { %v1566_v52 = vpop.f32.mrf.mxu1  ;;  %v1606_v53 = vpack.c.bf16 %v1564_v50, %v1564_v50  ;;  %v3734_v47 = vld [vmem:[#allocation17 + $0x18] sm:$0xff]  }
 0x32f   :  { %3353 = vmatpush3.bf16.msra.mxu1 %v3731_v44  ;;  %v3735_v48 = vld [vmem:[#allocation19 + $0x18] sm:$0xff]   ;;  %v3736_v52 = vld [vmem:[#allocation17 + $0x50] sm:$0xff]  }
 0x330   :  { %1831 = vmatprep.mubr.bf16.mxu0 %v1606_v53  ;;  %3354 = vmatprep.subr.bf16.mxu1 %v3733_v46  ;;  %v3752_v44 = vld [vmem:[#allocation20 + $0x18] sm:$0xff]   ;;  %v3754_v46 = vld [vmem:[#allocation20 + $0x8] sm:$0xff]  }
 0x331   :  { %1832 = vmatmul.mubr.bf16.vlgmr.msra.gmra.mxu0 %v4771_v54 }
 0x332   :  { %2280 = vmatpush1.bf16.msra.mxu0 %v3626_v28  ;;  %2311 = vmatprep.mubr.bf16.mxu0 %v1606_v53  ;;  %v3737_v53 = vld [vmem:[#allocation19 + $0x50] sm:$0xff]  }
 0x333   :  { %2281 = vmatprep.subr.bf16.mxu0 %v3634_v59  ;;  %3355 = vmatpush3.bf16.msra.mxu1 %v3735_v48  ;;  %v3738_v28 = vld [vmem:[#allocation17 + $0x10] sm:$0xff]  }
 0x334   :  { %3356 = vmatprep.subr.bf16.mxu1 %v3737_v53 }
 0x336   :  { %2282 = vmatpush1.bf16.msra.mxu0 %v3632_v60  ;;  %v3740_v60 = vld [vmem:[#allocation17 + $0x48] sm:$0xff]  }
 0x337   :  { %2283 = vmatprep.subr.bf16.mxu0 %v3640_v27  ;;  %v3741_v27 = vld [vmem:[#allocation19 + $0x48] sm:$0xff]  }
 0x33a   :  { %2284 = vmatpush1.bf16.msra.mxu0 %v3638_v61  ;;  %v3742_v61 = vld [vmem:[#allocation17 + $0x8] sm:$0xff]  }
 0x33b   :  { %2285 = vmatprep.subr.bf16.mxu0 %v3646_v62  ;;  %v3743_v62 = vld [vmem:[#allocation19 + $0x8] sm:$0xff]  }
 0x33e   :  { %2286 = vmatpush1.bf16.msra.mxu0 %v3644_v58  ;;  %v3744_v58 = vld [vmem:[#allocation17 + $0x40] sm:$0xff]  }
 0x33f   :  { %2287 = vmatprep.subr.bf16.mxu0 %v3652_v63  ;;  %v3745_v63 = vld [vmem:[#allocation19 + $0x40] sm:$0xff]  }
 0x342   :  { %2288 = vmatpush1.bf16.msra.mxu0 %v3650_v57  ;;  %v3746_v57 = vld [vmem:[#allocation17] sm:$0xff]  }
 0x343   :  { %2289 = vmatprep.subr.bf16.mxu0 %v3658_v0  ;;  %v3747_v0 = vld [vmem:[#allocation19] sm:$0xff]  }
 0x346   :  { %2290 = vmatpush1.bf16.msra.mxu0 %v3656_v2 }
 0x347   :  { %2291 = vmatprep.subr.bf16.mxu0 %v3664_v3 }
 0x34a   :  { %2292 = vmatpush1.bf16.msra.mxu0 %v3662_v4 }
 0x34b   :  { %2293 = vmatprep.subr.bf16.mxu0 %v3670_v9 }
 0x34e   :  { %2294 = vmatpush1.bf16.msra.mxu0 %v3668_v10  ;;  %v2041_v10 = vld [vmem:[%s4835_s7] sm:$0x3] }
 0x34f   :  { %2295 = vmatprep.subr.bf16.mxu0 %v3676_v11 }
 0x352   :  { %2296 = vmatpush2.bf16.msra.mxu0 %v3674_v12  ;;  %v2046_v12 = vrot.slane %v2041_v10, %v4762_v17 }
 0x353   :  { %2297 = vmatprep.subr.bf16.mxu0 %v3682_v8 }
 0x356   :  { %2298 = vmatpush2.bf16.msra.mxu0 %v3680_v13  ;;  %v2050_v13 = vrot.slane %v2041_v10, %v4767_v38 }
 0x357   :  { %2299 = vmatprep.subr.bf16.mxu0 %v3688_v7 }
 0x35a   :  { %2300 = vmatpush2.bf16.msra.mxu0 %v3686_v14  ;;  %v2537_v14 = vld [vmem:[%s4839_s11] sm:$0x3] }
 0x35b   :  { %2301 = vmatprep.subr.bf16.mxu0 %v3694_v55 }
 0x35e   :  { %2302 = vmatpush2.bf16.msra.mxu0 %v3692_v56 }
 0x35f   :  { %2303 = vmatprep.subr.bf16.mxu0 %v3700_v15  ;;  %v2542_v15 = vrot.slane %v2537_v14, %v4762_v17 }
 0x362   :  { %2304 = vmatpush2.bf16.msra.mxu0 %v3698_v20  ;;  %v2521_v20 = vld [vmem:[%s4838_s10] sm:$0x3] }
 0x363   :  { %2305 = vmatprep.subr.bf16.mxu0 %v3706_v21 }
 0x366   :  { %2306 = vmatpush2.bf16.msra.mxu0 %v3704_v22  ;;  %v2546_v22 = vrot.slane %v2537_v14, %v4767_v38 }
 0x367   :  { %2307 = vmatprep.subr.bf16.mxu0 %v3712_v23  ;;  %v2551_v23 = vld [vmem:[%s4840_s12] sm:$0x3]  ;;  %s4921_s12 = sld [smem:[#allocation37_spill]] }
 0x368   :  { %v4774_v25 = vpop.f32.mrf.mxu1 }
 0x36a   :  { %2308 = vmatpush2.bf16.msra.mxu0 %v3710_v19  ;;  %v4776_v5 = vpop.f32.mrf.mxu1  ;;  %v2526_v19 = vrot.slane %v2521_v20, %v4762_v17 }
 0x36b   :  { %2309 = vmatprep.subr.bf16.mxu0 %v3715_v24 }
 0x36c   :  { %v2038_v6 = vpop.f32.mrf.mxu1 }
 0x36e   :  { %2310 = vmatpush2.bf16.msra.mxu0 %v3713_v18  ;;  %v2039_v26 = vpop.f32.mrf.mxu1 }
 0x36f   :  { %3324 = vmatprep.subr.bf16.mxu0 %v3716_v31  ;;  %v2530_v26 = vrot.slane %v2521_v20, %v4767_v38  ;;  %v2560_v31 = vrot.slane %v2551_v23, %v4767_v38  ;;  %v3750_v38 = vld [vmem:[#allocation20 + $0x28] sm:$0xff]  }
 0x371   :  { %2312 = vmatmul.mubr.bf16.vlgmr.msra.gmra.mxu0 %v4771_v54  ;;  %v3739_v54 = vld [vmem:[#allocation19 + $0x10] sm:$0xff]  }
 0x372   :  { %3325 = vmatpush3.bf16.msra.mxu0 %v3718_v33  ;;  %3357 = vmatpush3.bf16.msra.mxu1 %v3739_v54 }
 0x373   :  { %3326 = vmatprep.subr.bf16.mxu0 %v3720_v30  ;;  %3358 = vmatprep.subr.bf16.mxu1 %v3741_v27 }
 0x376   :  { %3327 = vmatpush3.bf16.msra.mxu0 %v3722_v29  ;;  %3359 = vmatpush3.bf16.msra.mxu1 %v3743_v62 }
 0x377   :  { %3328 = vmatprep.subr.bf16.mxu0 %v3724_v16  ;;  %3360 = vmatprep.subr.bf16.mxu1 %v3745_v63  ;;  %v3314_v63 = vld [vmem:[%s4846_s18] ss:$0 sm:$0xff] }
 0x37a   :  { %3329 = vmatpush3.bf16.msra.mxu0 %v3726_v39  ;;  %3361 = vmatpush3.bf16.msra.mxu1 %v3747_v0 }
 0x37b   :  { %3330 = vmatprep.subr.bf16.mxu0 %v3728_v41  ;;  %v3748_v41 = vld [vmem:[#allocation20 + $0x38] sm:$0xff]  }
 0x37e   :  { %3331 = vmatpush3.bf16.msra.mxu0 %v3730_v43  ;;  %v3751_v43 = vld [vmem:[#allocation20 + $0x20] sm:$0xff]  }
 0x37f   :  { %3332 = vmatprep.subr.bf16.mxu0 %v3732_v45  ;;  %v3753_v45 = vld [vmem:[#allocation20 + $0x10] sm:$0xff]  }
 0x382   :  { %3333 = vmatpush3.bf16.msra.mxu0 %v3734_v47  ;;  %v3755_v47 = vld [vmem:[#allocation20] sm:$0xff]  }
 0x383   :  { %3334 = vmatprep.subr.bf16.mxu0 %v3736_v52 }
 0x386   :  { %3335 = vmatpush3.bf16.msra.mxu0 %v3738_v28 }
 0x387   :  { %3336 = vmatprep.subr.bf16.mxu0 %v3740_v60  ;;  %v3313_v60 = vld [vmem:[%s4845_s17] ss:$0 sm:$0xff] }
 0x38a   :  { %3337 = vmatpush3.bf16.msra.mxu0 %v3742_v61 }
 0x38b   :  { %3338 = vmatprep.subr.bf16.mxu0 %v3744_v58  ;;  %v3296_v58 = vld [vmem:[%s4844_s16] ss:$0 sm:$0xff]  ;;  %s3964_s16 = scalar_lea.vmem %s3057_s13, 64 }
 0x38c   :  { %p3965_p6 = scmp.ne.s32.totalorder %s3057_s13, %s3964_s16  ;;  %p3970_p8 = scmp.lt.s32.totalorder %s3964_s16, %s3964_s16 }
 0x38e   :  { %3339 = vmatpush3.bf16.msra.mxu0 %v3746_v57  ;;  %p3971_p9 = por %p3970_p8, %p3969_p7 }
 0x38f   :  { %3377 = vmatprep.subr.bf16.mxu0 %v4018_v1 }
 0x390   :  { %p3972_p10 = pnand %p3971_p9, %p3965_p6 }
 0x3a8   :  { %v2514_v49 = vpop.f32.mrf.mxu1 }
 0x3aa   :  { %v2516_v50 = vpop.f32.mrf.mxu1 }
 0x3ac   :  { %v2518_v51 = vpop.f32.mrf.mxu1 }
 0x3ae   :  { %v2519_v59 = vpop.f32.mrf.mxu1 }
 0x3f1   :  { %v1833_v2 = vpop.f32.mrf.mxu0 }
 0x3f2   :  { %v2035_v11 = vadd.f32 %v4774_v25, %v1833_v2  ;;  %v2556_v25 = vrot.slane %v2551_v23, %v4762_v17  ;;  %v3749_v17 = vld [vmem:[#allocation20 + $0x30] sm:$0xff]  }
 0x3f3   :  { %v1835_v3 = vpop.f32.mrf.mxu0 }
 0x3f4   :  { %v2037_v8 = vadd.f32 %v4776_v5, %v1835_v3  ;;  %v2053_v7 = vadd.f32 %v2046_v12, %v2035_v11 }
 0x3f5   :  { %v1837_v4 = vpop.f32.mrf.mxu0 }
 0x3f6   :  { %v2054_v55 = vadd.f32 %v2050_v13, %v2037_v8  ;;  %v2535_v56 = vmax.f32 %v2053_v7, 0.0 }
 0x3f7   :  { %v1838_v9 = vpop.f32.mrf.mxu0 }
 0x3f8   :  { %v2536_v21 = vmax.f32 %v2054_v55, 0.0  ;;  %v2549_v24 = vmul.f32 %v2542_v15, %v2535_v56  ;;  %v3315_v9 = vld [vmem:[%s4848_s20] ss:$0 sm:$0xff] }
 0x3fa   :  { %v2550_v5 = vmul.f32 %v2546_v22, %v2536_v21  ;;  %v2563_v30 = vadd.f32 %v2556_v25, %v2549_v24 }
 0x3fc   :  { %v2564_v36 = vadd.f32 %v2560_v31, %v2550_v5 }
 0x431   :  { %v2313_v18 = vpop.f32.mrf.mxu0 }
 0x432   :  { %v2515_v6 = vadd.f32 %v2514_v49, %v2313_v18 }
 0x433   :  { %v2315_v32 = vpop.f32.mrf.mxu0 }
 0x434   :  { %v2533_v33 = vadd.f32 %v2526_v19, %v2515_v6  ;;  %v2517_v34 = vadd.f32 %v2516_v50, %v2315_v32  ;;  %v3279_v50 = vld [vmem:[%s4921_s12] ss:$0 sm:$0xff] }
 0x435   :  { %v2317_v35 = vpop.f32.mrf.mxu0 }
 0x436   :  { %v2534_v29 = vadd.f32 %v2530_v26, %v2517_v34  ;;  %v2565_v16 = vadd.f32 %v2563_v30, %v2533_v33 }
 0x437   :  { %v2318_v37 = vpop.f32.mrf.mxu0 }
 0x438   :  { %v2566_v39 = vadd.f32 %v2564_v36, %v2534_v29  ;;  %v2567_v42 = vpack.c.bf16 %v2565_v16, %v2565_v16 }
 0x43a   :  { %v2568_v40 = vpack.c.bf16 %v2566_v39, %v2566_v39 }
 0x43c   :  { %2736 = vmatprep.mubr.bf16.mxu0 %v2568_v40  ;;  %2912 = vmatprep.mubr.bf16.mxu1 %v2568_v40 }
 0x43d   :  { %2737 = vmatmul.mubr.bf16.vlgmr.msra.gmra.mxu0 %v2567_v42  ;;  %2913 = vmatmul.mubr.bf16.vlgmr.msra.gmra.mxu1 %v2567_v42 }
 0x43e   :  { %3378 = vmatpush3.bf16.msra.mxu0 %v3748_v41  ;;  %3393 = vmatprep.mubr.msk.bf16.mxu0 %vm4027_vm9, %v4018_v1 }
 0x43f   :  { %3379 = vmatprep.subr.bf16.mxu0 %v4018_v1 }
 0x442   :  { %3380 = vmatpush3.bf16.msra.mxu0 %v3749_v17 }
 0x443   :  { %3381 = vmatprep.subr.bf16.mxu0 %v4018_v1 }
 0x446   :  { %3382 = vmatpush3.bf16.msra.mxu0 %v3750_v38 }
 0x447   :  { %3383 = vmatprep.subr.bf16.mxu0 %v4018_v1 }
 0x44a   :  { %3384 = vmatpush3.bf16.msra.mxu0 %v3751_v43 }
 0x44b   :  { %3385 = vmatprep.subr.bf16.mxu0 %v4018_v1 }
 0x44e   :  { %3386 = vmatpush3.bf16.msra.mxu0 %v3752_v44 }
 0x44f   :  { %3387 = vmatprep.subr.bf16.mxu0 %v4018_v1 }
 0x452   :  { %3388 = vmatpush3.bf16.msra.mxu0 %v3753_v45 }
 0x453   :  { %3389 = vmatprep.subr.bf16.mxu0 %v4018_v1 }
 0x456   :  { %3390 = vmatpush3.bf16.msra.mxu0 %v3754_v46 }
 0x457   :  { %3391 = vmatprep.subr.bf16.mxu0 %v4018_v1 }
 0x45a   :  { %3392 = vmatpush3.bf16.msra.mxu0 %v3755_v47 }
 0x4fd   :  { %v3340_v48 = vpop.f32.mrf.mxu0  ;;  %v3362_v49 = vpop.f32.mrf.mxu1 }
 0x4ff   :  { %v3341_v51 = vpop.f32.mrf.mxu0  ;;  %v3363_v52 = vpop.f32.mrf.mxu1 }
 0x500   :  { %v3342_v53 = vadd.f32 %v3341_v51, %v3340_v48  ;;  %v3364_v1 = vadd.f32 %v3363_v52, %v3362_v49 }
 0x501   :  { %v3343_v28 = vpop.f32.mrf.mxu0  ;;  %v3365_v54 = vpop.f32.mrf.mxu1 }
 0x502   :  { %v2739_v59 = vadd.f32 %v3342_v53, %v3279_v50  ;;  %v2915_v0 = vadd.f32 %v3364_v1, %v3296_v58 }
 0x503   :  { %v3344_v27 = vpop.f32.mrf.mxu0  ;;  %v3366_v61 = vpop.f32.mrf.mxu1 }
 0x504   :  { %v2744_v62 = vmax.f32 %v2739_v59, 0.0 }
 0x506   :  { %v2927_v57 = vmul.f32 %v3313_v60, %v2744_v62 }
 0x508   :  { %v2935_v2 = vadd.f32 %v3314_v63, %v2927_v57 }
 0x50a   :  { %v2936_v3 = vadd.f32 %v2935_v2, %v2915_v0 }
 0x50c   :  { %v2937_v4 = vpack.c.bf16 %v2936_v3, %v2936_v3 }
 0x50e   :  { %3394 = vmatmul.mubr.bf16.vlgmr.msra.gmra.mxu0 %v2937_v4 }
 0x5ce   :  { %v3043_v10 = vpop.f32.mrf.mxu0 }
 0x5cf   :  { %v3044_v11 = vadd.f32 %v3315_v9, %v3043_v10 }
 0x5d0   :  { %v3395_v12 = vpop.f32.mrf.mxu0 }
 0x5d1   :  { %3049 = vst [vmem:[#allocation22] sm:$0xf] %v3044_v11 }
 0x5d2   :  { %v3046_v8 = vpop.f32.mrf.mxu0 }
 0x5d3   :  { %3975 = shalt.err (!%p3972_p10)
}
 0x5d4   :  { %3059 = dma.vmem_to_hbm [thread:$0]  %s3057_s13, 64, %s4849_s21, [#allocation7]   ;;  %v3396_v13 = vpop.f32.mrf.mxu0 }
 0x5d5   :  { %3998 = dma.done.wait [#allocation7], 64  }
 0x5d6   :  { %3999 = vsyncadd [#allocation7], 4294967232 }
 0x5d7   :  { %3063 = vsyncpa [#allocation6], 1 }
 0x5d8   :  { %3064 = vsyncpa [#allocation9], 1 }
 0x5d9   :  { %3065 = vsyncpa [#allocation12], 1 }
 0x5da   :  { %3066 = vsyncpa [#allocation15], 1 }
 0x5db   :  { %3067 = vsyncpa [#allocation18], 1 }
 0x5dc   :  { %3068 = vsyncpa [#allocation21], 1 }
 0x5dd   :  { %3069 = vsyncpa [#allocation7], 1 }

</bundles_post_ra>
